<compile_context>
chip_gen: v7x
topology: tpu7x:2x2x1
jax: 0.10.0
libtpu: 0.0.40
codegen_flags: <defaults>
</compile_context>

<pallas_src>
import functools

import jax
import jax.numpy as jnp
from jax.experimental import pallas as pl
from jax.experimental.pallas import tpu as pltpu


# ----------------------------------------------------------------------------
# Fused kernel.
# grid = (B // BT, cdiv(N, tn)); acc scratch (BT, 1024) is resident across t.
# ----------------------------------------------------------------------------
def pointnet_kernel(x_ref, w1, b1, w2, b2, w3, b3, w4, b4, w5, b5,
                    fw1, fb1, fw2, fb2, fw3, fb3, out_ref, acc_ref,
                    *, n_points):
    t = pl.program_id(1)
    n_t = pl.num_programs(1)
    bt, tn, _ = x_ref.shape
    rows = bt * tn

    @pl.when(t == 0)
    def _():
        acc_ref[...] = jnp.full(acc_ref.shape, -jnp.inf, acc_ref.dtype)

    # Rows with point index >= valid belong to the padded tail of the last
    # (partial) point tile: zero them on input and drop them from the max.
    valid = n_points - t * tn
    pid = jax.lax.broadcasted_iota(jnp.int32, (bt, tn, 1), 1)
    row_ok = pid < valid                                     # (BT, tn, 1) bool

    x = jnp.where(row_ok, x_ref[...], 0.0).reshape(rows, 3)  # (R, 3) f32

    def lin_relu(h, w_ref, b_ref):
        # bf16 matmul inputs, f32 MXU accumulation; bias + ReLU in f32.
        z = jnp.dot(h.astype(jnp.bfloat16), w_ref[...],
                    preferred_element_type=jnp.float32)
        return jnp.maximum(z + b_ref[...], 0.0)

    h = lin_relu(x, w1, b1)        # (R, 64)    conv1  [1,3] valid
    h = lin_relu(h, w2, b2)        # (R, 64)    conv2  1x1
    h = lin_relu(h, w3, b3)        # (R, 64)    conv3  1x1
    h = lin_relu(h, w4, b4)        # (R, 128)   conv4  1x1
    h = lin_relu(h, w5, b5)        # (R, 1024)  conv5  1x1

    # Max over the points of each batch segment (sublane reduction), with the
    # padded rows of the last tile masked to -inf.
    h3 = jnp.where(row_ok, h.reshape(bt, tn, h.shape[-1]), -jnp.inf)
    acc_ref[...] = jnp.maximum(acc_ref[...], jnp.max(h3, axis=1))  # (BT, 1024)

    # FC head on the fully pooled feature, once all point tiles are done.
    @pl.when(t == n_t - 1)
    def _():
        feat = acc_ref[...]                                  # (BT, 1024) f32
        g = jnp.maximum(
            jnp.dot(feat.astype(jnp.bfloat16), fw1[...],
                    preferred_element_type=jnp.float32) + fb1[...], 0.0)
        g = jnp.maximum(
            jnp.dot(g.astype(jnp.bfloat16), fw2[...],
                    preferred_element_type=jnp.float32) + fb2[...], 0.0)
        # TODO(synk): nn.Dropout(p=0.6) is identity in eval mode; training-mode
        # stochastic masking is not reproduced here.
        out_ref[...] = (
            jnp.dot(g.astype(jnp.bfloat16), fw3[...],
                    preferred_element_type=jnp.float32) + fb3[...])


# ----------------------------------------------------------------------------
# Wrapper
# ----------------------------------------------------------------------------
def pointnet_forward(x, params, *, rows_per_step=2048):
    """x: (B, N, 3) float32 -> logits (B, nclasses) float32."""
    B, N, _ = x.shape
    (w1, b1), (w2, b2), (w3, b3), (w4, b4), (w5, b5) = params["conv"]
    (fw1, fb1), (fw2, fb2), (fw3, fb3) = params["fc"]
    nclasses = fw3.shape[1]

    # Batch tile: largest of (8, 4, 2) dividing B (sublane-friendly), else the
    # whole batch so the output block always spans the full batch dim.
    BT = next((d for d in (8, 4, 2) if B % d == 0), B)
    # Point tile: ~rows_per_step MXU rows per grid step, multiple of 8,
    # clamped to N rounded up to a multiple of 8.
    n_pad = ((N + 7) // 8) * 8
    tn = max(8, min((rows_per_step // BT) // 8 * 8, n_pad))
    t_steps = pl.cdiv(N, tn)

    kernel = functools.partial(pointnet_kernel, n_points=N)
    const = lambda *blk: pl.BlockSpec(blk, lambda b, t: (0,) * len(blk))

    logits = pl.pallas_call(
        kernel,
        out_shape=jax.ShapeDtypeStruct((B, nclasses), jnp.float32),
        grid_spec=pltpu.PrefetchScalarGridSpec(
            num_scalar_prefetch=0,
            grid=(B // BT, t_steps),
            in_specs=[
                pl.BlockSpec((BT, tn, 3), lambda b, t: (b, t, 0)),
                const(3, 64), const(1, 64),
                const(64, 64), const(1, 64),
                const(64, 64), const(1, 64),
                const(64, 128), const(1, 128),
                const(128, 1024), const(1, 1024),
                const(1024, 512), const(1, 512),
                const(512, 256), const(1, 256),
                const(256, nclasses), const(1, nclasses),
            ],
            out_specs=pl.BlockSpec((BT, nclasses), lambda b, t: (b, 0)),
            scratch_shapes=[pltpu.VMEM((BT, 1024), jnp.float32)],
        ),
        compiler_params=pltpu.CompilerParams(
            dimension_semantics=("parallel", "arbitrary"),
            vmem_limit_bytes=48 << 20),
    )(x, w1, b1, w2, b2, w3, b3, w4, b4, w5, b5,
      fw1, fb1, fw2, fb2, fw3, fb3)
    return logits


# ----------------------------------------------------------------------------
# Pure-JAX reference (same bf16-in / f32-acc math) for correctness checking.
# ----------------------------------------------------------------------------
def pointnet_reference(x, params):
    B, N, _ = x.shape
    h = x.reshape(B * N, 3)
    for w, b in params["conv"]:
        h = jnp.maximum(
            jnp.dot(h.astype(jnp.bfloat16), w,
                    preferred_element_type=jnp.float32) + b, 0.0)
    feat = jnp.max(h.reshape(B, N, -1), axis=1)
    (fw1, fb1), (fw2, fb2), (fw3, fb3) = params["fc"]
    g = jnp.maximum(
        jnp.dot(feat.astype(jnp.bfloat16), fw1,
                preferred_element_type=jnp.float32) + fb1, 0.0)
    g = jnp.maximum(
        jnp.dot(g.astype(jnp.bfloat16), fw2,
                preferred_element_type=jnp.float32) + fb2, 0.0)
    return jnp.dot(g.astype(jnp.bfloat16), fw3,
                   preferred_element_type=jnp.float32) + fb3


# ----------------------------------------------------------------------------
# Deterministic parameter construction (synthetic weights).
# Weights are stored bf16 (matmul inputs); biases stay f32.
# ----------------------------------------------------------------------------
def _init_linear(key, fan_in, fan_out):
    k1, k2 = jax.random.split(key)
    bound = 1.0 / (fan_in ** 0.5)
    w = jax.random.uniform(k1, (fan_in, fan_out), jnp.float32, -bound, bound)
    b = jax.random.uniform(k2, (1, fan_out), jnp.float32, -bound, bound)
    return w, b


def _fold_bn(key, w, b, eps=1e-5):
    """Fold eval-mode BatchNorm (gamma, beta, running stats) into (w, b)."""
    c = w.shape[1]
    k1, k2, k3 = jax.random.split(key, 3)
    gamma = 1.0 + 0.1 * jax.random.normal(k1, (1, c), jnp.float32)
    beta = 0.1 * jax.random.normal(k2, (1, c), jnp.float32)
    running_mean = 0.05 * jax.random.normal(k3, (1, c), jnp.float32)
    running_var = jnp.ones((1, c), jnp.float32)
    scale = gamma / jnp.sqrt(running_var + eps)
    return w * scale, (b - running_mean) * scale + beta


def make_params(key, nclasses):
    keys = jax.random.split(key, 16)
    conv_dims = [(3, 64), (64, 64), (64, 64), (64, 128), (128, 1024)]
    conv = []
    for i, (ci, co) in enumerate(conv_dims):
        w, b = _init_linear(keys[i], ci, co)
        w, b = _fold_bn(keys[8 + i], w, b)      # conv1..conv5 all have bn=True
        conv.append((w.astype(jnp.bfloat16), b))
    fc = []
    for i, (ci, co) in enumerate([(1024, 512), (512, 256), (256, nclasses)]):
        w, b = _init_linear(keys[5 + i], ci, co)
        fc.append((w.astype(jnp.bfloat16), b))
    return {"conv": conv, "fc": fc}


if __name__ == "__main__":
    key = jax.random.PRNGKey(0)
    k_x, k_p = jax.random.split(key)

    # Small shapes (instead of num_point=10000).  N=72 with rows_per_step=64
    # exercises the multi-tile accumulator path and the padded-row masking
    # (72 points -> point tiles of 32, last tile only 8 valid rows).
    B, N, NCLASSES = 2, 72, 40
    x = jax.random.normal(k_x, (B, N, 3), jnp.float32)
    params = make_params(k_p, NCLASSES)

    logits = pointnet_forward(x, params, rows_per_step=64)
    jax.block_until_ready(logits)
    assert logits.shape == (B, NCLASSES)

    ref = pointnet_reference(x, params)
    assert jnp.allclose(logits, ref, rtol=1e-2, atol=1e-2), (
        "kernel output does not match reference")

    print("KERNEL_OK")
</pallas_src>

<mosaic_0001>
module attributes {stable_mosaic.version = 11 : i64} {
  func.func @pointnet_kernel(%arg0: i32, %arg1: i32, %arg2: memref<2x32x3xf32, #tpu.memory_space<vmem>>, %arg3: memref<3x64xbf16, #tpu.memory_space<vmem>>, %arg4: memref<1x64xf32, #tpu.memory_space<vmem>>, %arg5: memref<64x64xbf16, #tpu.memory_space<vmem>>, %arg6: memref<1x64xf32, #tpu.memory_space<vmem>>, %arg7: memref<64x64xbf16, #tpu.memory_space<vmem>>, %arg8: memref<1x64xf32, #tpu.memory_space<vmem>>, %arg9: memref<64x128xbf16, #tpu.memory_space<vmem>>, %arg10: memref<1x128xf32, #tpu.memory_space<vmem>>, %arg11: memref<128x1024xbf16, #tpu.memory_space<vmem>>, %arg12: memref<1x1024xf32, #tpu.memory_space<vmem>>, %arg13: memref<1024x512xbf16, #tpu.memory_space<vmem>>, %arg14: memref<1x512xf32, #tpu.memory_space<vmem>>, %arg15: memref<512x256xbf16, #tpu.memory_space<vmem>>, %arg16: memref<1x256xf32, #tpu.memory_space<vmem>>, %arg17: memref<256x40xbf16, #tpu.memory_space<vmem>>, %arg18: memref<1x40xf32, #tpu.memory_space<vmem>>, %arg19: memref<2x40xf32, #tpu.memory_space<vmem>>, %arg20: memref<2x1024xf32, #tpu.memory_space<vmem>>) attributes {dimension_semantics = [#tpu.dimension_semantics<parallel>, #tpu.dimension_semantics<arbitrary>], iteration_bounds = array<i64: 1, 3>, scalar_prefetch = 0 : i64, scratch_operands = 1 : i64, tpu.core_type = #tpu.core_type<tc>, window_params = [{transform_indices = @transform_0, window_bounds = array<i64: 2, 32, 3>}, {pipeline_mode = #tpu.pipeline_mode<synchronous>, transform_indices = @transform_1, window_bounds = array<i64: 3, 64>}, {pipeline_mode = #tpu.pipeline_mode<synchronous>, transform_indices = @transform_2, window_bounds = array<i64: 1, 64>}, {pipeline_mode = #tpu.pipeline_mode<synchronous>, transform_indices = @transform_3, window_bounds = array<i64: 64, 64>}, {pipeline_mode = #tpu.pipeline_mode<synchronous>, transform_indices = @transform_4, window_bounds = array<i64: 1, 64>}, {pipeline_mode = #tpu.pipeline_mode<synchronous>, transform_indices = @transform_5, window_bounds = array<i64: 64, 64>}, {pipeline_mode = #tpu.pipeline_mode<synchronous>, transform_indices = @transform_6, window_bounds = array<i64: 1, 64>}, {pipeline_mode = #tpu.pipeline_mode<synchronous>, transform_indices = @transform_7, window_bounds = array<i64: 64, 128>}, {pipeline_mode = #tpu.pipeline_mode<synchronous>, transform_indices = @transform_8, window_bounds = array<i64: 1, 128>}, {pipeline_mode = #tpu.pipeline_mode<synchronous>, transform_indices = @transform_9, window_bounds = array<i64: 128, 1024>}, {pipeline_mode = #tpu.pipeline_mode<synchronous>, transform_indices = @transform_10, window_bounds = array<i64: 1, 1024>}, {pipeline_mode = #tpu.pipeline_mode<synchronous>, transform_indices = @transform_11, window_bounds = array<i64: 1024, 512>}, {pipeline_mode = #tpu.pipeline_mode<synchronous>, transform_indices = @transform_12, window_bounds = array<i64: 1, 512>}, {pipeline_mode = #tpu.pipeline_mode<synchronous>, transform_indices = @transform_13, window_bounds = array<i64: 512, 256>}, {pipeline_mode = #tpu.pipeline_mode<synchronous>, transform_indices = @transform_14, window_bounds = array<i64: 1, 256>}, {pipeline_mode = #tpu.pipeline_mode<synchronous>, transform_indices = @transform_15, window_bounds = array<i64: 256, 40>}, {pipeline_mode = #tpu.pipeline_mode<synchronous>, transform_indices = @transform_16, window_bounds = array<i64: 1, 40>}, {transform_indices = @transform_17, window_bounds = array<i64: 2, 40>}]} {
    %c0_i32 = arith.constant 0 : i32
    %0 = arith.cmpi eq, %arg1, %c0_i32 : i32
    %1 = arith.extui %0 : i1 to i32
    %c0_i32_0 = arith.constant 0 : i32
    %2 = arith.cmpi ne, %1, %c0_i32_0 : i32
    scf.if %2 {
      %cst_40 = arith.constant 0xFF800000 : f32
      %66 = vector.broadcast %cst_40 : f32 to vector<2x1024xf32>
      %c0_41 = arith.constant 0 : index
      %c0_42 = arith.constant 0 : index
      %67 = vector.load %arg20[%c0_41, %c0_42] : memref<2x1024xf32, #tpu.memory_space<vmem>>, vector<2x1024xf32>
      tpu.vector_store %arg20[%c0_41, %c0_42], %66 {strides = array<i32>} : memref<2x1024xf32, #tpu.memory_space<vmem>>, vector<2x1024xf32>,
    } else {
    }
    %c32_i32 = arith.constant 32 : i32
    %3 = arith.muli %arg1, %c32_i32 : i32
    %c72_i32 = arith.constant 72 : i32
    %4 = arith.subi %c72_i32, %3 : i32
    %5 = tpu.iota {dimensions = array<i32: 1>} : vector<2x32x1xi32>
    %6 = vector.broadcast %4 : i32 to vector<2x32x1xi32>
    %7 = arith.cmpi slt, %5, %6 : vector<2x32x1xi32>
    %c0 = arith.constant 0 : index
    %c0_1 = arith.constant 0 : index
    %c0_2 = arith.constant 0 : index
    %8 = vector.load %arg2[%c0, %c0_1, %c0_2] : memref<2x32x3xf32, #tpu.memory_space<vmem>>, vector<2x32x3xf32>
    %cst = arith.constant 0.000000e+00 : f32
    %9 = vector.shape_cast %7 : vector<2x32x1xi1> to vector<2x32x1xi1>
    %10 = vector.broadcast %9 : vector<2x32x1xi1> to vector<2x32x3xi1>
    %11 = vector.broadcast %cst : f32 to vector<2x32x3xf32>
    %12 = arith.select %10, %8, %11 : vector<2x32x3xi1>, vector<2x32x3xf32>
    %13 = vector.shape_cast %12 : vector<2x32x3xf32> to vector<64x3xf32>
    %14 = arith.truncf %13 : vector<64x3xf32> to vector<64x3xbf16>
    %c0_3 = arith.constant 0 : index
    %c0_4 = arith.constant 0 : index
    %15 = vector.load %arg3[%c0_3, %c0_4] : memref<3x64xbf16, #tpu.memory_space<vmem>>, vector<3x64xbf16>
    %cst_5 = arith.constant dense<0.000000e+00> : vector<64x64xf32>
    %16 = tpu.matmul %14, %15, %cst_5 {dimension_numbers = #tpu.dot_dimension_numbers<[1], [0], [0], [1], [0, 0, 1, 1], [], []>} : vector<64x3xbf16>, vector<3x64xbf16>, vector<64x64xf32> -> vector<64x64xf32>
    %c0_6 = arith.constant 0 : index
    %c0_7 = arith.constant 0 : index
    %17 = vector.load %arg4[%c0_6, %c0_7] : memref<1x64xf32, #tpu.memory_space<vmem>>, vector<1x64xf32>
    %18 = vector.broadcast %17 : vector<1x64xf32> to vector<64x64xf32>
    %19 = arith.addf %16, %18 : vector<64x64xf32>
    %cst_8 = arith.constant 0.000000e+00 : f32
    %20 = vector.broadcast %cst_8 : f32 to vector<64x64xf32>
    %21 = arith.maximumf %19, %20 : vector<64x64xf32>
    %22 = arith.truncf %21 : vector<64x64xf32> to vector<64x64xbf16>
    %c0_9 = arith.constant 0 : index
    %c0_10 = arith.constant 0 : index
    %23 = vector.load %arg5[%c0_9, %c0_10] : memref<64x64xbf16, #tpu.memory_space<vmem>>, vector<64x64xbf16>
    %cst_11 = arith.constant dense<0.000000e+00> : vector<64x64xf32>
    %24 = tpu.matmul %22, %23, %cst_11 {dimension_numbers = #tpu.dot_dimension_numbers<[1], [0], [0], [1], [0, 0, 1, 1], [], []>} : vector<64x64xbf16>, vector<64x64xbf16>, vector<64x64xf32> -> vector<64x64xf32>
    %c0_12 = arith.constant 0 : index
    %c0_13 = arith.constant 0 : index
    %25 = vector.load %arg6[%c0_12, %c0_13] : memref<1x64xf32, #tpu.memory_space<vmem>>, vector<1x64xf32>
    %26 = vector.broadcast %25 : vector<1x64xf32> to vector<64x64xf32>
    %27 = arith.addf %24, %26 : vector<64x64xf32>
    %cst_14 = arith.constant 0.000000e+00 : f32
    %28 = vector.broadcast %cst_14 : f32 to vector<64x64xf32>
    %29 = arith.maximumf %27, %28 : vector<64x64xf32>
    %30 = arith.truncf %29 : vector<64x64xf32> to vector<64x64xbf16>
    %c0_15 = arith.constant 0 : index
    %c0_16 = arith.constant 0 : index
    %31 = vector.load %arg7[%c0_15, %c0_16] : memref<64x64xbf16, #tpu.memory_space<vmem>>, vector<64x64xbf16>
    %cst_17 = arith.constant dense<0.000000e+00> : vector<64x64xf32>
    %32 = tpu.matmul %30, %31, %cst_17 {dimension_numbers = #tpu.dot_dimension_numbers<[1], [0], [0], [1], [0, 0, 1, 1], [], []>} : vector<64x64xbf16>, vector<64x64xbf16>, vector<64x64xf32> -> vector<64x64xf32>
    %c0_18 = arith.constant 0 : index
    %c0_19 = arith.constant 0 : index
    %33 = vector.load %arg8[%c0_18, %c0_19] : memref<1x64xf32, #tpu.memory_space<vmem>>, vector<1x64xf32>
    %34 = vector.broadcast %33 : vector<1x64xf32> to vector<64x64xf32>
    %35 = arith.addf %32, %34 : vector<64x64xf32>
    %cst_20 = arith.constant 0.000000e+00 : f32
    %36 = vector.broadcast %cst_20 : f32 to vector<64x64xf32>
    %37 = arith.maximumf %35, %36 : vector<64x64xf32>
    %38 = arith.truncf %37 : vector<64x64xf32> to vector<64x64xbf16>
    %c0_21 = arith.constant 0 : index
    %c0_22 = arith.constant 0 : index
    %39 = vector.load %arg9[%c0_21, %c0_22] : memref<64x128xbf16, #tpu.memory_space<vmem>>, vector<64x128xbf16>
    %cst_23 = arith.constant dense<0.000000e+00> : vector<64x128xf32>
    %40 = tpu.matmul %38, %39, %cst_23 {dimension_numbers = #tpu.dot_dimension_numbers<[1], [0], [0], [1], [0, 0, 1, 1], [], []>} : vector<64x64xbf16>, vector<64x128xbf16>, vector<64x128xf32> -> vector<64x128xf32>
    %c0_24 = arith.constant 0 : index
    %c0_25 = arith.constant 0 : index
    %41 = vector.load %arg10[%c0_24, %c0_25] : memref<1x128xf32, #tpu.memory_space<vmem>>, vector<1x128xf32>
    %42 = vector.broadcast %41 : vector<1x128xf32> to vector<64x128xf32>
    %43 = arith.addf %40, %42 : vector<64x128xf32>
    %cst_26 = arith.constant 0.000000e+00 : f32
    %44 = vector.broadcast %cst_26 : f32 to vector<64x128xf32>
    %45 = arith.maximumf %43, %44 : vector<64x128xf32>
    %46 = arith.truncf %45 : vector<64x128xf32> to vector<64x128xbf16>
    %c0_27 = arith.constant 0 : index
    %c0_28 = arith.constant 0 : index
    %47 = vector.load %arg11[%c0_27, %c0_28] : memref<128x1024xbf16, #tpu.memory_space<vmem>>, vector<128x1024xbf16>
    %cst_29 = arith.constant dense<0.000000e+00> : vector<64x1024xf32>
    %48 = tpu.matmul %46, %47, %cst_29 {dimension_numbers = #tpu.dot_dimension_numbers<[1], [0], [0], [1], [0, 0, 1, 1], [], []>} : vector<64x128xbf16>, vector<128x1024xbf16>, vector<64x1024xf32> -> vector<64x1024xf32>
    %c0_30 = arith.constant 0 : index
    %c0_31 = arith.constant 0 : index
    %49 = vector.load %arg12[%c0_30, %c0_31] : memref<1x1024xf32, #tpu.memory_space<vmem>>, vector<1x1024xf32>
    %50 = vector.broadcast %49 : vector<1x1024xf32> to vector<64x1024xf32>
    %51 = arith.addf %48, %50 : vector<64x1024xf32>
    %cst_32 = arith.constant 0.000000e+00 : f32
    %52 = vector.broadcast %cst_32 : f32 to vector<64x1024xf32>
    %53 = arith.maximumf %51, %52 : vector<64x1024xf32>
    %54 = vector.shape_cast %53 : vector<64x1024xf32> to vector<2x32x1024xf32>
    %cst_33 = arith.constant 0xFF800000 : f32
    %55 = vector.shape_cast %7 : vector<2x32x1xi1> to vector<2x32x1xi1>
    %56 = vector.broadcast %55 : vector<2x32x1xi1> to vector<2x32x1024xi1>
    %57 = vector.broadcast %cst_33 : f32 to vector<2x32x1024xf32>
    %58 = arith.select %56, %54, %57 : vector<2x32x1024xi1>, vector<2x32x1024xf32>
    %c0_34 = arith.constant 0 : index
    %c0_35 = arith.constant 0 : index
    %59 = vector.load %arg20[%c0_34, %c0_35] : memref<2x1024xf32, #tpu.memory_space<vmem>>, vector<2x1024xf32>
    %cst_36 = arith.constant dense<0xFF800000> : vector<2x1024xf32>
    %60 = vector.multi_reduction <maximumf>, %58, %cst_36 [1] : vector<2x32x1024xf32> to vector<2x1024xf32>
    %61 = arith.maximumf %59, %60 : vector<2x1024xf32>
    %c0_37 = arith.constant 0 : index
    %c0_38 = arith.constant 0 : index
    %62 = vector.load %arg20[%c0_37, %c0_38] : memref<2x1024xf32, #tpu.memory_space<vmem>>, vector<2x1024xf32>
    tpu.vector_store %arg20[%c0_37, %c0_38], %61 {strides = array<i32>} : memref<2x1024xf32, #tpu.memory_space<vmem>>, vector<2x1024xf32>,
    %c2_i32 = arith.constant 2 : i32
    %63 = arith.cmpi eq, %arg1, %c2_i32 : i32
    %64 = arith.extui %63 : i1 to i32
    %c0_i32_39 = arith.constant 0 : i32
    %65 = arith.cmpi ne, %64, %c0_i32_39 : i32
    scf.if %65 {
      %c0_40 = arith.constant 0 : index
      %c0_41 = arith.constant 0 : index
      %66 = vector.load %arg20[%c0_40, %c0_41] : memref<2x1024xf32, #tpu.memory_space<vmem>>, vector<2x1024xf32>
      %67 = arith.truncf %66 : vector<2x1024xf32> to vector<2x1024xbf16>
      %c0_42 = arith.constant 0 : index
      %c0_43 = arith.constant 0 : index
      %68 = vector.load %arg13[%c0_42, %c0_43] : memref<1024x512xbf16, #tpu.memory_space<vmem>>, vector<1024x512xbf16>
      %cst_44 = arith.constant dense<0.000000e+00> : vector<2x512xf32>
      %69 = tpu.matmul %67, %68, %cst_44 {dimension_numbers = #tpu.dot_dimension_numbers<[1], [0], [0], [1], [0, 0, 1, 1], [], []>} : vector<2x1024xbf16>, vector<1024x512xbf16>, vector<2x512xf32> -> vector<2x512xf32>
      %c0_45 = arith.constant 0 : index
      %c0_46 = arith.constant 0 : index
      %70 = vector.load %arg14[%c0_45, %c0_46] : memref<1x512xf32, #tpu.memory_space<vmem>>, vector<1x512xf32>
      %71 = vector.broadcast %70 : vector<1x512xf32> to vector<2x512xf32>
      %72 = arith.addf %69, %71 : vector<2x512xf32>
      %cst_47 = arith.constant 0.000000e+00 : f32
      %73 = vector.broadcast %cst_47 : f32 to vector<2x512xf32>
      %74 = arith.maximumf %72, %73 : vector<2x512xf32>
      %75 = arith.truncf %74 : vector<2x512xf32> to vector<2x512xbf16>
      %c0_48 = arith.constant 0 : index
      %c0_49 = arith.constant 0 : index
      %76 = vector.load %arg15[%c0_48, %c0_49] : memref<512x256xbf16, #tpu.memory_space<vmem>>, vector<512x256xbf16>
      %cst_50 = arith.constant dense<0.000000e+00> : vector<2x256xf32>
      %77 = tpu.matmul %75, %76, %cst_50 {dimension_numbers = #tpu.dot_dimension_numbers<[1], [0], [0], [1], [0, 0, 1, 1], [], []>} : vector<2x512xbf16>, vector<512x256xbf16>, vector<2x256xf32> -> vector<2x256xf32>
      %c0_51 = arith.constant 0 : index
      %c0_52 = arith.constant 0 : index
      %78 = vector.load %arg16[%c0_51, %c0_52] : memref<1x256xf32, #tpu.memory_space<vmem>>, vector<1x256xf32>
      %79 = vector.broadcast %78 : vector<1x256xf32> to vector<2x256xf32>
      %80 = arith.addf %77, %79 : vector<2x256xf32>
      %cst_53 = arith.constant 0.000000e+00 : f32
      %81 = vector.broadcast %cst_53 : f32 to vector<2x256xf32>
      %82 = arith.maximumf %80, %81 : vector<2x256xf32>
      %83 = arith.truncf %82 : vector<2x256xf32> to vector<2x256xbf16>
      %c0_54 = arith.constant 0 : index
      %c0_55 = arith.constant 0 : index
      %84 = vector.load %arg17[%c0_54, %c0_55] : memref<256x40xbf16, #tpu.memory_space<vmem>>, vector<256x40xbf16>
      %cst_56 = arith.constant dense<0.000000e+00> : vector<2x40xf32>
      %85 = tpu.matmul %83, %84, %cst_56 {dimension_numbers = #tpu.dot_dimension_numbers<[1], [0], [0], [1], [0, 0, 1, 1], [], []>} : vector<2x256xbf16>, vector<256x40xbf16>, vector<2x40xf32> -> vector<2x40xf32>
      %c0_57 = arith.constant 0 : index
      %c0_58 = arith.constant 0 : index
      %86 = vector.load %arg18[%c0_57, %c0_58] : memref<1x40xf32, #tpu.memory_space<vmem>>, vector<1x40xf32>
      %87 = vector.broadcast %86 : vector<1x40xf32> to vector<2x40xf32>
      %88 = arith.addf %85, %87 : vector<2x40xf32>
      %c0_59 = arith.constant 0 : index
      %c0_60 = arith.constant 0 : index
      %89 = vector.load %arg19[%c0_59, %c0_60] : memref<2x40xf32, #tpu.memory_space<vmem>>, vector<2x40xf32>
      tpu.vector_store %arg19[%c0_59, %c0_60], %88 {strides = array<i32>} : memref<2x40xf32, #tpu.memory_space<vmem>>, vector<2x40xf32>,
    } else {
    }
    return
  }
  func.func @transform_0(%arg0: i32, %arg1: i32) -> (i32, i32, i32) {
    %c0_i32 = arith.constant 0 : i32
    %c0_i32_0 = arith.constant 0 : i32
    return %arg0, %arg1, %c0_i32 : i32, i32, i32
  }
  func.func @transform_1(%arg0: i32, %arg1: i32) -> (i32, i32) {
    %c0_i32 = arith.constant 0 : i32
    %c0_i32_0 = arith.constant 0 : i32
    %c0_i32_1 = arith.constant 0 : i32
    return %c0_i32, %c0_i32_0 : i32, i32
  }
  func.func @transform_2(%arg0: i32, %arg1: i32) -> (i32, i32) {
    %c0_i32 = arith.constant 0 : i32
    %c0_i32_0 = arith.constant 0 : i32
    %c0_i32_1 = arith.constant 0 : i32
    return %c0_i32, %c0_i32_0 : i32, i32
  }
  func.func @transform_3(%arg0: i32, %arg1: i32) -> (i32, i32) {
    %c0_i32 = arith.constant 0 : i32
    %c0_i32_0 = arith.constant 0 : i32
    %c0_i32_1 = arith.constant 0 : i32
    return %c0_i32, %c0_i32_0 : i32, i32
  }
  func.func @transform_4(%arg0: i32, %arg1: i32) -> (i32, i32) {
    %c0_i32 = arith.constant 0 : i32
    %c0_i32_0 = arith.constant 0 : i32
    %c0_i32_1 = arith.constant 0 : i32
    return %c0_i32, %c0_i32_0 : i32, i32
  }
  func.func @transform_5(%arg0: i32, %arg1: i32) -> (i32, i32) {
    %c0_i32 = arith.constant 0 : i32
    %c0_i32_0 = arith.constant 0 : i32
    %c0_i32_1 = arith.constant 0 : i32
    return %c0_i32, %c0_i32_0 : i32, i32
  }
  func.func @transform_6(%arg0: i32, %arg1: i32) -> (i32, i32) {
    %c0_i32 = arith.constant 0 : i32
    %c0_i32_0 = arith.constant 0 : i32
    %c0_i32_1 = arith.constant 0 : i32
    return %c0_i32, %c0_i32_0 : i32, i32
  }
  func.func @transform_7(%arg0: i32, %arg1: i32) -> (i32, i32) {
    %c0_i32 = arith.constant 0 : i32
    %c0_i32_0 = arith.constant 0 : i32
    %c0_i32_1 = arith.constant 0 : i32
    return %c0_i32, %c0_i32_0 : i32, i32
  }
  func.func @transform_8(%arg0: i32, %arg1: i32) -> (i32, i32) {
    %c0_i32 = arith.constant 0 : i32
    %c0_i32_0 = arith.constant 0 : i32
    %c0_i32_1 = arith.constant 0 : i32
    return %c0_i32, %c0_i32_0 : i32, i32
  }
  func.func @transform_9(%arg0: i32, %arg1: i32) -> (i32, i32) {
    %c0_i32 = arith.constant 0 : i32
    %c0_i32_0 = arith.constant 0 : i32
    %c0_i32_1 = arith.constant 0 : i32
    return %c0_i32, %c0_i32_0 : i32, i32
  }
  func.func @transform_10(%arg0: i32, %arg1: i32) -> (i32, i32) {
    %c0_i32 = arith.constant 0 : i32
    %c0_i32_0 = arith.constant 0 : i32
    %c0_i32_1 = arith.constant 0 : i32
    return %c0_i32, %c0_i32_0 : i32, i32
  }
  func.func @transform_11(%arg0: i32, %arg1: i32) -> (i32, i32) {
    %c0_i32 = arith.constant 0 : i32
    %c0_i32_0 = arith.constant 0 : i32
    %c0_i32_1 = arith.constant 0 : i32
    return %c0_i32, %c0_i32_0 : i32, i32
  }
  func.func @transform_12(%arg0: i32, %arg1: i32) -> (i32, i32) {
    %c0_i32 = arith.constant 0 : i32
    %c0_i32_0 = arith.constant 0 : i32
    %c0_i32_1 = arith.constant 0 : i32
    return %c0_i32, %c0_i32_0 : i32, i32
  }
  func.func @transform_13(%arg0: i32, %arg1: i32) -> (i32, i32) {
    %c0_i32 = arith.constant 0 : i32
    %c0_i32_0 = arith.constant 0 : i32
    %c0_i32_1 = arith.constant 0 : i32
    return %c0_i32, %c0_i32_0 : i32, i32
  }
  func.func @transform_14(%arg0: i32, %arg1: i32) -> (i32, i32) {
    %c0_i32 = arith.constant 0 : i32
    %c0_i32_0 = arith.constant 0 : i32
    %c0_i32_1 = arith.constant 0 : i32
    return %c0_i32, %c0_i32_0 : i32, i32
  }
  func.func @transform_15(%arg0: i32, %arg1: i32) -> (i32, i32) {
    %c0_i32 = arith.constant 0 : i32
    %c0_i32_0 = arith.constant 0 : i32
    %c0_i32_1 = arith.constant 0 : i32
    return %c0_i32, %c0_i32_0 : i32, i32
  }
  func.func @transform_16(%arg0: i32, %arg1: i32) -> (i32, i32) {
    %c0_i32 = arith.constant 0 : i32
    %c0_i32_0 = arith.constant 0 : i32
    %c0_i32_1 = arith.constant 0 : i32
    return %c0_i32, %c0_i32_0 : i32, i32
  }
  func.func @transform_17(%arg0: i32, %arg1: i32) -> (i32, i32) {
    %c0_i32 = arith.constant 0 : i32
    %c0_i32_0 = arith.constant 0 : i32
    return %arg0, %c0_i32 : i32, i32
  }
}

</mosaic_0001>

<bundles_post_ra>
// kernel: tpu_custom_call.1
= control target key start
LH: loop header
LB: loop body
LE: loop exit
PB: predicated region body
PF: predicated region fallthrough
CT: control target
= control target key end

     0   :  { %s7634_s0 = inlined_call_operand.vmem [shape: f32[2,72,3], index: 0, kind: input, shape index: {}]   ;;  %s7635_s1 = inlined_call_operand.vmem [shape: bf16[3,64], index: 1, kind: input, shape index: {}]   ;;  %s7636_s2 = inlined_call_operand.vmem [shape: f32[1,64], index: 2, kind: input, shape index: {}]   ;;  %s7637_s3 = inlined_call_operand.vmem [shape: bf16[64,64], index: 3, kind: input, shape index: {}]   ;;  %s7638_s4 = inlined_call_operand.vmem [shape: f32[1,64], index: 4, kind: input, shape index: {}]   ;;  %s7639_s5 = inlined_call_operand.vmem [shape: bf16[64,64], index: 5, kind: input, shape index: {}]   ;;  %s7640_s6 = inlined_call_operand.vmem [shape: f32[1,64], index: 6, kind: input, shape index: {}]   ;;  %s7641_s7 = inlined_call_operand.vmem [shape: bf16[64,128], index: 7, kind: input, shape index: {}]   ;;  %s7642_s8 = inlined_call_operand.vmem [shape: f32[1,128], index: 8, kind: input, shape index: {}]   ;;  %s7643_s9 = inlined_call_operand.hbm [shape: bf16[128,1024], index: 9, kind: input, shape index: {}]   ;;  %s7644_s10 = inlined_call_operand.vmem [shape: f32[1,1024], index: 10, kind: input, shape index: {}]   ;;  %s7645_s11 = inlined_call_operand.hbm [shape: bf16[1024,512], index: 11, kind: input, shape index: {}]   ;;  %s7646_s12 = inlined_call_operand.vmem [shape: f32[1,512], index: 12, kind: input, shape index: {}]   ;;  %s7647_s13 = inlined_call_operand.hbm [shape: bf16[512,256], index: 13, kind: input, shape index: {}]   ;;  %s7648_s14 = inlined_call_operand.vmem [shape: f32[1,256], index: 14, kind: input, shape index: {}]   ;;  %s7649_s15 = inlined_call_operand.vmem [shape: bf16[256,40], index: 15, kind: input, shape index: {}]   ;;  %s7650_s16 = inlined_call_operand.vmem [shape: f32[1,40], index: 16, kind: input, shape index: {}]   ;;  %s7651_s17 = inlined_call_operand.hbm [shape: f32[2,40], index: 17, kind: output, shape index: {}]  }
   0x1   :  { %7659 = sst [smem:[#allocation16_spill]] %s7634_s0 }
   0x2   :  { %7660 = sst [smem:[#allocation17_spill]] %s7635_s1 }
   0x3   :  { %7661 = sst [smem:[#allocation18_spill]] %s7638_s4 }
   0x4   :  { %7662 = sst [smem:[#allocation19_spill]] %s7640_s6 }
   0x5   :  { %7663 = sst [smem:[#allocation20_spill]] %s7642_s8 }
   0x6   :  { %7664 = sst [smem:[#allocation21_spill]] %s7644_s10 }
   0x7   :  { %7665 = sst [smem:[#allocation22_spill]] %s7646_s12 }
   0x8   :  { %7666 = sst [smem:[#allocation23_spill]] %s7648_s14 }
   0x9   :  { %7667 = sst [smem:[#allocation24_spill]] %s7649_s15 }
   0xa   :  { %7668 = sst [smem:[#allocation25_spill]] %s7650_s16 }
   0xb   :  { %7669 = sst [smem:[#allocation26_spill]] %s7651_s17 }
   0xc   :  { %22 = vsyncpa [#allocation5], 0 }
   0xd   :  { %23 = vsyncpa [#allocation8], 0 }
   0xe   :  { %24 = vsyncpa [#allocation6], 0  ;;  %s6747_s24 = smov 0   ;;  %s6749_s25 = smov 0  }
   0xf   :  { %s6751_s26 = smov 0   ;;  %s6753_s27 = smov 0  }
  0x10   :  { %s6755_s28 = smov 0  }
  0x11 LB: > { %s7654_s29 = sadd.s32 4294967295, %s6609_s28   ;;  %s39_s0 = sadd.s32 1, %s6605_s27  ;;  %s6609_s28 = sphi %s6755_s28, %s30_s28   ;;  %s6605_s27 = sphi %s6753_s27, %s7709_s27   ;;  %s6601_s26 = sphi %s6751_s26, %s7708_s26   ;;  %s6597_s25 = sphi %s6749_s25, %s7707_s25   ;;  %s6593_s24 = sphi %s6747_s24, %s7706_s24  }
  0x12   : > { %p40_p0 = scmp.ge.s32.totalorder %s39_s0, 3  ;;  %s51_s30 = sadd.s32 1, %s6597_s25 }
  0x13   : > { %p58_p1 = scmp.ne.s32.totalorder %s6597_s25, %s6593_s24  ;;  %p59_p2 = scmp.eq.s32.totalorder %s6609_s28, 0 }
  0x14   : > { %s7711_s0 = smov (%p40_p0, %s39_s0), 0  ;;  %p5146_p4 = scmp.ge.s32.totalorder %s6609_s28, 1 }
  0x15   : > { %7670 = sst [smem:[#allocation14_spill]] %s7711_s0  ;;  %p6780_p3 = por %p59_p2, %p58_p1 }
  0x16   : > { %s47_s19 = ssub.s32 %s6605_s27, %s7711_s0  ;;  %p437_p5 = scmp.lt.s32.totalorder %s6609_s28, 4 }
  0x17   : > { %s7671_s18 = scalar_select %p6780_p3, 1, 0 }
  0x18   : > { %p49_p6 = scmp.eq.s32.totalorder %s47_s19, 0  ;;  %p6788_p7 = pnand %p5146_p4, %p437_p5 }
  0x19   : > { %p6794_p8 = scmp.eq.s32.totalorder %s7654_s29, 0  ;;  %s6643_s22 = smov [#allocation7]  }
  0x1a   : > { %s7672_s1 = scalar_select %p6788_p7, 1, 0 }
  0x1b   : > { %s7673_s20 = scalar_select %p6794_p8, 1, 0 }
  0x1c   : > { %s6799_s21 = scalar_select %p49_p6, %s6597_s25, %s51_s30  }
  0x1d   : > { %p5771_p9 = pneg %p6788_p7  ;;  %s489_s23 = sshll.u32 %s6643_s22, 4  ;;  %s490_s23 = int_to_ptr.vmem [resolvable:$true] %s489_s23 }
  0x1e   : > { %7674 = sst [smem:[#allocation15_spill]] %s6799_s21  ;;  %s6417_s29 = scalar_lea.hbm %s7645_s11, 32768 }
  0x1f   : > { %p6805_p10 = pnand %p6794_p8, %p5771_p9  ;;  %p6418_p11 = scmp.ne.s32.totalorder %s7645_s11, %s6417_s29 }
  0x20   : > { %p6424_p1 = scmp.lt.u32.totalorder %s6417_s29, %s7645_s11 }
  0x21   : > { %p6817_p12 = pneg %p6805_p10 }
  0x23   : > { %p6420_p13 = pnand %p6817_p12, %p6418_p11 }
  0x25   : > { %p6421_p0 = pneg %p6420_p13 }
  0x27   : > { %p6426_p2 = pnand %p6424_p1, %p6421_p0 }
  0x29   : > { %6429 = shalt.err (!%p6426_p2)
}
  0x2a   : > { %s6430_s17 = scalar_lea.vmem %s490_s23, 32768  ;;  %p6438_p9 = scmp.lt.s32.totalorder %s490_s23, %s490_s23 }
  0x2b   : > { %p6431_p4 = scmp.ne.s32.totalorder %s490_s23, %s6430_s17  ;;  %p6439_p8 = scmp.lt.s32.totalorder %s6430_s17, %s6430_s17 }
  0x2d   : > { %p6433_p5 = pnand %p6431_p4, %p6817_p12  ;;  %p6440_p7 = por %p6439_p8, %p6438_p9 }
  0x2f   : > { %p6434_p6 = pneg %p6433_p5 }
  0x31   : > { %p6441_p3 = pnand %p6440_p7, %p6434_p6 }
  0x33   : > { %6444 = shalt.err (!%p6441_p3)
}
  0x34   : > { %s6644_s14 = smov 256   ;;  %s6645_s16 = smov 16  }
  0x35   : > { %5777 = dma.hbm_to_vmem [thread:$0]  (!%p6805_p10), %s7645_s11, 32768, %s490_s23, [#allocation8], %s6644_s14, %s6644_s14, %s6645_s16  }
  0x36   : > { %s6646_s21 = smov [#allocation4]   ;;  %s6445_s10 = scalar_lea.hbm %s7643_s9, 8192 }
  0x37   : > { %s473_s22 = sshll.u32 %s6646_s21, 4  ;;  %p6446_p3 = scmp.ne.s32.totalorder %s7643_s9, %s6445_s10  ;;  %s474_s22 = int_to_ptr.vmem [resolvable:$true] %s473_s22 }
  0x38   : > { %p6452_p11 = scmp.lt.u32.totalorder %s6445_s10, %s7643_s9 }
  0x39   : > { %p6448_p7 = pnand %p6446_p3, %p6817_p12 }
  0x3b   : > { %p6449_p8 = pneg %p6448_p7 }
  0x3d   : > { %p6454_p13 = pnand %p6452_p11, %p6449_p8 }
  0x3f   : > { %6457 = shalt.err (!%p6454_p13)
}
  0x40   : > { %s6458_s23 = scalar_lea.vmem %s474_s22, 8192  ;;  %p6466_p4 = scmp.lt.s32.totalorder %s474_s22, %s474_s22 }
  0x41   : > { %p6459_p0 = scmp.ne.s32.totalorder %s474_s22, %s6458_s23  ;;  %p6467_p5 = scmp.lt.s32.totalorder %s6458_s23, %s6458_s23 }
  0x43   : > { %p6461_p1 = pnand %p6459_p0, %p6817_p12  ;;  %p6468_p6 = por %p6467_p5, %p6466_p4 }
  0x45   : > { %p6462_p2 = pneg %p6461_p1 }
  0x47   : > { %p6469_p9 = pnand %p6468_p6, %p6462_p2 }
  0x49   : > { %6472 = shalt.err (!%p6469_p9)
}
  0x4a   : > { %s6647_s8 = smov 512   ;;  %s6648_s12 = smov 32  }
  0x4b   : > { %5774 = dma.hbm_to_vmem [thread:$0]  (!%p6805_p10), %s7643_s9, 8192, %s474_s22, [#allocation5], %s6647_s8, %s6647_s8, %s6648_s12  }
  0x4c   : > { %s6649_s10 = smov [#allocation9]   ;;  %s6473_s0 = scalar_lea.hbm %s7647_s13, 8192 }
  0x4d   : > { %s505_s15 = sshll.u32 %s6649_s10, 4  ;;  %p6474_p3 = scmp.ne.s32.totalorder %s7647_s13, %s6473_s0  ;;  %s506_s15 = int_to_ptr.vmem [resolvable:$true] %s505_s15 }
  0x4e   : > { %p6480_p11 = scmp.lt.u32.totalorder %s6473_s0, %s7647_s13 }
  0x4f   : > { %p6476_p7 = pnand %p6474_p3, %p6817_p12 }
  0x51   : > { %p6477_p8 = pneg %p6476_p7 }
  0x53   : > { %p6482_p13 = pnand %p6480_p11, %p6477_p8 }
  0x55   : > { %6485 = shalt.err (!%p6482_p13)
}
  0x56   : > { %s6486_s22 = scalar_lea.vmem %s506_s15, 8192  ;;  %p6494_p4 = scmp.lt.s32.totalorder %s506_s15, %s506_s15 }
  0x57   : > { %p6487_p0 = scmp.ne.s32.totalorder %s506_s15, %s6486_s22  ;;  %p6495_p5 = scmp.lt.s32.totalorder %s6486_s22, %s6486_s22 }
  0x59   : > { %p6489_p1 = pnand %p6487_p0, %p6817_p12  ;;  %p6496_p6 = por %p6495_p5, %p6494_p4 }
  0x5b   : > { %p6490_p2 = pneg %p6489_p1 }
  0x5d   : > { %p6497_p9 = pnand %p6496_p6, %p6490_p2 }
  0x5f   : > { %6500 = shalt.err (!%p6497_p9)
}
  0x60   : > { %s6650_s8 = smov 128   ;;  %s6651_s12 = smov 8  }
  0x61   : > { %5780 = dma.hbm_to_vmem [thread:$0]  (!%p6805_p10), %s7647_s13, 8192, %s506_s15, [#allocation8], %s6650_s8, %s6650_s8, %s6651_s12  }
  0x62   : > { %p5150_p3 = scmp.ge.s32.totalorder %s6609_s28, 3 }
  0x63   : > { %p7677_p7 = scmp.ne.s32.totalorder (!%p5150_p3), %s7671_s18, 0 }
  0x64   : > { %524 = sbr.rel (%p5150_p3) target bundleno = 163 (0xa3), region = 80 }
  0x6b   : > { %527 = sbr.rel (!%p7677_p7) target bundleno = 163 (0xa3), region = 84  ;;  %s529_s30 = sand.u32 (%p7677_p7), 1, %s6597_s25  }
  0x6c   : > { %s5152_s10 = sshll.u32 (%p7677_p7), %s6605_s27, 2  ;;  %s5151_s14 = sshll.u32 (%p7677_p7), %s529_s30, 6 }
  0x6d   : > { %s534_s16 = ssub.s32 (%p7677_p7), 9, %s5152_s10  ;;  %s5611_s0 = sshll.u32 (%p7677_p7), %s6605_s27, 5 }
  0x6e   : > { %p535_p12 = scmp.lt.s32.totalorder (%p7677_p7), %s534_s16, 4  ;;  %s7678_s15 = sld [smem:[#allocation16_spill]] (%p7677_p7) }
  0x6f   : > { %s6883_s18 = scalar_lea.vmem (%p7677_p7), [#allocation3], %s5151_s14  }
  0x72   : > { %s7713_s16 = smov (!%p535_p12, %s534_s16), 4 }
  0x73   : > { %s5153_s17 = sshll.u32 %s7713_s16, 8 }
  0x74   : > { %s6880_s21 = scalar_lea.vmem %s7678_s15, %s5611_s0   ;;  %p5156_p10 = scmp.eq.s32.totalorder %s5153_s17, 0 }
  0x75   : > { %s6886_s23 = sshrl.u32 (!%p5156_p10), %s7713_s16, 2 }
  0x76   : > { %545 = sbr.rel (%p5156_p10) target bundleno = 163 (0xa3), region = 88  ;;  %p5157_p8 = scmp.le.s32.totalorder (!%p5156_p10), %s6886_s23, 0 }
  0x7d   : > { %5069 = sbr.rel (%p5157_p8) target bundleno = 142 (0x8e), region = 196  ;;  %s7679_s22 = smov (!%p5157_p8), %s6883_s18 }
  0x7e   : > { %s7680_s8 = smov (!%p5157_p8), %s6880_s21  ;;  %s6895_s12 = smov (!%p5157_p8), 0  }
  0x7f   : > { %s6897_s4 = smov (!%p5157_p8), 0  }
  0x84 LB: >> { %v623_v0 = vld [vmem:[%s6617_s8] sm:$0xff]  ;;  %v625_v1 = vld [vmem:[%s6617_s8 + $0x8] sm:$0xff]  ;;  %v627_v2 = vld [vmem:[%s6617_s8 + $0x10] sm:$0xff]  ;;  %s639_s6 = sadd.s32 1, %s6621_s12  ;;  %s617_s4 = sadd.s32 1, %s6625_s4   ;;  %s6625_s4 = sphi %s6897_s4, %s617_s4   ;;  %s6621_s12 = sphi %s6895_s12, %s7681_s12   ;;  %s6617_s8 = sphi %s7680_s8, %s644_s8   ;;  %s6613_s22 = sphi %s7679_s22, %s645_s22  }
  0x85   : >> { %624 = vst [vmem:[%s6613_s22] sm:$0xff] %v623_v0  ;;  %626 = vst [vmem:[%s6613_s22 + $0x8] sm:$0xff] %v625_v1  ;;  %v629_v3 = vld [vmem:[%s6617_s8 + $0x18] sm:$0xff]  ;;  %v631_v4 = vld [vmem:[%s6617_s8 + $0x48] sm:$0xff]  ;;  %p640_p11 = scmp.ge.s32.totalorder %s639_s6, %s6886_s23  ;;  %p616_p13 = scmp.ge.s32.totalorder %s617_s4, %s6886_s23 }
  0x86   : >> { %628 = vst [vmem:[%s6613_s22 + $0x10] sm:$0xff] %v627_v2  ;;  %v633_v5 = vld [vmem:[%s6617_s8 + $0x50] sm:$0xff]  ;;  %630 = vst [vmem:[%s6613_s22 + $0x18] sm:$0xff] %v629_v3  ;;  %v635_v6 = vld [vmem:[%s6617_s8 + $0x58] sm:$0xff] }
  0x87   : >> { %632 = vst [vmem:[%s6613_s22 + $0x20] sm:$0xff] %v631_v4  ;;  %634 = vst [vmem:[%s6613_s22 + $0x28] sm:$0xff] %v633_v5  ;;  %v637_v7 = vld [vmem:[%s6617_s8 + $0x60] sm:$0xff]  ;;  %s7715_s6 = smov (%p640_p11, %s639_s6), 0  ;;  %619 = sbr.rel (!%p616_p13) target bundleno = 132 (0x84), region = 202 }
  0x88   : >> { %636 = vst [vmem:[%s6613_s22 + $0x30] sm:$0xff] %v635_v6  ;;  %638 = vst [vmem:[%s6613_s22 + $0x38] sm:$0xff] %v637_v7  ;;  %s5158_s30 = sshll.u32 %s7715_s6, 5  ;;  %s7681_s12 = smov %s7715_s6 }
  0x89   : >> { %s644_s8 = scalar_lea.vmem %s6880_s21, %s5158_s30   ;;  %s645_s22 = scalar_lea.vmem %s6883_s18, %s5158_s30 [#allocation3]  }
  0x8e PF: > { %s6916_s10 = sand.u32 3, %s7713_s16   ;;  %s5612_s14 = sshll.u32 %s6886_s23, 5 }
  0x8f   : > { %s6920_s0 = scalar_lea.vmem %s6880_s21, %s5612_s14   ;;  %s652_s19 = scalar_lea.vmem %s6883_s18, %s5612_s14 [#allocation3]  }
  0x90   : > { %p5163_p0 = scmp.le.s32.totalorder %s6916_s10, 0 }
  0x91   : > { %s6627_s29 = smov (!%p5163_p0), %s652_s19   ;;  %s6631_s15 = smov (!%p5163_p0), %s6920_s0  }
  0x92   : > { %5083 = sbr.rel (%p5163_p0) target bundleno = 163 (0xa3), region = 207  ;;  %s6635_s17 = smov (!%p5163_p0), 0  }
  0x93   : > { %s6639_s4 = smov (!%p5163_p0), 0  }
  0x99 LB: >> { %v662_v8 = vld [vmem:[%s6633_s15] sm:$0xff]  ;;  %v664_v9 = vld [vmem:[%s6633_s15 + $0x48] sm:$0xff]  ;;  %s666_s16 = sadd.s32 1, %s6637_s17  ;;  %s656_s4 = sadd.s32 1, %s6641_s4   ;;  %s6641_s4 = sphi %s6639_s4, %s656_s4   ;;  %s6637_s17 = sphi %s6635_s17, %s6636_s17   ;;  %s6633_s15 = sphi %s6631_s15, %s671_s15   ;;  %s6629_s29 = sphi %s6627_s29, %s672_s29  }
  0x9a   : >> { %663 = vst [vmem:[%s6629_s29] sm:$0xff] %v662_v8  ;;  %665 = vst [vmem:[%s6629_s29 + $0x20] sm:$0xff] %v664_v9  ;;  %p667_p1 = scmp.ge.s32.totalorder %s666_s16, %s6916_s10  ;;  %p655_p2 = scmp.ge.s32.totalorder %s656_s4, %s6916_s10 }
  0x9c   : >> { %s7717_s16 = smov (%p667_p1, %s666_s16), 0  ;;  %658 = sbr.rel (!%p655_p2) target bundleno = 153 (0x99), region = 213 }
  0x9d   : >> { %s5164_s21 = sshll.u32 %s7717_s16, 3  ;;  %s6636_s17 = smov %s7717_s16  }
  0x9e   : >> { %s671_s15 = scalar_lea.vmem %s6920_s0, %s5164_s21   ;;  %s672_s29 = scalar_lea.vmem %s652_s19, %s5164_s21 [#allocation3]  }
  0xa3 PF: > { %p7682_p4 = scmp.ne.s32.totalorder %s7672_s1, 0 }
  0xa4   : > { %s684_s18 = sand.u32 (!%p7682_p4), 1, %s6593_s24   ;;  %p7683_p5 = scmp.ne.s32.totalorder (!%p7682_p4), %s7673_s20, 0 }
  0xa5   : > { %681 = sbr.rel (%p7682_p4) target bundleno = 2392 (0x958), region = 136  ;;  %s5167_s23 = sshll.u32 (!%p7682_p4), %s684_s18, 6 }
  0xa6   : > { %s6931_s22 = scalar_lea.vmem (!%p7682_p4), [#allocation3], %s5167_s23 }
  0xac   : > { %6580 = dma.done.wait (%p7683_p5), [#allocation5], 8192  }
  0xad   : > { %6582 = vsyncadd (%p7683_p5), [#allocation5], 4294959104 }
  0xae   : > { %6584 = dma.done.wait (%p7683_p5), [#allocation8], 40960  }
  0xaf   : > { %6586 = vsyncadd (%p7683_p5), [#allocation8], 4294926336  ;;  %p5171_p6 = scmp.ne.s32.totalorder %s6601_s26, 0 }
  0xb0   : > { %v6652_v10 = vmov (!%p5171_p6), -inf  }
  0xb1   : > { %752 = sbr.rel (%p5171_p6) target bundleno = 184 (0xb8), region = 156  ;;  %753 = vst [vmem:[#allocation2] sm:$0xff] (!%p5171_p6), %v6652_v10  ;;  %754 = vst [vmem:[#allocation2 + $0x8] sm:$0xff] (!%p5171_p6), %v6652_v10 }
  0xb8 PF: > { %s7684_s8 = sld [smem:[#allocation17_spill]]  ;;  %vm816_vm0 = vcmask 1040384   ;;  %vm817_vm1 = vcmask 1041408   ;;  %s5172_s20 = sshll.u32 %s6601_s26, 5  ;;  %v757_v12 = vlaneseq  ;;  %v6653_v13 = vmov 65535   ;;  %v767_v15 = vld [vmem:[%s6931_s22] sm:$0xff] }
  0xb9   : > { %v818_v14 = vsel %vm816_vm0, 4294967295, %v6653_v13  ;;  %s756_s12 = ssub.s32 72, %s5172_s20  ;;  %v768_v19 = vld [vmem:[%s6931_s22 + $0x8] sm:$0xff]  ;;  %v769_v20 = vld [vmem:[%s6931_s22 + $0x10] sm:$0xff]  ;;  %v771_v21 = vld [vmem:[%s6931_s22 + $0x20] sm:$0xff]  ;;  %vm803_vm4 = vcmask 23552  }
  0xba   : > { %v819_v16 = vsel %vm817_vm1, %v818_v14, 0  ;;  %v6947_v17 = vshrl.u32 %v757_v12, 7  ;;  %v762_v18 = vstv %s756_s12  ;;  %v770_v23 = vld [vmem:[%s6931_s22 + $0x18] sm:$0xff]  ;;  %v772_v24 = vld [vmem:[%s6931_s22 + $0x28] sm:$0xff]  ;;  %v773_v29 = vld [vmem:[%s6931_s22 + $0x30] sm:$0xff]  ;;  %vm939_vm7 = vcmask 523264  }
  0xbb   : > { %v774_v30 = vld [vmem:[%s6931_s22 + $0x38] sm:$0xff]  ;;  %v5907_v31 = vld [vmem:[%s7637_s3] sm:$0xff]   ;;  %v5909_v48 = vld [vmem:[%s7637_s3 + $0x10] sm:$0xff]   ;;  %s7693_s0 = sld [smem:[#allocation18_spill]]  ;;  %s7694_s21 = sld [smem:[#allocation19_spill]]  ;;  %vm2366_vm8 = vcmask 1041409  }
  0xbc   : > { %v759_v25 = vadd.s32 8, %v6947_v17  ;;  %vm6956_vm2 = vcmp.lt.s32.totalorder %v6947_v17, %v762_v18  ;;  %v760_v27 = vadd.s32 16, %v6947_v17  ;;  %v761_v28 = vadd.s32 24, %v6947_v17  ;;  %5675 = vmatprep.subr.bf16.mxu1 %v5907_v31  ;;  %v5908_v37 = vld [vmem:[%s7637_s3 + $0x8] sm:$0xff]   ;;  %v5910_v49 = vld [vmem:[%s7637_s3 + $0x18] sm:$0xff]   ;;  %v5911_v50 = vld [vmem:[%s7639_s5] sm:$0xff]  }
  0xbd   : > { %v783_v32 = vsel %vm6956_vm2, %v767_v15, 0.0  ;;  %v787_v33 = vsel %vm6956_vm2, %v771_v21, 0.0  ;;  %5676 = vmatpush3.bf16.msra.mxu1 %v5907_v31  ;;  %v5912_v51 = vld [vmem:[%s7639_s5 + $0x8] sm:$0xff]   ;;  %v5173_v52 = vld [vmem:[%s7636_s2] ss:$0 sm:$0xff]  ;;  %s7695_s22 = sld [smem:[#allocation20_spill]] }
  0xbe   : > { %v795_v11 = vld [vmem:[%s7684_s8] sm:$0x3]  ;;  %vm6971_vm3 = vcmp.lt.s32.totalorder %v759_v25, %v762_v18  ;;  %vm6975_vm5 = vcmp.lt.s32.totalorder %v760_v27, %v762_v18  ;;  %vm6979_vm6 = vcmp.lt.s32.totalorder %v761_v28, %v762_v18  ;;  %5677 = vmatprep.subr.bf16.mxu1 %v5908_v37  ;;  %v5913_v18 = vld [vmem:[%s7639_s5 + $0x10] sm:$0xff]   ;;  %v5916_v21 = vld [vmem:[%s7641_s7 + $0x8] sm:$0xff]   ;;  %s7696_s8 = sld [smem:[#allocation21_spill]]  ;;  %vm2368_vm9 = vcmask 1043459  }
  0xbf   : > { %v821_v22 = vand.u32 %v819_v16, %v795_v11  ;;  %v784_v38 = vsel %vm6971_vm3, %v768_v19, 0.0  ;;  %v785_v39 = vsel %vm6975_vm5, %v769_v20, 0.0  ;;  %v786_v40 = vsel %vm6979_vm6, %v770_v23, 0.0  ;;  %v5914_v19 = vld [vmem:[%s7639_s5 + $0x18] sm:$0xff]   ;;  %v5915_v20 = vld [vmem:[%s7641_s7] sm:$0xff]   ;;  %p5269_p9 = scmp.ne.s32.totalorder %s6601_s26, 2 }
  0xc0   : > { %v788_v41 = vsel %vm6971_vm3, %v772_v24, 0.0  ;;  %v791_v42 = vpack.c.bf16 %v784_v38, %v783_v32  ;;  %v792_v43 = vpack.c.bf16 %v786_v40, %v785_v39  ;;  %v789_v45 = vsel %vm6975_vm5, %v773_v29, 0.0  ;;  %s7697_s12 = sld [smem:[#allocation22_spill]] (!%p5269_p9)  ;;  %s7698_s10 = sld [smem:[#allocation24_spill]] (!%p5269_p9) }
  0xc1   : > { %5665 = vmatprep.subr.bf16.mxu0 %v821_v22  ;;  %v793_v44 = vpack.c.bf16 %v788_v41, %v787_v33  ;;  %v790_v46 = vsel %vm6979_vm6, %v774_v30, 0.0  ;;  %5678 = vmatpush3.bf16.msra.mxu1 %v5908_v37  ;;  %vm2370_vm10 = vcmask 1045509   ;;  %vm2372_vm11 = vcmask 1047559   ;;  %s7699_s24 = sld [smem:[#allocation23_spill]] (!%p5269_p9)  ;;  %s7700_s26 = sld [smem:[#allocation25_spill]] (!%p5269_p9) }
  0xc2   : > { %5666 = vmatpush3.bf16.msra.mxu0 %v821_v22  ;;  %5667 = vmatprep.mubr.msk.bf16.mxu0 %vm803_vm4, %v791_v42  ;;  %v794_v47 = vpack.c.bf16 %v790_v46, %v789_v45  ;;  %v5178_v22 = vld [vmem:[%s7693_s0] ss:$0 sm:$0xff]  ;;  %vm4996_vm12 = vcmask (!%p5269_p9), 320512  }
  0xc3   : > { %5679 = vmatprep.subr.bf16.mxu1 %v5909_v48  ;;  %5691 = vmatprep.subr.bf16.mxu0 %v5911_v50 }
  0xc5   : > { %5668 = vmatmul.mubr.msk.bf16.vlgmr.msra.gmra.mrb[0].mxu0 %vm803_vm4, %v792_v43  ;;  %5680 = vmatpush3.bf16.msra.mxu1 %v5909_v48 }
  0xc6   : > { %5671 = vmatprep.mubr.msk.bf16.mxu0 %vm803_vm4, %v793_v44  ;;  %5681 = vmatprep.subr.bf16.mxu1 %v5910_v49 }
  0xc7   : > { %5692 = vmatpush3.bf16.msra.mxu0 %v5911_v50 }
  0xc8   : > { %5693 = vmatprep.subr.bf16.mxu0 %v5912_v51 }
  0xc9   : > { %5682 = vmatpush3.bf16.msra.mxu1 %v5910_v49 }
  0xca   : > { %5707 = vmatprep.subr.bf16.mxu1 %v5915_v20 }
  0xcb   : > { %5694 = vmatpush3.bf16.msra.mxu0 %v5912_v51 }
  0xcc   : > { %5695 = vmatprep.subr.bf16.mxu0 %v5913_v18 }
  0xcd   : > { %5672 = vmatmul.mubr.msk.bf16.gmra.mrb[4].mxu0 %vm803_vm4, %v794_v47 }
  0xcf   : > { %5696 = vmatpush3.bf16.msra.mxu0 %v5913_v18  ;;  %v1329_v18 = vld [vmem:[#allocation4 + $0x160] sm:$0xff] }
  0xd0   : > { %5697 = vmatprep.subr.bf16.mxu0 %v5914_v19 }
  0xd3   : > { %5698 = vmatpush3.bf16.msra.mxu0 %v5914_v19 }
 0x198   : > { %v5669_v53 = vpop.f32.mrb[0].mxu0 }
 0x199   : > { %v866_v54 = vadd.f32 %v5669_v53, %v5173_v52  ;;  %v857_v55 = vpop.f32.mrb[1].mxu0 }
 0x19a   : > { %v858_v56 = vadd.f32 %v5173_v52, %v857_v55  ;;  %v5670_v57 = vpop.f32.mrb[2].mxu0  ;;  %v5917_v55 = vld [vmem:[%s7641_s7 + $0x10] sm:$0xff]  }
 0x19b   : > { %v869_v58 = vadd.f32 %v5670_v57, %v5173_v52  ;;  %v860_v59 = vpop.f32.mrb[3].mxu0  ;;  %v890_v61 = vmax.f32 %v866_v54, 0.0  ;;  %v1285_v57 = vld [vmem:[#allocation4] sm:$0xff] }
 0x19c   : > { %v861_v60 = vadd.f32 %v5173_v52, %v860_v59  ;;  %v888_v63 = vmax.f32 %v858_v56, 0.0  ;;  %v5918_v56 = vld [vmem:[%s7641_s7 + $0x18] sm:$0xff]  }
 0x19d   : > { %v891_v62 = vmax.f32 %v869_v58, 0.0  ;;  %v1289_v58 = vld [vmem:[#allocation4 + $0x20] sm:$0xff]  ;;  %v7046_v59 = vld [vmem:[#allocation4 + $0x8] sm:$0xff] }
 0x19e   : > { %v889_v0 = vmax.f32 %v861_v60, 0.0  ;;  %v5205_v60 = vcombine.low %v1285_v57, %v1289_v58 }
 0x19f   : > { %v897_v1 = vpack.c.bf16 %v891_v62, %v890_v61  ;;  %v5206_v61 = vcombine.high %v1285_v57, %v1289_v58  ;;  %v7048_v62 = vld [vmem:[#allocation4 + $0x28] sm:$0xff] }
 0x1a0   : > { %v5673_v2 = vpop.f32.mrb[4].mxu0  ;;  %v896_v3 = vpack.c.bf16 %v889_v0, %v888_v63  ;;  %v1293_v63 = vld [vmem:[#allocation4 + $0x40] sm:$0xff] }
 0x1a1   : > { %v882_v4 = vadd.f32 %v5673_v2, %v5173_v52  ;;  %v873_v5 = vpop.f32.mrb[5].mxu0  ;;  %v1297_v0 = vld [vmem:[#allocation4 + $0x60] sm:$0xff]  ;;  %v5208_v2 = vcombine.high %v7046_v59, %v7048_v62  ;;  %1711 = vmatprep.subr.bf16.mxu0 %v5206_v61  ;;  %v1310_v61 = vld [vmem:[#allocation4 + $0xc8] sm:$0xff] }
 0x1a2   : > { %v874_v6 = vadd.f32 %v5173_v52, %v873_v5  ;;  %v5674_v7 = vpop.f32.mrb[6].mxu0  ;;  %5683 = vmatprep.mubr.msk.bf16.mxu1 %vm939_vm7, %v896_v3  ;;  %v5214_v3 = vcombine.high %v1293_v63, %v1297_v0  ;;  %v1305_v5 = vld [vmem:[#allocation4 + $0xa0] sm:$0xff] }
 0x1a3   : > { %v894_v8 = vmax.f32 %v882_v4, 0.0  ;;  %v885_v9 = vadd.f32 %v5674_v7, %v5173_v52  ;;  %v876_v10 = vpop.f32.mrb[7].mxu0  ;;  %5684 = vmatmul.mubr.msk.bf16.vlgmr.msra.gmra.mrb[0].mxu1 %vm939_vm7, %v897_v1  ;;  %v5207_v1 = vcombine.low %v7046_v59, %v7048_v62  ;;  %v1301_v4 = vld [vmem:[#allocation4 + $0x80] sm:$0xff]  ;;  %v1322_v59 = vld [vmem:[#allocation4 + $0x128] sm:$0xff] }
 0x1a4   : > { %v892_v11 = vmax.f32 %v874_v6, 0.0  ;;  %v877_v12 = vadd.f32 %v5173_v52, %v876_v10  ;;  %5708 = vmatpush3.bf16.msra.mxu1 %v5915_v20  ;;  %v5213_v6 = vcombine.low %v1293_v63, %v1297_v0  ;;  %v5222_v7 = vcombine.high %v1301_v4, %v1305_v5  ;;  %v1314_v63 = vld [vmem:[#allocation4 + $0xe8] sm:$0xff] }
 0x1a5   : > { %v895_v13 = vmax.f32 %v885_v9, 0.0  ;;  %5709 = vmatprep.subr.bf16.mxu1 %v5916_v21  ;;  %v1313_v9 = vld [vmem:[#allocation4 + $0xe0] sm:$0xff]  ;;  %v5221_v10 = vcombine.low %v1301_v4, %v1305_v5  ;;  %v5232_v4 = vcombine.high %v1310_v61, %v1314_v63  ;;  %v1318_v5 = vld [vmem:[#allocation4 + $0x108] sm:$0xff]  ;;  %v5231_v62 = vcombine.low %v1310_v61, %v1314_v63 }
 0x1a6   : > { %v893_v14 = vmax.f32 %v877_v12, 0.0  ;;  %v1317_v12 = vld [vmem:[#allocation4 + $0x100] sm:$0xff] }
 0x1a7   : > { %v899_v15 = vpack.c.bf16 %v895_v13, %v894_v8  ;;  %v1309_v8 = vld [vmem:[#allocation4 + $0xc0] sm:$0xff] }
 0x1a8   : > { %v898_v16 = vpack.c.bf16 %v893_v14, %v892_v11  ;;  %5710 = vmatpush3.bf16.msra.mxu1 %v5916_v21  ;;  %v5230_v11 = vcombine.high %v1309_v8, %v1313_v9  ;;  %v1321_v13 = vld [vmem:[#allocation4 + $0x120] sm:$0xff]  ;;  %v5229_v14 = vcombine.low %v1309_v8, %v1313_v9  ;;  %v5239_v8 = vcombine.low %v1318_v5, %v1322_v59 }
 0x1a9   : > { %5711 = vmatprep.subr.bf16.mxu1 %v5917_v55  ;;  %v5237_v19 = vcombine.low %v1317_v12, %v1321_v13 }
 0x1aa   : > { %5687 = vmatprep.mubr.msk.bf16.mxu1 %vm939_vm7, %v898_v16  ;;  %v1325_v16 = vld [vmem:[#allocation4 + $0x140] sm:$0xff] }
 0x1ab   : > { %5688 = vmatmul.mubr.msk.bf16.gmra.mrb[4].mxu1 %vm939_vm7, %v899_v15  ;;  %v5238_v15 = vcombine.high %v1317_v12, %v1321_v13  ;;  %v5246_v20 = vcombine.high %v1325_v16, %v1329_v18  ;;  %v5245_v21 = vcombine.low %v1325_v16, %v1329_v18  ;;  %v1337_v12 = vld [vmem:[#allocation4 + $0x1a0] sm:$0xff]  ;;  %v1334_v13 = vld [vmem:[#allocation4 + $0x188] sm:$0xff] }
 0x1ac   : > { %5712 = vmatpush3.bf16.msra.mxu1 %v5917_v55 }
 0x1ad   : > { %5713 = vmatprep.subr.bf16.mxu1 %v5918_v56 }
 0x1b0   : > { %5714 = vmatpush3.bf16.msra.mxu1 %v5918_v56 }
 0x1b1   : > { %1784 = vmatprep.subr.bf16.mxu1 %v5208_v2 }
 0x276   : > { %v5685_v23 = vpop.f32.mrb[0].mxu1 }
 0x277   : > { %v995_v24 = vadd.f32 %v5685_v23, %v5178_v22  ;;  %v986_v25 = vpop.f32.mrb[1].mxu1 }
 0x278   : > { %v987_v27 = vadd.f32 %v5178_v22, %v986_v25  ;;  %v5686_v28 = vpop.f32.mrb[2].mxu1 }
 0x279   : > { %v998_v29 = vadd.f32 %v5686_v28, %v5178_v22  ;;  %v989_v30 = vpop.f32.mrb[3].mxu1  ;;  %v1019_v32 = vmax.f32 %v995_v24, 0.0 }
 0x27a   : > { %v990_v31 = vadd.f32 %v5178_v22, %v989_v30  ;;  %v1017_v37 = vmax.f32 %v987_v27, 0.0 }
 0x27b   : > { %v1020_v33 = vmax.f32 %v998_v29, 0.0 }
 0x27c   : > { %v1018_v38 = vmax.f32 %v990_v31, 0.0 }
 0x27d   : > { %v1026_v39 = vpack.c.bf16 %v1020_v33, %v1019_v32 }
 0x27e   : > { %v1025_v40 = vpack.c.bf16 %v1018_v38, %v1017_v37  ;;  %v5689_v41 = vpop.f32.mrb[4].mxu1 }
 0x27f   : > { %v1011_v42 = vadd.f32 %v5689_v41, %v5178_v22  ;;  %v1002_v43 = vpop.f32.mrb[5].mxu1 }
 0x280   : > { %v1003_v44 = vadd.f32 %v5178_v22, %v1002_v43  ;;  %v5690_v45 = vpop.f32.mrb[6].mxu1  ;;  %5699 = vmatprep.mubr.msk.bf16.mxu0 %vm939_vm7, %v1025_v40  ;;  %v1298_v40 = vld [vmem:[#allocation4 + $0x68] sm:$0xff] }
 0x281   : > { %v1023_v46 = vmax.f32 %v1011_v42, 0.0  ;;  %v1014_v47 = vadd.f32 %v5690_v45, %v5178_v22  ;;  %v1005_v48 = vpop.f32.mrb[7].mxu1  ;;  %5700 = vmatmul.mubr.msk.bf16.vlgmr.msra.gmra.mrb[8].mxu0 %vm939_vm7, %v1026_v39  ;;  %v1294_v39 = vld [vmem:[#allocation4 + $0x48] sm:$0xff] }
 0x282   : > { %v1021_v49 = vmax.f32 %v1003_v44, 0.0  ;;  %v1006_v50 = vadd.f32 %v5178_v22, %v1005_v48  ;;  %1712 = vmatpush1.bf16.msra.mxu0 %v5205_v60  ;;  %v5187_v22 = vld [vmem:[%s7694_s21] ss:$0 sm:$0xff] }
 0x283   : > { %v1024_v51 = vmax.f32 %v1014_v47, 0.0  ;;  %1713 = vmatprep.subr.bf16.mxu0 %v5214_v3 }
 0x284   : > { %v1022_v52 = vmax.f32 %v1006_v50, 0.0  ;;  %v1306_v50 = vld [vmem:[#allocation4 + $0xa8] sm:$0xff] }
 0x285   : > { %v1028_v53 = vpack.c.bf16 %v1024_v51, %v1023_v46  ;;  %v5216_v46 = vcombine.high %v1294_v39, %v1298_v40 }
 0x286   : > { %v1027_v54 = vpack.c.bf16 %v1022_v52, %v1021_v49  ;;  %1714 = vmatpush1.bf16.msra.mxu0 %v5213_v6  ;;  %v1302_v49 = vld [vmem:[#allocation4 + $0x88] sm:$0xff] }
 0x287   : > { %1715 = vmatprep.subr.bf16.mxu0 %v5222_v7  ;;  %v5224_v57 = vcombine.high %v1302_v49, %v1306_v50  ;;  %v5223_v3 = vcombine.low %v1302_v49, %v1306_v50  ;;  %v1326_v6 = vld [vmem:[#allocation4 + $0x148] sm:$0xff]  ;;  %v1295_v50 = vld [vmem:[#allocation4 + $0x50] sm:$0xff] }
 0x288   : > { %5703 = vmatprep.mubr.msk.bf16.mxu0 %vm939_vm7, %v1027_v54  ;;  %v5215_v54 = vcombine.low %v1294_v39, %v1298_v40  ;;  %v1330_v7 = vld [vmem:[#allocation4 + $0x168] sm:$0xff] }
 0x289   : > { %5704 = vmatmul.mubr.msk.bf16.gmra.mrb[12].mxu0 %vm939_vm7, %v1028_v53  ;;  %v5248_v9 = vcombine.high %v1326_v6, %v1330_v7 }
 0x28a   : > { %1716 = vmatpush1.bf16.msra.mxu0 %v5221_v10  ;;  %v5247_v10 = vcombine.low %v1326_v6, %v1330_v7 }
 0x28b   : > { %1717 = vmatprep.subr.bf16.mxu0 %v5230_v11  ;;  %v1333_v11 = vld [vmem:[#allocation4 + $0x180] sm:$0xff] }
 0x28c   : > { %v5253_v16 = vcombine.low %v1333_v11, %v1337_v12 }
 0x28e   : > { %1718 = vmatpush1.bf16.msra.mxu0 %v5229_v14  ;;  %v5254_v14 = vcombine.high %v1333_v11, %v1337_v12 }
 0x28f   : > { %1719 = vmatprep.subr.bf16.mxu0 %v5238_v15  ;;  %v1338_v15 = vld [vmem:[#allocation4 + $0x1a8] sm:$0xff] }
 0x290   : > { %v5255_v18 = vcombine.low %v1334_v13, %v1338_v15 }
 0x292   : > { %1720 = vmatpush1.bf16.msra.mxu0 %v5237_v19  ;;  %v5256_v19 = vcombine.high %v1334_v13, %v1338_v15 }
 0x293   : > { %1721 = vmatprep.subr.bf16.mxu0 %v5246_v20  ;;  %v1341_v20 = vld [vmem:[#allocation4 + $0x1c0] sm:$0xff] }
 0x296   : > { %1722 = vmatpush1.bf16.msra.mxu0 %v5245_v21  ;;  %v1345_v21 = vld [vmem:[#allocation4 + $0x1e0] sm:$0xff] }
 0x297   : > { %1723 = vmatprep.subr.bf16.mxu0 %v5254_v14  ;;  %v1311_v14 = vld [vmem:[#allocation4 + $0xd0] sm:$0xff] }
 0x29a   : > { %1724 = vmatpush1.bf16.msra.mxu0 %v5253_v16 }
 0x354   : > { %v5701_v23 = vpop.f32.mrb[8].mxu0 }
 0x355   : > { %v1123_v24 = vadd.f32 %v5701_v23, %v5187_v22  ;;  %v1114_v25 = vpop.f32.mrb[9].mxu0  ;;  %v5262_v23 = vcombine.high %v1341_v20, %v1345_v21 }
 0x356   : > { %v1115_v27 = vadd.f32 %v5187_v22, %v1114_v25  ;;  %v5702_v28 = vpop.f32.mrb[10].mxu0  ;;  %v5261_v25 = vcombine.low %v1341_v20, %v1345_v21  ;;  %v1316_v20 = vld [vmem:[#allocation4 + $0xf8] sm:$0xff] }
 0x357   : > { %v1126_v29 = vadd.f32 %v5702_v28, %v5187_v22  ;;  %v1117_v30 = vpop.f32.mrb[11].mxu0  ;;  %v1147_v32 = vmax.f32 %v1123_v24, 0.0  ;;  %v1346_v24 = vld [vmem:[#allocation4 + $0x1e8] sm:$0xff]  ;;  %1725 = vmatprep.subr.bf16.mxu0 %v5262_v23 }
 0x358   : > { %v1118_v31 = vadd.f32 %v5187_v22, %v1117_v30  ;;  %v1145_v37 = vmax.f32 %v1115_v27, 0.0  ;;  %1726 = vmatpush1.bf16.msra.mxu0 %v5261_v25  ;;  %v1291_v30 = vld [vmem:[#allocation4 + $0x30] sm:$0xff] }
 0x359   : > { %v1148_v33 = vmax.f32 %v1126_v29, 0.0  ;;  %v1287_v29 = vld [vmem:[#allocation4 + $0x10] sm:$0xff] }
 0x35a   : > { %v1146_v38 = vmax.f32 %v1118_v31, 0.0  ;;  %v1288_v31 = vld [vmem:[#allocation4 + $0x18] sm:$0xff] }
 0x35b   : > { %v1154_v41 = vpack.c.bf16 %v1148_v33, %v1147_v32  ;;  %v5210_v32 = vcombine.high %v1287_v29, %v1291_v30  ;;  %v1292_v33 = vld [vmem:[#allocation4 + $0x38] sm:$0xff] }
 0x35c   : > { %v1153_v42 = vpack.c.bf16 %v1146_v38, %v1145_v37  ;;  %v5705_v43 = vpop.f32.mrb[12].mxu0  ;;  %v6654_v37 = vmov 0   ;;  %v5209_v38 = vcombine.low %v1287_v29, %v1291_v30  ;;  %v5211_v39 = vcombine.low %v1288_v31, %v1292_v33  ;;  %v1319_v30 = vld [vmem:[#allocation4 + $0x110] sm:$0xff] }
 0x35d   : > { %v1139_v44 = vadd.f32 %v5705_v43, %v5187_v22  ;;  %v1130_v45 = vpop.f32.mrb[13].mxu0  ;;  %1743 = vmatprep.mubr.bf16.mxu0 %v6654_v37  ;;  %v5212_v40 = vcombine.high %v1288_v31, %v1292_v33  ;;  %1857 = vmatprep.subr.bf16.mxu0 %v5210_v32  ;;  %v1323_v31 = vld [vmem:[#allocation4 + $0x130] sm:$0xff]  ;;  %v1320_v32 = vld [vmem:[#allocation4 + $0x118] sm:$0xff] }
 0x35e   : > { %v1131_v47 = vadd.f32 %v5187_v22, %v1130_v45  ;;  %v5706_v48 = vpop.f32.mrb[14].mxu0  ;;  %5715 = vmatprep.mubr.msk.bf16.mxu1 %vm939_vm7, %v1153_v42  ;;  %v1324_v33 = vld [vmem:[#allocation4 + $0x138] sm:$0xff] }
 0x35f   : > { %v1142_v51 = vadd.f32 %v5706_v48, %v5187_v22  ;;  %v1133_v52 = vpop.f32.mrb[15].mxu0  ;;  %5716 = vmatmul.mubr.msk.bf16.vlgmr.msra.gmra.mrb[8].mxu1 %vm939_vm7, %v1154_v41  ;;  %v1151_v55 = vmax.f32 %v1139_v44, 0.0  ;;  %v5196_v41 = vld [vmem:[%s7695_s22] ss:$0 sm:$0xff] }
 0x360   : > { %v1134_v53 = vadd.f32 %v5187_v22, %v1133_v52  ;;  %1785 = vmatpush1.bf16.msra.mxu1 %v5207_v1  ;;  %v1149_v58 = vmax.f32 %v1131_v47, 0.0  ;;  %v5240_v1 = vcombine.high %v1318_v5, %v1322_v59  ;;  %v1342_v22 = vld [vmem:[#allocation4 + $0x1c8] sm:$0xff]  ;;  %v1307_v5 = vld [vmem:[#allocation4 + $0xb0] sm:$0xff]  ;;  %v1304_v59 = vld [vmem:[#allocation4 + $0x98] sm:$0xff] }
 0x361   : > { %v1152_v56 = vmax.f32 %v1142_v51, 0.0  ;;  %1786 = vmatprep.subr.bf16.mxu1 %v5216_v46  ;;  %v5263_v27 = vcombine.low %v1342_v22, %v1346_v24  ;;  %v5264_v28 = vcombine.high %v1342_v22, %v1346_v24 }
 0x362   : > { %v1150_v60 = vmax.f32 %v1134_v53, 0.0  ;;  %v1299_v53 = vld [vmem:[#allocation4 + $0x70] sm:$0xff] }
 0x363   : > { %v1156_v0 = vpack.c.bf16 %v1152_v56, %v1151_v55  ;;  %v1300_v55 = vld [vmem:[#allocation4 + $0x78] sm:$0xff]  ;;  %v5218_v63 = vcombine.high %v1295_v50, %v1299_v53 }
 0x364   : > { %v1155_v2 = vpack.c.bf16 %v1150_v60, %v1149_v58  ;;  %1787 = vmatpush1.bf16.msra.mxu1 %v5215_v54  ;;  %v1296_v54 = vld [vmem:[#allocation4 + $0x58] sm:$0xff] }
 0x365   : > { %1788 = vmatprep.subr.bf16.mxu1 %v5224_v57 }
 0x366   : > { %5719 = vmatprep.mubr.msk.bf16.mxu1 %vm939_vm7, %v1155_v2  ;;  %v1303_v2 = vld [vmem:[#allocation4 + $0x90] sm:$0xff] }
 0x367   : > { %5720 = vmatmul.mubr.msk.bf16.gmra.mrb[12].mxu1 %vm939_vm7, %v1156_v0  ;;  %v5220_v0 = vcombine.high %v1296_v54, %v1300_v55  ;;  %v5226_v12 = vcombine.high %v1303_v2, %v1307_v5  ;;  %v5225_v24 = vcombine.low %v1303_v2, %v1307_v5  ;;  %v1348_v2 = vld [vmem:[#allocation4 + $0x1f8] sm:$0xff] }
 0x368   : > { %1789 = vmatpush1.bf16.msra.mxu1 %v5223_v3  ;;  %1816 = vmatprep.mubr.bf16.mxu1 %v6654_v37 }
 0x369   : > { %1790 = vmatprep.subr.bf16.mxu1 %v5232_v4 }
 0x36c   : > { %1791 = vmatpush1.bf16.msra.mxu1 %v5231_v62  ;;  %v1308_v62 = vld [vmem:[#allocation4 + $0xb8] sm:$0xff] }
 0x36d   : > { %1792 = vmatprep.subr.bf16.mxu1 %v5240_v1  ;;  %v5228_v13 = vcombine.high %v1304_v59, %v1308_v62  ;;  %v5227_v25 = vcombine.low %v1304_v59, %v1308_v62 }
 0x370   : > { %1793 = vmatpush1.bf16.msra.mxu1 %v5239_v8 }
 0x371   : > { %1794 = vmatprep.subr.bf16.mxu1 %v5248_v9  ;;  %v5217_v9 = vcombine.low %v1295_v50, %v1299_v53  ;;  %v1335_v50 = vld [vmem:[#allocation4 + $0x190] sm:$0xff]  ;;  %v1340_v53 = vld [vmem:[#allocation4 + $0x1b8] sm:$0xff] }
 0x374   : > { %1795 = vmatpush1.bf16.msra.mxu1 %v5247_v10  ;;  %v5219_v10 = vcombine.low %v1296_v54, %v1300_v55 }
 0x375   : > { %1796 = vmatprep.subr.bf16.mxu1 %v5256_v19  ;;  %v1312_v19 = vld [vmem:[#allocation4 + $0xd8] sm:$0xff] }
 0x376   : > { %v5236_v29 = vcombine.high %v1312_v19, %v1316_v20 }
 0x378   : > { %1797 = vmatpush1.bf16.msra.mxu1 %v5255_v18  ;;  %v1315_v18 = vld [vmem:[#allocation4 + $0xf0] sm:$0xff] }
 0x379   : > { %1798 = vmatprep.subr.bf16.mxu1 %v5264_v28  ;;  %v5234_v28 = vcombine.high %v1311_v14, %v1315_v18 }
 0x37c   : > { %1799 = vmatpush1.bf16.msra.mxu1 %v5263_v27 }
 0x37d   : > { %1930 = vmatprep.subr.bf16.mxu1 %v5212_v40  ;;  %v5242_v40 = vcombine.high %v1319_v30, %v1323_v31 }
 0x432   : > { %v5717_v42 = vpop.f32.mrb[8].mxu1 }
 0x433   : > { %v1251_v43 = vadd.f32 %v5717_v42, %v5196_v41  ;;  %v1242_v44 = vpop.f32.mrb[9].mxu1  ;;  %v1327_v42 = vld [vmem:[#allocation4 + $0x150] sm:$0xff] }
 0x434   : > { %v1243_v45 = vadd.f32 %v5196_v41, %v1242_v44  ;;  %v5718_v46 = vpop.f32.mrb[10].mxu1  ;;  %v1328_v44 = vld [vmem:[#allocation4 + $0x158] sm:$0xff] }
 0x435   : > { %v1254_v47 = vadd.f32 %v5718_v46, %v5196_v41  ;;  %v1245_v48 = vpop.f32.mrb[11].mxu1  ;;  %v1275_v51 = vmax.f32 %v1251_v43, 0.0  ;;  %v1331_v43 = vld [vmem:[#allocation4 + $0x170] sm:$0xff]  ;;  %v5241_v46 = vcombine.low %v1319_v30, %v1323_v31 }
 0x436   : > { %v1246_v49 = vadd.f32 %v5196_v41, %v1245_v48  ;;  %v1273_v56 = vmax.f32 %v1243_v45, 0.0  ;;  %v1332_v45 = vld [vmem:[#allocation4 + $0x178] sm:$0xff]  ;;  %v5250_v48 = vcombine.high %v1327_v42, %v1331_v43  ;;  %v5249_v54 = vcombine.low %v1327_v42, %v1331_v43 }
 0x437   : > { %v1276_v52 = vmax.f32 %v1254_v47, 0.0  ;;  %v5243_v47 = vcombine.low %v1320_v32, %v1324_v33  ;;  %v5251_v55 = vcombine.low %v1328_v44, %v1332_v45 }
 0x438   : > { %v1274_v57 = vmax.f32 %v1246_v49, 0.0  ;;  %v5252_v49 = vcombine.high %v1328_v44, %v1332_v45 }
 0x439   : > { %v7069_v58 = vpack.c.bf16 %v1276_v52, %v1275_v51  ;;  %v1339_v51 = vld [vmem:[#allocation4 + $0x1b0] sm:$0xff]  ;;  %v1336_v52 = vld [vmem:[#allocation4 + $0x198] sm:$0xff] }
 0x43a   : > { %v7071_v60 = vpack.c.bf16 %v1274_v57, %v1273_v56  ;;  %v5721_v61 = vpop.f32.mrb[12].mxu1  ;;  %v5258_v56 = vcombine.high %v1335_v50, %v1339_v51  ;;  %v5260_v57 = vcombine.high %v1336_v52, %v1340_v53 }
 0x43b   : > { %v1267_v3 = vadd.f32 %v5721_v61, %v5196_v41  ;;  %v1258_v4 = vpop.f32.mrb[13].mxu1  ;;  %v1343_v61 = vld [vmem:[#allocation4 + $0x1d0] sm:$0xff] }
 0x43c   : > { %v1259_v1 = vadd.f32 %v5196_v41, %v1258_v4  ;;  %v5722_v6 = vpop.f32.mrb[14].mxu1  ;;  %1744 = vmatmul.mubr.bf16.vlgmr.msra.gmra.mrb[16].mxu0 %v7071_v60  ;;  %1817 = vmatmul.mubr.bf16.vlgmr.msra.gmra.mrb[16].mxu1 %v7071_v60  ;;  %v5259_v4 = vcombine.low %v1336_v52, %v1340_v53 }
 0x43d   : > { %v1270_v7 = vadd.f32 %v5722_v6, %v5196_v41  ;;  %1858 = vmatpush1.bf16.msra.mxu0 %v5209_v38  ;;  %1931 = vmatpush1.bf16.msra.mxu1 %v5211_v39  ;;  %v1261_v8 = vpop.f32.mrb[15].mxu1  ;;  %v1279_v15 = vmax.f32 %v1267_v3, 0.0  ;;  %v5233_v38 = vcombine.low %v1311_v14, %v1315_v18  ;;  %v5235_v39 = vcombine.low %v1312_v19, %v1316_v20 }
 0x43e   : > { %v1262_v11 = vadd.f32 %v5196_v41, %v1261_v8  ;;  %1859 = vmatprep.subr.bf16.mxu0 %v5218_v63  ;;  %1932 = vmatprep.subr.bf16.mxu1 %v5220_v0  ;;  %v1277_v21 = vmax.f32 %v1259_v1, 0.0  ;;  %v5244_v41 = vcombine.high %v1320_v32, %v1324_v33  ;;  %v1347_v63 = vld [vmem:[#allocation4 + $0x1f0] sm:$0xff]  ;;  %v1344_v0 = vld [vmem:[#allocation4 + $0x1d8] sm:$0xff]  ;;  %v5257_v3 = vcombine.low %v1335_v50, %v1339_v51 }
 0x43f   : > { %v1280_v16 = vmax.f32 %v1270_v7, 0.0  ;;  %1753 = vmatprep.mubr.bf16.mxu0 %v6654_v37  ;;  %1826 = vmatprep.mubr.bf16.mxu1 %v6654_v37  ;;  %v5266_v5 = vcombine.high %v1343_v61, %v1347_v63  ;;  %v5268_v59 = vcombine.high %v1344_v0, %v1348_v2  ;;  %v5265_v62 = vcombine.low %v1343_v61, %v1347_v63  ;;  %v7114_v8 = vld [vmem:[%s7696_s8] sm:$0xff] }
 0x440   : > { %v1278_v22 = vmax.f32 %v1262_v11, 0.0  ;;  %v5267_v1 = vcombine.low %v1344_v0, %v1348_v2  ;;  %v6655_v6 = vmov 1983009808  }
 0x441   : > { %v7077_v23 = vpack.c.bf16 %v1280_v16, %v1279_v15  ;;  %1860 = vmatpush1.bf16.msra.mxu0 %v5217_v9  ;;  %1933 = vmatpush1.bf16.msra.mxu1 %v5219_v10  ;;  %v2296_v7 = vunpack.c.l.s4 %v6655_v6  ;;  %v7117_v9 = vsub.s32 1, %v6947_v17 }
 0x442   : > { %v7079_v27 = vpack.c.bf16 %v1278_v22, %v1277_v21  ;;  %1861 = vmatprep.subr.bf16.mxu0 %v5226_v12  ;;  %1934 = vmatprep.subr.bf16.mxu1 %v5228_v13 }
 0x443   : > { %v2297_v12 = vunpack.c.0.s8 %v2296_v7  ;;  %v7131_v13 = vrot.slane %v7114_v8, %v7117_v9 }
 0x444   : > { %1754 = vmatmul.mubr.bf16.gmra.mrb[20].mxu0 %v7069_v58  ;;  %1827 = vmatmul.mubr.bf16.gmra.mrb[20].mxu1 %v7069_v58 }
 0x445   : > { %1862 = vmatpush1.bf16.msra.mxu0 %v5225_v24  ;;  %1935 = vmatpush1.bf16.msra.mxu1 %v5227_v25  ;;  %v7141_v22 = vsub.s32 %v2297_v12, %v6947_v17 }
 0x446   : > { %1863 = vmatprep.subr.bf16.mxu0 %v5234_v28  ;;  %1936 = vmatprep.subr.bf16.mxu1 %v5236_v29  ;;  %v1369_v28 = vsub.s32 4, %v6947_v17  ;;  %v1377_v29 = vsub.s32 6, %v6947_v17 }
 0x447   : > { %1763 = vmatprep.mubr.bf16.mxu0 %v6654_v37  ;;  %1836 = vmatprep.mubr.bf16.mxu1 %v6654_v37 }
 0x449   : > { %1864 = vmatpush1.bf16.msra.mxu0 %v5233_v38  ;;  %1937 = vmatpush1.bf16.msra.mxu1 %v5235_v39 }
 0x44a   : > { %1865 = vmatprep.subr.bf16.mxu0 %v5242_v40  ;;  %1938 = vmatprep.subr.bf16.mxu1 %v5244_v41 }
 0x44c   : > { %1764 = vmatmul.mubr.bf16.gmra.mrb[24].mxu0 %v7079_v27  ;;  %1837 = vmatmul.mubr.bf16.gmra.mrb[24].mxu1 %v7079_v27 }
 0x44d   : > { %1866 = vmatpush1.bf16.msra.mxu0 %v5241_v46  ;;  %1939 = vmatpush1.bf16.msra.mxu1 %v5243_v47  ;;  %v1373_v46 = vsub.s32 5, %v6947_v17  ;;  %v1381_v47 = vsub.s32 7, %v6947_v17 }
 0x44e   : > { %1867 = vmatprep.subr.bf16.mxu0 %v5250_v48  ;;  %1940 = vmatprep.subr.bf16.mxu1 %v5252_v49 }
 0x44f   : > { %1773 = vmatprep.mubr.bf16.mxu0 %v6654_v37  ;;  %1846 = vmatprep.mubr.bf16.mxu1 %v6654_v37 }
 0x451   : > { %1868 = vmatpush1.bf16.msra.mxu0 %v5249_v54  ;;  %1941 = vmatpush1.bf16.msra.mxu1 %v5251_v55 }
 0x452   : > { %1869 = vmatprep.subr.bf16.mxu0 %v5258_v56  ;;  %1942 = vmatprep.subr.bf16.mxu1 %v5260_v57 }
 0x454   : > { %1774 = vmatmul.mubr.bf16.gmra.mrb[28].mxu0 %v7077_v23  ;;  %1847 = vmatmul.mubr.bf16.gmra.mrb[28].mxu1 %v7077_v23 }
 0x455   : > { %1870 = vmatpush1.bf16.msra.mxu0 %v5257_v3  ;;  %1943 = vmatpush1.bf16.msra.mxu1 %v5259_v4 }
 0x456   : > { %1871 = vmatprep.subr.bf16.mxu0 %v5266_v5  ;;  %1944 = vmatprep.subr.bf16.mxu1 %v5268_v59 }
 0x457   : > { %1889 = vmatprep.mubr.bf16.mxu0 %v6654_v37  ;;  %1962 = vmatprep.mubr.bf16.mxu1 %v6654_v37 }
 0x459   : > { %1872 = vmatpush1.bf16.msra.mxu0 %v5265_v62  ;;  %1945 = vmatpush1.bf16.msra.mxu1 %v5267_v1 }
 0x45c   : > { %1890 = vmatmul.mubr.bf16.vlgmr.msra.gmra.mrb[32].mxu0 %v7071_v60  ;;  %1963 = vmatmul.mubr.bf16.vlgmr.msra.gmra.mrb[32].mxu1 %v7071_v60  ;;  %v7108_v60 = vsub.s32 0, %v6947_v17 }
 0x45d   : > { %1899 = vmatprep.mubr.bf16.mxu0 %v6654_v37  ;;  %1972 = vmatprep.mubr.bf16.mxu1 %v6654_v37 }
 0x45e   : > { %v7122_v10 = vrot.slane %v7114_v8, %v7108_v60 }
 0x464   : > { %1900 = vmatmul.mubr.bf16.gmra.mrb[36].mxu0 %v7069_v58  ;;  %1973 = vmatmul.mubr.bf16.gmra.mrb[36].mxu1 %v7069_v58  ;;  %v1361_v58 = vsub.s32 2, %v6947_v17 }
 0x465   : > { %1909 = vmatprep.mubr.bf16.mxu0 %v6654_v37  ;;  %1982 = vmatprep.mubr.bf16.mxu1 %v6654_v37 }
 0x466   : > { %v7127_v11 = vrot.slane %v7114_v8, %v1361_v58 }
 0x46c   : > { %1910 = vmatmul.mubr.bf16.gmra.mrb[40].mxu0 %v7079_v27  ;;  %1983 = vmatmul.mubr.bf16.gmra.mrb[40].mxu1 %v7079_v27 }
 0x46d   : > { %1919 = vmatprep.mubr.bf16.mxu0 %v6654_v37  ;;  %1992 = vmatprep.mubr.bf16.mxu1 %v6654_v37  ;;  %v1365_v37 = vsub.s32 3, %v6947_v17  ;;  %v6414_v17 = vld [vmem:[%s7698_s10 + $0x30] sm:$0xff] (!%p5269_p9)  }
 0x46f   : > { %v7136_v14 = vrot.slane %v7114_v8, %v1365_v37 }
 0x474   : > { %1920 = vmatmul.mubr.bf16.gmra.mrb[44].mxu0 %v7077_v23  ;;  %1993 = vmatmul.mubr.bf16.gmra.mrb[44].mxu1 %v7077_v23 }
 0x50f   : > { %v1745_v15 = vpop.f32.mrb[16].mxu0  ;;  %v1818_v16 = vpop.f32.mrb[16].mxu1 }
 0x510   : > { %v1746_v18 = vadd.f32 %v1745_v15, %v7122_v10  ;;  %v1819_v19 = vadd.f32 %v1818_v16, %v7127_v11  ;;  %v1747_v20 = vpop.f32.mrb[17].mxu0  ;;  %v1820_v21 = vpop.f32.mrb[17].mxu1  ;;  %v7174_v16 = vrot.slane %v7114_v8, %v1369_v28 }
 0x511   : > { %v1748_v23 = vadd.f32 %v1747_v20, %v7131_v13  ;;  %v1821_v24 = vadd.f32 %v1820_v21, %v7136_v14  ;;  %v1749_v25 = vpop.f32.mrb[18].mxu0  ;;  %v1822_v27 = vpop.f32.mrb[18].mxu1 }
 0x512   : > { %v2003_v30 = vmax.f32 %v1746_v18, 0.0  ;;  %v2005_v31 = vmax.f32 %v1819_v19, 0.0  ;;  %v1750_v32 = vadd.f32 %v1749_v25, %v7122_v10  ;;  %v1823_v33 = vadd.f32 %v1822_v27, %v7127_v11  ;;  %v1751_v38 = vpop.f32.mrb[19].mxu0  ;;  %v1824_v39 = vpop.f32.mrb[19].mxu1 }
 0x513   : > { %v2004_v40 = vmax.f32 %v1748_v23, 0.0  ;;  %v2006_v41 = vmax.f32 %v1821_v24, 0.0  ;;  %v1752_v42 = vadd.f32 %v1751_v38, %v7131_v13  ;;  %v1825_v43 = vadd.f32 %v1824_v39, %v7136_v14 }
 0x514   : > { %v2011_v44 = vmax.f32 %v1750_v32, 0.0  ;;  %v2013_v45 = vmax.f32 %v1823_v33, 0.0  ;;  %v2067_v48 = vsel %vm6956_vm2, %v2003_v30, -inf  ;;  %v2069_v49 = vsel %vm6956_vm2, %v2005_v31, -inf }
 0x515   : > { %v2012_v50 = vmax.f32 %v1752_v42, 0.0  ;;  %v2014_v51 = vmax.f32 %v1825_v43, 0.0  ;;  %v2068_v52 = vsel %vm6956_vm2, %v2004_v40, -inf  ;;  %v2070_v53 = vsel %vm6956_vm2, %v2006_v41, -inf }
 0x516   : > { %v2075_v54 = vsel %vm6971_vm3, %v2011_v44, -inf  ;;  %v2077_v55 = vsel %vm6971_vm3, %v2013_v45, -inf  ;;  %v7177_v18 = vrot.slane %v7114_v8, %v1377_v29 }
 0x517   : > { %v2133_v56 = vmax.f32 %v2067_v48, %v2075_v54  ;;  %v2151_v57 = vmax.f32 %v2069_v49, %v2077_v55  ;;  %v2076_v61 = vsel %vm6971_vm3, %v2012_v50, -inf  ;;  %v2078_v63 = vsel %vm6971_vm3, %v2014_v51, -inf  ;;  %v1755_v0 = vpop.f32.mrb[20].mxu0  ;;  %v1828_v2 = vpop.f32.mrb[20].mxu1 }
 0x518   : > { %v2142_v3 = vmax.f32 %v2068_v52, %v2076_v61  ;;  %v2160_v4 = vmax.f32 %v2070_v53, %v2078_v63  ;;  %v1756_v5 = vadd.f32 %v1755_v0, %v7122_v10  ;;  %v1829_v59 = vadd.f32 %v1828_v2, %v7127_v11  ;;  %v1757_v62 = vpop.f32.mrb[21].mxu0  ;;  %v1830_v1 = vpop.f32.mrb[21].mxu1 }
 0x519   : > { %v1758_v6 = vadd.f32 %v1757_v62, %v7131_v13  ;;  %v1831_v7 = vadd.f32 %v1830_v1, %v7136_v14  ;;  %v1759_v12 = vpop.f32.mrb[22].mxu0  ;;  %v1832_v15 = vpop.f32.mrb[22].mxu1  ;;  %v7198_v63 = vrot.slane %v7114_v8, %v1373_v46  ;;  %v7201_v0 = vrot.slane %v7114_v8, %v1381_v47 }
 0x51a   : > { %v2019_v19 = vmax.f32 %v1756_v5, 0.0  ;;  %v2021_v20 = vmax.f32 %v1829_v59, 0.0  ;;  %v1760_v21 = vadd.f32 %v1759_v12, %v7122_v10  ;;  %v1833_v23 = vadd.f32 %v1832_v15, %v7127_v11  ;;  %v1761_v24 = vpop.f32.mrb[23].mxu0  ;;  %v1834_v25 = vpop.f32.mrb[23].mxu1 }
 0x51b   : > { %v2020_v27 = vmax.f32 %v1758_v6, 0.0  ;;  %v2022_v30 = vmax.f32 %v1831_v7, 0.0  ;;  %v1762_v31 = vadd.f32 %v1761_v24, %v7131_v13  ;;  %v1835_v32 = vadd.f32 %v1834_v25, %v7136_v14 }
 0x51c   : > { %v2083_v28 = vsel %vm6975_vm5, %v2019_v19, -inf  ;;  %v2085_v29 = vsel %vm6975_vm5, %v2021_v20, -inf  ;;  %v2027_v33 = vmax.f32 %v1760_v21, 0.0  ;;  %v2029_v38 = vmax.f32 %v1833_v23, 0.0 }
 0x51d   : > { %v2134_v39 = vmax.f32 %v2133_v56, %v2083_v28  ;;  %v2152_v40 = vmax.f32 %v2151_v57, %v2085_v29  ;;  %v2084_v41 = vsel %vm6975_vm5, %v2020_v27, -inf  ;;  %v2086_v42 = vsel %vm6975_vm5, %v2022_v30, -inf }
 0x51e   : > { %v2143_v43 = vmax.f32 %v2142_v3, %v2084_v41  ;;  %v2161_v44 = vmax.f32 %v2160_v4, %v2086_v42  ;;  %v2091_v45 = vsel %vm6979_vm6, %v2027_v33, -inf  ;;  %v2093_v48 = vsel %vm6979_vm6, %v2029_v38, -inf }
 0x51f   : > { %v2135_v49 = vmax.f32 %v2134_v39, %v2091_v45  ;;  %v2153_v50 = vmax.f32 %v2152_v40, %v2093_v48  ;;  %v2028_v51 = vmax.f32 %v1762_v31, 0.0  ;;  %v2030_v52 = vmax.f32 %v1835_v32, 0.0  ;;  %v1765_v53 = vpop.f32.mrb[24].mxu0  ;;  %v1838_v54 = vpop.f32.mrb[24].mxu1 }
 0x520   : > { %v1766_v55 = vadd.f32 %v1765_v53, %v7122_v10  ;;  %v1839_v56 = vadd.f32 %v1838_v54, %v7127_v11  ;;  %v1767_v57 = vpop.f32.mrb[25].mxu0  ;;  %v1840_v61 = vpop.f32.mrb[25].mxu1 }
 0x521   : > { %v2136_v2 = vrot.slane %v2135_v49, 4  ;;  %v2154_v3 = vrot.slane %v2153_v50, 4  ;;  %v2092_v4 = vsel %vm6979_vm6, %v2028_v51, -inf  ;;  %v2094_v5 = vsel %vm6979_vm6, %v2030_v52, -inf  ;;  %v1769_v59 = vpop.f32.mrb[26].mxu0  ;;  %v1842_v62 = vpop.f32.mrb[26].mxu1 }
 0x522   : > { %v2144_v1 = vmax.f32 %v2143_v43, %v2092_v4  ;;  %v2162_v6 = vmax.f32 %v2161_v44, %v2094_v5  ;;  %v2035_v7 = vmax.f32 %v1766_v55, 0.0  ;;  %v2037_v12 = vmax.f32 %v1839_v56, 0.0  ;;  %v1771_v15 = vpop.f32.mrb[27].mxu0  ;;  %v1844_v46 = vpop.f32.mrb[27].mxu1 }
 0x523   : > { %v2137_v19 = vmax.f32 %v2135_v49, %v2136_v2  ;;  %v2155_v20 = vmax.f32 %v2153_v50, %v2154_v3  ;;  %v1768_v8 = vadd.f32 %v1767_v57, %v7131_v13  ;;  %v1841_v47 = vadd.f32 %v1840_v61, %v7136_v14 }
 0x524   : > { %v2145_v21 = vrot.slane %v2144_v1, 4  ;;  %v2163_v23 = vrot.slane %v2162_v6, 4  ;;  %v7211_v24 = vsel %vm6956_vm2, %v2035_v7, -inf  ;;  %v7215_v25 = vsel %vm6956_vm2, %v2037_v12, -inf }
 0x525   : > { %v2138_v27 = vrot.slane %v2137_v19, 2  ;;  %v2156_v30 = vrot.slane %v2155_v20, 2  ;;  %v2036_v31 = vmax.f32 %v1768_v8, 0.0  ;;  %v2038_v32 = vmax.f32 %v1841_v47, 0.0 }
 0x526   : > { %v2146_v28 = vmax.f32 %v2144_v1, %v2145_v21  ;;  %v2164_v29 = vmax.f32 %v2162_v6, %v2163_v23  ;;  %v1770_v33 = vadd.f32 %v1769_v59, %v7122_v10  ;;  %v1843_v38 = vadd.f32 %v1842_v62, %v7127_v11 }
 0x527   : > { %v2139_v39 = vmax.f32 %v2137_v19, %v2138_v27  ;;  %v2157_v40 = vmax.f32 %v2155_v20, %v2156_v30  ;;  %v7221_v41 = vsel %vm6956_vm2, %v2036_v31, -inf  ;;  %v7225_v42 = vsel %vm6956_vm2, %v2038_v32, -inf  ;;  %v1775_v43 = vpop.f32.mrb[28].mxu0  ;;  %v1848_v44 = vpop.f32.mrb[28].mxu1 }
 0x528   : > { %v2147_v45 = vrot.slane %v2146_v28, 2  ;;  %v2165_v48 = vrot.slane %v2164_v29, 2  ;;  %v2043_v49 = vmax.f32 %v1770_v33, 0.0  ;;  %v2045_v50 = vmax.f32 %v1843_v38, 0.0  ;;  %v1777_v51 = vpop.f32.mrb[29].mxu0  ;;  %v1850_v52 = vpop.f32.mrb[29].mxu1 }
 0x529   : > { %v2140_v53 = vrot.slane %v2139_v39, 1  ;;  %v2158_v54 = vrot.slane %v2157_v40, 1  ;;  %v1772_v55 = vadd.f32 %v1771_v15, %v7131_v13  ;;  %v1845_v56 = vadd.f32 %v1844_v46, %v7136_v14  ;;  %v1779_v57 = vpop.f32.mrb[30].mxu0  ;;  %v1852_v61 = vpop.f32.mrb[30].mxu1 }
 0x52a   : > { %v2148_v2 = vmax.f32 %v2146_v28, %v2147_v45  ;;  %v2166_v3 = vmax.f32 %v2164_v29, %v2165_v48  ;;  %v2107_v4 = vsel %vm6971_vm3, %v2043_v49, -inf  ;;  %v2109_v5 = vsel %vm6971_vm3, %v2045_v50, -inf  ;;  %v1781_v59 = vpop.f32.mrb[31].mxu0  ;;  %v1854_v62 = vpop.f32.mrb[31].mxu1 }
 0x52b   : > { %v2141_v1 = vmax.f32 %v2139_v39, %v2140_v53  ;;  %v2159_v6 = vmax.f32 %v2157_v40, %v2158_v54  ;;  %v2205_v7 = vmax.f32 %v7211_v24, %v2107_v4  ;;  %v2223_v12 = vmax.f32 %v7215_v25, %v2109_v5 }
 0x52c   : > { %v2149_v15 = vrot.slane %v2148_v2, 1  ;;  %v2167_v46 = vrot.slane %v2166_v3, 1  ;;  %v2044_v19 = vmax.f32 %v1772_v55, 0.0  ;;  %v2046_v20 = vmax.f32 %v1845_v56, 0.0 }
 0x52d   : > { %v1776_v8 = vadd.f32 %v1775_v43, %v7122_v10  ;;  %v1849_v47 = vadd.f32 %v1848_v44, %v7127_v11  ;;  %v1778_v21 = vadd.f32 %v1777_v51, %v7131_v13  ;;  %v1851_v23 = vadd.f32 %v1850_v52, %v7136_v14 }
 0x52e   : > { %v2150_v27 = vmax.f32 %v2148_v2, %v2149_v15  ;;  %v2168_v30 = vmax.f32 %v2166_v3, %v2167_v46  ;;  %v2108_v31 = vsel %vm6971_vm3, %v2044_v19, -inf  ;;  %v2110_v24 = vsel %vm6971_vm3, %v2046_v20, -inf }
 0x52f   : > { %v2214_v25 = vmax.f32 %v7221_v41, %v2108_v31  ;;  %v2232_v32 = vmax.f32 %v7225_v42, %v2110_v24  ;;  %v2051_v28 = vmax.f32 %v1776_v8, 0.0  ;;  %v2053_v29 = vmax.f32 %v1849_v47, 0.0  ;;  %v1891_v33 = vpop.f32.mrb[32].mxu0  ;;  %v1964_v38 = vpop.f32.mrb[32].mxu1 }
 0x530   : > { %v2293_v39 = vcombine.low %v2141_v1, %v2150_v27  ;;  %v2294_v40 = vcombine.low %v2159_v6, %v2168_v30  ;;  %v2052_v43 = vmax.f32 %v1778_v21, 0.0  ;;  %v2054_v44 = vmax.f32 %v1851_v23, 0.0  ;;  %v1893_v45 = vpop.f32.mrb[33].mxu0  ;;  %v1966_v48 = vpop.f32.mrb[33].mxu1 }
 0x531   : > { %v2115_v49 = vsel %vm6975_vm5, %v2051_v28, -inf  ;;  %v2117_v50 = vsel %vm6975_vm5, %v2053_v29, -inf  ;;  %v1780_v41 = vadd.f32 %v1779_v57, %v7122_v10  ;;  %v1853_v42 = vadd.f32 %v1852_v61, %v7127_v11  ;;  %v1895_v51 = vpop.f32.mrb[34].mxu0  ;;  %v1968_v52 = vpop.f32.mrb[34].mxu1 }
 0x532   : > { %v7252_v53 = vrot.slane %v2293_v39, %v7141_v22  ;;  %v7255_v54 = vrot.slane %v2294_v40, %v7141_v22  ;;  %v2206_v55 = vmax.f32 %v2205_v7, %v2115_v49  ;;  %v2224_v56 = vmax.f32 %v2223_v12, %v2117_v50  ;;  %v1897_v2 = vpop.f32.mrb[35].mxu0  ;;  %v1970_v3 = vpop.f32.mrb[35].mxu1 }
 0x533   : > { %v2116_v4 = vsel %vm6975_vm5, %v2052_v43, -inf  ;;  %v2118_v10 = vsel %vm6975_vm5, %v2054_v44, -inf  ;;  %v2059_v57 = vmax.f32 %v1780_v41, 0.0  ;;  %v2061_v11 = vmax.f32 %v1853_v42, 0.0 }
 0x534   : > { %v2309_v61 = vcombine.low %v7252_v53, %v7255_v54  ;;  %v2215_v5 = vmax.f32 %v2214_v25, %v2116_v4  ;;  %v2233_v1 = vmax.f32 %v2232_v32, %v2118_v10  ;;  %v1782_v6 = vadd.f32 %v1781_v59, %v7131_v13 }
 0x535   : > { %v2123_v7 = vsel %vm6979_vm6, %v2059_v57, -inf  ;;  %v2125_v12 = vsel %vm6979_vm6, %v2061_v11, -inf  ;;  %v1855_v15 = vadd.f32 %v1854_v62, %v7136_v14  ;;  %v1892_v46 = vadd.f32 %v1891_v33, %v7174_v16 }
 0x536   : > { %v2207_v19 = vmax.f32 %v2206_v55, %v2123_v7  ;;  %v2225_v20 = vmax.f32 %v2224_v56, %v2125_v12  ;;  %v2060_v8 = vmax.f32 %v1782_v6, 0.0  ;;  %v1965_v47 = vadd.f32 %v1964_v38, %v7177_v18 }
 0x537   : > { %v2062_v21 = vmax.f32 %v1855_v15, 0.0  ;;  %v2007_v23 = vmax.f32 %v1892_v46, 0.0  ;;  %v1894_v27 = vadd.f32 %v1893_v45, %v7198_v63  ;;  %v1967_v13 = vadd.f32 %v1966_v48, %v7201_v0  ;;  %v7273_v59 = vpop.f32.mrb[36].mxu0  ;;  %v7275_v30 = vpop.f32.mrb[36].mxu1 }
 0x538   : > { %v2208_v31 = vrot.slane %v2207_v19, 4  ;;  %v2226_v24 = vrot.slane %v2225_v20, 4  ;;  %v2124_v14 = vsel %vm6979_vm6, %v2060_v8, -inf  ;;  %v2009_v62 = vmax.f32 %v1965_v47, 0.0  ;;  %v1903_v25 = vpop.f32.mrb[37].mxu0  ;;  %v7279_v32 = vpop.f32.mrb[37].mxu1 }
 0x539   : > { %v2216_v28 = vmax.f32 %v2215_v5, %v2124_v14  ;;  %v2126_v29 = vsel %vm6979_vm6, %v2062_v21, -inf  ;;  %v7285_v33 = vsel %vm6956_vm2, %v2007_v23, -inf  ;;  %v2008_v38 = vmax.f32 %v1894_v27, 0.0  ;;  %v1905_v39 = vpop.f32.mrb[38].mxu0  ;;  %v7287_v40 = vpop.f32.mrb[38].mxu1 }
 0x53a   : > { %v2209_v43 = vmax.f32 %v2207_v19, %v2208_v31  ;;  %v2227_v44 = vmax.f32 %v2225_v20, %v2226_v24  ;;  %v2234_v45 = vmax.f32 %v2233_v1, %v2126_v29  ;;  %v7291_v48 = vsel %vm6956_vm2, %v2009_v62, -inf  ;;  %v7293_v49 = vpop.f32.mrb[39].mxu0  ;;  %v7295_v50 = vpop.f32.mrb[39].mxu1 }
 0x53b   : > { %v2217_v41 = vrot.slane %v2216_v28, 4  ;;  %v7299_v42 = vsel %vm6956_vm2, %v2008_v38, -inf  ;;  %v2010_v55 = vmax.f32 %v1967_v13, 0.0  ;;  %v1896_v56 = vadd.f32 %v1895_v51, %v7174_v16 }
 0x53c   : > { %v2210_v4 = vrot.slane %v2209_v43, 2  ;;  %v2228_v10 = vrot.slane %v2227_v44, 2  ;;  %v2235_v57 = vrot.slane %v2234_v45, 4  ;;  %v1969_v11 = vadd.f32 %v1968_v52, %v7177_v18 }
 0x53d   : > { %v2218_v5 = vmax.f32 %v2216_v28, %v2217_v41  ;;  %v7305_v1 = vsel %vm6956_vm2, %v2010_v55, -inf  ;;  %v2015_v6 = vmax.f32 %v1896_v56, 0.0  ;;  %v1898_v7 = vadd.f32 %v1897_v2, %v7198_v63 }
 0x53e   : > { %v2211_v12 = vmax.f32 %v2209_v43, %v2210_v4  ;;  %v2229_v15 = vmax.f32 %v2227_v44, %v2228_v10  ;;  %v2236_v46 = vmax.f32 %v2234_v45, %v2235_v57  ;;  %v2017_v19 = vmax.f32 %v1969_v11, 0.0 }
 0x53f   : > { %v2219_v20 = vrot.slane %v2218_v5, 2  ;;  %v2079_v51 = vsel %vm6971_vm3, %v2015_v6, -inf  ;;  %v2016_v8 = vmax.f32 %v1898_v7, 0.0  ;;  %v1971_v47 = vadd.f32 %v1970_v3, %v7201_v0  ;;  %v7311_v52 = vpop.f32.mrb[40].mxu0  ;;  %v7313_v21 = vpop.f32.mrb[40].mxu1 }
 0x540   : > { %v2212_v23 = vrot.slane %v2211_v12, 1  ;;  %v2230_v27 = vrot.slane %v2229_v15, 1  ;;  %v2237_v13 = vrot.slane %v2236_v46, 2  ;;  %v2169_v2 = vmax.f32 %v7285_v33, %v2079_v51  ;;  %v7316_v31 = vpop.f32.mrb[41].mxu0  ;;  %v7318_v24 = vpop.f32.mrb[41].mxu1 }
 0x541   : > { %v2220_v14 = vmax.f32 %v2218_v5, %v2219_v20  ;;  %v2081_v62 = vsel %vm6971_vm3, %v2017_v19, -inf  ;;  %v2080_v3 = vsel %vm6971_vm3, %v2016_v8, -inf  ;;  %v2018_v28 = vmax.f32 %v1971_v47, 0.0  ;;  %v7324_v29 = vpop.f32.mrb[42].mxu0  ;;  %v7326_v38 = vpop.f32.mrb[42].mxu1 }
 0x542   : > { %v2213_v43 = vmax.f32 %v2211_v12, %v2212_v23  ;;  %v2231_v44 = vmax.f32 %v2229_v15, %v2230_v27  ;;  %v2238_v45 = vmax.f32 %v2236_v46, %v2237_v13  ;;  %v2187_v33 = vmax.f32 %v7291_v48, %v2081_v62  ;;  %v7329_v41 = vpop.f32.mrb[43].mxu0  ;;  %v7331_v55 = vpop.f32.mrb[43].mxu1 }
 0x543   : > { %v2221_v56 = vrot.slane %v2220_v14, 1  ;;  %v2178_v4 = vmax.f32 %v7299_v42, %v2080_v3  ;;  %v2082_v10 = vsel %vm6971_vm3, %v2018_v28, -inf  ;;  %v1902_v57 = vadd.f32 %v7273_v59, %v7174_v16 }
 0x544   : > { %v2239_v11 = vrot.slane %v2238_v45, 1  ;;  %v2196_v5 = vmax.f32 %v7305_v1, %v2082_v10  ;;  %v1975_v6 = vadd.f32 %v7275_v30, %v7177_v18  ;;  %v1904_v48 = vadd.f32 %v1903_v25, %v7198_v63 }
 0x545   : > { %v2222_v7 = vmax.f32 %v2220_v14, %v2221_v56  ;;  %v2023_v12 = vmax.f32 %v1902_v57, 0.0  ;;  %v1977_v42 = vadd.f32 %v7279_v32, %v7201_v0  ;;  %v1906_v15 = vadd.f32 %v1905_v39, %v7174_v16 }
 0x546   : > { %v2240_v46 = vmax.f32 %v2238_v45, %v2239_v11  ;;  %v2025_v19 = vmax.f32 %v1975_v6, 0.0  ;;  %v2024_v59 = vmax.f32 %v1904_v48, 0.0  ;;  %v1979_v1 = vadd.f32 %v7287_v40, %v7177_v18 }
 0x547   : > { %v2327_v20 = vcombine.low %v2213_v43, %v2222_v7  ;;  %v2087_v30 = vsel %vm6975_vm5, %v2023_v12, -inf  ;;  %v2026_v25 = vmax.f32 %v1977_v42, 0.0  ;;  %v2031_v51 = vmax.f32 %v1906_v15, 0.0  ;;  %v7349_v8 = vpop.f32.mrb[44].mxu0  ;;  %v7351_v47 = vpop.f32.mrb[44].mxu1 }
 0x548   : > { %v2328_v32 = vcombine.low %v2231_v44, %v2240_v46  ;;  %v2170_v39 = vmax.f32 %v2169_v2, %v2087_v30  ;;  %v2089_v23 = vsel %vm6975_vm5, %v2025_v19, -inf  ;;  %v2088_v40 = vsel %vm6975_vm5, %v2024_v59, -inf  ;;  %v7357_v27 = vpop.f32.mrb[45].mxu0  ;;  %v7359_v13 = vpop.f32.mrb[45].mxu1 }
 0x549   : > { %v2335_v14 = vrot.slane %v2327_v20, %v7141_v22  ;;  %v2188_v62 = vmax.f32 %v2187_v33, %v2089_v23  ;;  %v2179_v3 = vmax.f32 %v2178_v4, %v2088_v40  ;;  %v2090_v28 = vsel %vm6975_vm5, %v2026_v25, -inf  ;;  %v7364_v43 = vpop.f32.mrb[46].mxu0  ;;  %v7366_v2 = vpop.f32.mrb[46].mxu1  ;;  %v2131_v23 = vld [vmem:[#allocation2] sm:$0xff] }
 0x54a   : > { %v2342_v44 = vrot.slane %v2328_v32, %v7141_v22  ;;  %v2197_v45 = vmax.f32 %v2196_v5, %v2090_v28  ;;  %v2095_v56 = vsel %vm6979_vm6, %v2031_v51, -inf  ;;  %v2033_v10 = vmax.f32 %v1979_v1, 0.0  ;;  %v7371_v57 = vpop.f32.mrb[47].mxu0  ;;  %v7373_v11 = vpop.f32.mrb[47].mxu1 }
 0x54b   : > { %v2171_v33 = vmax.f32 %v2170_v39, %v2095_v56  ;;  %v1908_v4 = vadd.f32 %v7293_v49, %v7198_v63  ;;  %v1981_v6 = vadd.f32 %v7295_v50, %v7201_v0  ;;  %v1912_v48 = vadd.f32 %v7311_v52, %v7174_v16 }
 0x54c   : > { %v2343_v7 = vcombine.low %v2335_v14, %v2342_v44  ;;  %v2097_v5 = vsel %vm6979_vm6, %v2033_v10, -inf  ;;  %v1985_v12 = vadd.f32 %v7313_v21, %v7177_v18  ;;  %v1914_v42 = vadd.f32 %v7316_v31, %v7198_v63 }
 0x54d   : > { %v2172_v15 = vrot.slane %v2171_v33, 4  ;;  %v2189_v46 = vmax.f32 %v2188_v62, %v2097_v5  ;;  %v2032_v19 = vmax.f32 %v1908_v4, 0.0  ;;  %v2034_v49 = vmax.f32 %v1981_v6, 0.0 }
 0x54e   : > { %v2365_v59 = vrot.slane %v2343_v7, 7  ;;  %v2039_v1 = vmax.f32 %v1912_v48, 0.0  ;;  %v2041_v50 = vmax.f32 %v1985_v12, 0.0  ;;  %v2040_v20 = vmax.f32 %v1914_v42, 0.0 }
 0x54f   : > { %v2173_v30 = vmax.f32 %v2171_v33, %v2172_v15  ;;  %v2190_v52 = vrot.slane %v2189_v46, 4  ;;  %v2096_v25 = vsel %vm6979_vm6, %v2032_v19, -inf  ;;  %v2098_v51 = vsel %vm6979_vm6, %v2034_v49, -inf }
 0x550   : > { %v2367_v21 = vsel %vm2366_vm8, %v2365_v59, %v2309_v61  ;;  %v2180_v31 = vmax.f32 %v2179_v3, %v2096_v25  ;;  %v2198_v32 = vmax.f32 %v2197_v45, %v2098_v51  ;;  %v7397_v39 = vsel %vm6956_vm2, %v2039_v1, -inf }
 0x551   : > { %v2369_v40 = vsel %vm2368_vm9, %v2365_v59, %v2367_v21  ;;  %v2174_v14 = vrot.slane %v2173_v30, 2  ;;  %v2191_v62 = vmax.f32 %v2189_v46, %v2190_v52  ;;  %v2105_v28 = vsel %vm6956_vm2, %v2041_v50, -inf }
 0x552   : > { %v2371_v44 = vsel %vm2370_vm10, %v2365_v59, %v2369_v40  ;;  %v2181_v56 = vrot.slane %v2180_v31, 4  ;;  %v2199_v53 = vrot.slane %v2198_v32, 4  ;;  %v7405_v54 = vsel %vm6956_vm2, %v2040_v20, -inf }
 0x553   : > { %v2373_v61 = vsel %vm2372_vm11, %v2365_v59, %v2371_v44  ;;  %v2175_v3 = vmax.f32 %v2173_v30, %v2174_v14  ;;  %v2192_v45 = vrot.slane %v2191_v62, 2  ;;  %v1987_v10 = vadd.f32 %v7318_v24, %v7201_v0 }
 0x554   : > { %v2383_v33 = vmax.f32 %v2131_v23, %v2373_v61  ;;  %v2182_v4 = vmax.f32 %v2180_v31, %v2181_v56  ;;  %v2200_v6 = vmax.f32 %v2198_v32, %v2199_v53  ;;  %v1916_v48 = vadd.f32 %v7324_v29, %v7174_v16 }
 0x555   : > { %v2176_v7 = vrot.slane %v2175_v3, 1  ;;  %v2193_v5 = vmax.f32 %v2191_v62, %v2192_v45  ;;  %v2042_v12 = vmax.f32 %v1987_v10, 0.0  ;;  %v1989_v42 = vadd.f32 %v7326_v38, %v7177_v18 }
 0x556   : > { %2385 = vst [vmem:[#allocation2] sm:$0xff] %v2383_v33  ;;  %v2183_v15 = vrot.slane %v2182_v4, 2  ;;  %v2201_v46 = vrot.slane %v2200_v6, 2  ;;  %v2047_v19 = vmax.f32 %v1916_v48, 0.0  ;;  %v1918_v49 = vadd.f32 %v7329_v41, %v7198_v63 }
 0x557   : > { %v2177_v24 = vmax.f32 %v2175_v3, %v2176_v7  ;;  %v2194_v59 = vrot.slane %v2193_v5, 1  ;;  %v2106_v1 = vsel %vm6956_vm2, %v2042_v12, -inf  ;;  %v2049_v50 = vmax.f32 %v1989_v42, 0.0 }
 0x558   : > { %v2184_v29 = vmax.f32 %v2182_v4, %v2183_v15  ;;  %v2202_v20 = vmax.f32 %v2200_v6, %v2201_v46  ;;  %v2111_v30 = vsel %vm6971_vm3, %v2047_v19, -inf  ;;  %v2048_v52 = vmax.f32 %v1918_v49, 0.0 }
 0x559   : > { %v2195_v38 = vmax.f32 %v2193_v5, %v2194_v59  ;;  %v2241_v25 = vmax.f32 %v7397_v39, %v2111_v30  ;;  %v2113_v51 = vsel %vm6971_vm3, %v2049_v50, -inf  ;;  %v1991_v41 = vadd.f32 %v7331_v55, %v7201_v0 }
 0x55a   : > { %v2185_v21 = vrot.slane %v2184_v29, 1  ;;  %v2203_v31 = vrot.slane %v2202_v20, 1  ;;  %v2259_v26 = vmax.f32 %v2105_v28, %v2113_v51  ;;  %v2112_v32 = vsel %vm6971_vm3, %v2048_v52, -inf }
 0x55b   : > { %v2250_v23 = vmax.f32 %v7405_v54, %v2112_v32  ;;  %v2050_v40 = vmax.f32 %v1991_v41, 0.0  ;;  %v1922_v14 = vadd.f32 %v7349_v8, %v7174_v16  ;;  %v1995_v39 = vadd.f32 %v7351_v47, %v7177_v18 }
 0x55c   : > { %v2186_v62 = vmax.f32 %v2184_v29, %v2185_v21  ;;  %v2204_v44 = vmax.f32 %v2202_v20, %v2203_v31  ;;  %v1924_v55 = vadd.f32 %v7357_v27, %v7198_v63  ;;  %v1997_v28 = vadd.f32 %v7359_v13, %v7201_v0 }
 0x55d   : > { %v2114_v56 = vsel %vm6971_vm3, %v2050_v40, -inf  ;;  %v2055_v53 = vmax.f32 %v1922_v14, 0.0  ;;  %v2057_v54 = vmax.f32 %v1995_v39, 0.0  ;;  %v1926_v61 = vadd.f32 %v7364_v43, %v7174_v16 }
 0x55e   : > { %v2310_v8 = vcombine.low %v2177_v24, %v2186_v62  ;;  %v2311_v3 = vcombine.low %v2195_v38, %v2204_v44  ;;  %v2268_v45 = vmax.f32 %v2106_v1, %v2114_v56  ;;  %v2056_v47 = vmax.f32 %v1924_v55, 0.0 }
 0x55f   : > { %v2119_v10 = vsel %vm6975_vm5, %v2055_v53, -inf  ;;  %v2121_v27 = vsel %vm6975_vm5, %v2057_v54, -inf  ;;  %v2058_v33 = vmax.f32 %v1997_v28, 0.0  ;;  %v2063_v13 = vmax.f32 %v1926_v61, 0.0 }
 0x560   : > { %v2318_v34 = vrot.slane %v2310_v8, %v7141_v22  ;;  %v2325_v4 = vrot.slane %v2311_v3, %v7141_v22  ;;  %v2242_v6 = vmax.f32 %v2241_v25, %v2119_v10  ;;  %v2260_v48 = vmax.f32 %v2259_v26, %v2121_v27  ;;  %v2132_v10 = vld [vmem:[#allocation2 + $0x8] sm:$0xff] }
 0x561   : > { %v2120_v16 = vsel %vm6975_vm5, %v2056_v47, -inf  ;;  %v2122_v43 = vsel %vm6975_vm5, %v2058_v33, -inf  ;;  %v2127_v7 = vsel %vm6979_vm6, %v2063_v13, -inf  ;;  %v1999_v5 = vadd.f32 %v7366_v2, %v7177_v18 }
 0x562   : > { %v2326_v12 = vcombine.low %v2318_v34, %v2325_v4  ;;  %v2251_v42 = vmax.f32 %v2250_v23, %v2120_v16  ;;  %v2269_v15 = vmax.f32 %v2268_v45, %v2122_v43  ;;  %v2243_v46 = vmax.f32 %v2242_v6, %v2127_v7  ;;  %v5919_v4 = vld [vmem:[#allocation7 + $0x4] ss:$16 sps:$4 sm:$0xff] (!%p5269_p9)   ;;  %v5924_v16 = vld [vmem:[#allocation7 + $0x200] ss:$16 sps:$4 sm:$0xff] (!%p5269_p9)  }
 0x563   : > { %v2065_v19 = vmax.f32 %v1999_v5, 0.0  ;;  %v1928_v49 = vadd.f32 %v7371_v57, %v7198_v63  ;;  %v2001_v24 = vadd.f32 %v7373_v11, %v7201_v0  ;;  %v5921_v6 = vld [vmem:[#allocation7 + $0x204] ss:$16 sps:$4 sm:$0xff] (!%p5269_p9)   ;;  %4003 = vmatprep.subr.bf16.mxu1 (!%p5269_p9), %v5919_v4  ;;  %v5929_v5 = vld [vmem:[#allocation7 + $0x20] ss:$16 sps:$4 sm:$0xff] (!%p5269_p9)  }
 0x564   : > { %v2244_v59 = vrot.slane %v2243_v46, 4  ;;  %4044 = vmatprep.subr.bf16.mxu0 (!%p5269_p9), %v5921_v6  ;;  %v5925_v43 = vld [vmem:[#allocation7 + $0x24] ss:$16 sps:$4 sm:$0xff] (!%p5269_p9)   ;;  %v5996_v4 = vld [vmem:[#allocation7 + $0x380] ss:$16 sps:$4 sm:$0xff] (!%p5269_p9)  }
 0x565   : > { %v2129_v35 = vsel %vm6979_vm6, %v2065_v19, -inf  ;;  %v2064_v1 = vmax.f32 %v1928_v49, 0.0  ;;  %v2066_v50 = vmax.f32 %v2001_v24, 0.0  ;;  %4045 = vmatpush1.bf16.msra.mxu0 (!%p5269_p9), %v5924_v16  ;;  %v5927_v7 = vld [vmem:[#allocation7 + $0x224] ss:$16 sps:$4 sm:$0xff] (!%p5269_p9)  }
 0x566   : > { %v2245_v29 = vmax.f32 %v2243_v46, %v2244_v59  ;;  %v2261_v20 = vmax.f32 %v2260_v48, %v2129_v35  ;;  %v5923_v48 = vld [vmem:[#allocation7] ss:$16 sps:$4 sm:$0xff] (!%p5269_p9)   ;;  %4046 = vmatprep.subr.bf16.mxu0 (!%p5269_p9), %v5927_v7  ;;  %v5937_v49 = vld [vmem:[#allocation7 + $0x64] ss:$16 sps:$4 sm:$0xff] (!%p5269_p9)  }
 0x567   : > { %v2128_v18 = vsel %vm6979_vm6, %v2064_v1, -inf  ;;  %v2130_v2 = vsel %vm6979_vm6, %v2066_v50, -inf  ;;  %4004 = vmatpush1.bf16.msra.mxu1 (!%p5269_p9), %v5923_v48  ;;  %v5935_v46 = vld [vmem:[#allocation7 + $0x40] ss:$16 sps:$4 sm:$0xff] (!%p5269_p9)   ;;  %v5939_v24 = vld [vmem:[#allocation7 + $0x264] ss:$16 sps:$4 sm:$0xff] (!%p5269_p9)  }
 0x568   : > { %v2246_v30 = vrot.slane %v2245_v29, 2  ;;  %v2262_v52 = vrot.slane %v2261_v20, 4  ;;  %v2252_v63 = vmax.f32 %v2251_v42, %v2128_v18  ;;  %v2270_v57 = vmax.f32 %v2269_v15, %v2130_v2  ;;  %4005 = vmatprep.subr.bf16.mxu1 (!%p5269_p9), %v5925_v43  ;;  %v5931_v42 = vld [vmem:[#allocation7 + $0x44] ss:$16 sps:$4 sm:$0xff] (!%p5269_p9)   ;;  %v5936_v19 = vld [vmem:[#allocation7 + $0x240] ss:$16 sps:$4 sm:$0xff] (!%p5269_p9)  }
 0x569   : > { %v5933_v15 = vld [vmem:[#allocation7 + $0x244] ss:$16 sps:$4 sm:$0xff] (!%p5269_p9)   ;;  %v5941_v59 = vld [vmem:[#allocation7 + $0x60] ss:$16 sps:$4 sm:$0xff] (!%p5269_p9)  }
 0x56a   : > { %v2247_v38 = vmax.f32 %v2245_v29, %v2246_v30  ;;  %v2263_v0 = vmax.f32 %v2261_v20, %v2262_v52  ;;  %v2253_v11 = vrot.slane %v2252_v63, 4  ;;  %v2271_v25 = vrot.slane %v2270_v57, 4  ;;  %v5942_v35 = vld [vmem:[#allocation7 + $0x260] ss:$16 sps:$4 sm:$0xff] (!%p5269_p9)   ;;  %v5943_v1 = vld [vmem:[#allocation7 + $0x84] ss:$16 sps:$4 sm:$0xff] (!%p5269_p9)  }
 0x56b   : > { %4006 = vmatpush1.bf16.msra.mxu1 (!%p5269_p9), %v5929_v5  ;;  %v5945_v50 = vld [vmem:[#allocation7 + $0x284] ss:$16 sps:$4 sm:$0xff] (!%p5269_p9)   ;;  %v5947_v29 = vld [vmem:[#allocation7 + $0x80] ss:$16 sps:$4 sm:$0xff] (!%p5269_p9)  }
 0x56c   : > { %v2264_v51 = vrot.slane %v2263_v0, 2  ;;  %v2254_v41 = vmax.f32 %v2252_v63, %v2253_v11  ;;  %v2272_v21 = vmax.f32 %v2270_v57, %v2271_v25  ;;  %v2248_v31 = vrot.slane %v2247_v38, 1  ;;  %4007 = vmatprep.subr.bf16.mxu1 (!%p5269_p9), %v5931_v42  ;;  %v5948_v20 = vld [vmem:[#allocation7 + $0x280] ss:$16 sps:$4 sm:$0xff] (!%p5269_p9)   ;;  %v5949_v18 = vld [vmem:[#allocation7 + $0xa4] ss:$16 sps:$4 sm:$0xff] (!%p5269_p9)  }
 0x56d   : > { %v5951_v2 = vld [vmem:[#allocation7 + $0x2a4] ss:$16 sps:$4 sm:$0xff] (!%p5269_p9)   ;;  %v5953_v30 = vld [vmem:[#allocation7 + $0xa0] ss:$16 sps:$4 sm:$0xff] (!%p5269_p9)  }
 0x56e   : > { %v2265_v26 = vmax.f32 %v2263_v0, %v2264_v51  ;;  %v2255_v32 = vrot.slane %v2254_v41, 2  ;;  %v2273_v23 = vrot.slane %v2272_v21, 2  ;;  %v2249_v36 = vmax.f32 %v2247_v38, %v2248_v31  ;;  %v5954_v52 = vld [vmem:[#allocation7 + $0x2a0] ss:$16 sps:$4 sm:$0xff] (!%p5269_p9)   ;;  %v5955_v63 = vld [vmem:[#allocation7 + $0xc4] ss:$16 sps:$4 sm:$0xff] (!%p5269_p9)  }
 0x56f   : > { %4008 = vmatpush1.bf16.msra.mxu1 (!%p5269_p9), %v5935_v46  ;;  %v5957_v57 = vld [vmem:[#allocation7 + $0x2c4] ss:$16 sps:$4 sm:$0xff] (!%p5269_p9)   ;;  %v5959_v38 = vld [vmem:[#allocation7 + $0xc0] ss:$16 sps:$4 sm:$0xff] (!%p5269_p9)  }
 0x570   : > { %v2266_v40 = vrot.slane %v2265_v26, 1  ;;  %v2256_v14 = vmax.f32 %v2254_v41, %v2255_v32  ;;  %v2274_v39 = vmax.f32 %v2272_v21, %v2273_v23  ;;  %4009 = vmatprep.subr.bf16.mxu1 (!%p5269_p9), %v5937_v49  ;;  %v5960_v0 = vld [vmem:[#allocation7 + $0x2c0] ss:$16 sps:$4 sm:$0xff] (!%p5269_p9)   ;;  %v5961_v11 = vld [vmem:[#allocation7 + $0xe4] ss:$16 sps:$4 sm:$0xff] (!%p5269_p9)  }
 0x571   : > { %v5963_v25 = vld [vmem:[#allocation7 + $0x2e4] ss:$16 sps:$4 sm:$0xff] (!%p5269_p9)   ;;  %v5965_v51 = vld [vmem:[#allocation7 + $0xe0] ss:$16 sps:$4 sm:$0xff] (!%p5269_p9)  }
 0x572   : > { %v2267_v62 = vmax.f32 %v2265_v26, %v2266_v40  ;;  %v2257_v44 = vrot.slane %v2256_v14, 1  ;;  %v2275_v55 = vrot.slane %v2274_v39, 1  ;;  %v5966_v41 = vld [vmem:[#allocation7 + $0x2e0] ss:$16 sps:$4 sm:$0xff] (!%p5269_p9)   ;;  %v5967_v21 = vld [vmem:[#allocation7 + $0x104] ss:$16 sps:$4 sm:$0xff] (!%p5269_p9)  }
 0x573   : > { %4010 = vmatpush1.bf16.msra.mxu1 (!%p5269_p9), %v5941_v59  ;;  %v5969_v31 = vld [vmem:[#allocation7 + $0x304] ss:$16 sps:$4 sm:$0xff] (!%p5269_p9)   ;;  %v5971_v26 = vld [vmem:[#allocation7 + $0x100] ss:$16 sps:$4 sm:$0xff] (!%p5269_p9)  }
 0x574   : > { %v2258_v28 = vmax.f32 %v2256_v14, %v2257_v44  ;;  %v2276_v56 = vmax.f32 %v2274_v39, %v2275_v55  ;;  %4011 = vmatprep.subr.bf16.mxu1 (!%p5269_p9), %v5943_v1  ;;  %v5972_v32 = vld [vmem:[#allocation7 + $0x300] ss:$16 sps:$4 sm:$0xff] (!%p5269_p9)   ;;  %v5973_v23 = vld [vmem:[#allocation7 + $0x124] ss:$16 sps:$4 sm:$0xff] (!%p5269_p9)  }
 0x575   : > { %v5975_v40 = vld [vmem:[#allocation7 + $0x324] ss:$16 sps:$4 sm:$0xff] (!%p5269_p9)   ;;  %v5977_v14 = vld [vmem:[#allocation7 + $0x120] ss:$16 sps:$4 sm:$0xff] (!%p5269_p9)  }
 0x576   : > { %v2344_v53 = vcombine.low %v2249_v36, %v2258_v28  ;;  %v2345_v54 = vcombine.low %v2267_v62, %v2276_v56  ;;  %v5978_v39 = vld [vmem:[#allocation7 + $0x320] ss:$16 sps:$4 sm:$0xff] (!%p5269_p9)   ;;  %v5979_v36 = vld [vmem:[#allocation7 + $0x144] ss:$16 sps:$4 sm:$0xff] (!%p5269_p9)  }
 0x577   : > { %4012 = vmatpush1.bf16.msra.mxu1 (!%p5269_p9), %v5947_v29  ;;  %v5981_v62 = vld [vmem:[#allocation7 + $0x344] ss:$16 sps:$4 sm:$0xff] (!%p5269_p9)   ;;  %v5983_v44 = vld [vmem:[#allocation7 + $0x140] ss:$16 sps:$4 sm:$0xff] (!%p5269_p9)  }
 0x578   : > { %v2352_v61 = vrot.slane %v2344_v53, %v7141_v22  ;;  %v2359_v8 = vrot.slane %v2345_v54, %v7141_v22  ;;  %4013 = vmatprep.subr.bf16.mxu1 (!%p5269_p9), %v5949_v18  ;;  %v5984_v55 = vld [vmem:[#allocation7 + $0x340] ss:$16 sps:$4 sm:$0xff] (!%p5269_p9)   ;;  %v5985_v28 = vld [vmem:[#allocation7 + $0x164] ss:$16 sps:$4 sm:$0xff] (!%p5269_p9)  }
 0x579   : > { %v5987_v56 = vld [vmem:[#allocation7 + $0x364] ss:$16 sps:$4 sm:$0xff] (!%p5269_p9)   ;;  %v5989_v54 = vld [vmem:[#allocation7 + $0x160] ss:$16 sps:$4 sm:$0xff] (!%p5269_p9)  }
 0x57a   : > { %v2360_v3 = vcombine.low %v2352_v61, %v2359_v8  ;;  %v2391_v53 = vld [vmem:[#allocation2] sm:$0xff] (!%p5269_p9) }
 0x57b   : > { %4014 = vmatpush1.bf16.msra.mxu1 (!%p5269_p9), %v5953_v30  ;;  %v2402_v61 = vrot.slane (!%p5269_p9), %v2391_v53, %v7141_v22  ;;  %v2395_v8 = vcombine.high (!%p5269_p9), %v2391_v53, %v2391_v53  ;;  %v5997_v6 = vld [vmem:[#allocation7 + $0x1a4] ss:$16 sps:$4 sm:$0xff] (!%p5269_p9)   ;;  %v6001_v43 = vld [vmem:[#allocation7 + $0x1a0] ss:$16 sps:$4 sm:$0xff] (!%p5269_p9)  }
 0x57c   : > { %v2376_v45 = vrot.slane %v2360_v3, 7  ;;  %4015 = vmatprep.subr.bf16.mxu1 (!%p5269_p9), %v5955_v63  ;;  %v5990_v3 = vld [vmem:[#allocation7 + $0x360] ss:$16 sps:$4 sm:$0xff] (!%p5269_p9)   ;;  %v5999_v48 = vld [vmem:[#allocation7 + $0x3a4] ss:$16 sps:$4 sm:$0xff] (!%p5269_p9)  }
 0x57d   : > { %v6002_v7 = vld [vmem:[#allocation7 + $0x3a0] ss:$16 sps:$4 sm:$0xff] (!%p5269_p9)   ;;  %v6003_v5 = vld [vmem:[#allocation7 + $0x1c4] ss:$16 sps:$4 sm:$0xff] (!%p5269_p9)   ;;  %v7476_v1 = vpack.c.bf16 (!%p5269_p9), %v2402_v61, %v2402_v61 }
 0x57e   : > { %v2377_v47 = vsel %vm2366_vm8, %v2376_v45, %v2326_v12  ;;  %2390 = sbr.rel (%p5269_p9) target bundleno = 2361 (0x939), region = 160  ;;  %v5930_v12 = vld [vmem:[#allocation7 + $0x220] ss:$16 sps:$4 sm:$0xff] (!%p5269_p9)   ;;  %v6009_v46 = vld [vmem:[#allocation7 + $0x1e4] ss:$16 sps:$4 sm:$0xff] (!%p5269_p9)  }
 0x57f   : > { %v2378_v27 = vsel %vm2368_vm9, %v2376_v45, %v2377_v47  ;;  %4047 = vmatpush1.bf16.msra.mxu0 (!%p5269_p9), %v5930_v12  ;;  %4016 = vmatpush1.bf16.msra.mxu1 (!%p5269_p9), %v5959_v38  ;;  %v5993_v47 = vld [vmem:[#allocation7 + $0x384] ss:$16 sps:$4 sm:$0xff] (!%p5269_p9)   ;;  %v6007_v42 = vld [vmem:[#allocation7 + $0x1c0] ss:$16 sps:$4 sm:$0xff] (!%p5269_p9)  }
 0x580   : > { %v2379_v33 = vsel %vm2370_vm10, %v2376_v45, %v2378_v27  ;;  %4048 = vmatprep.subr.bf16.mxu0 (!%p5269_p9), %v5933_v15  ;;  %4017 = vmatprep.subr.bf16.mxu1 (!%p5269_p9), %v5961_v11  ;;  %v2409_v27 = vrot.slane (!%p5269_p9), %v2395_v8, %v7141_v22  ;;  %v6005_v12 = vld [vmem:[#allocation7 + $0x3c4] ss:$16 sps:$4 sm:$0xff] (!%p5269_p9)   ;;  %v6008_v15 = vld [vmem:[#allocation7 + $0x3c0] ss:$16 sps:$4 sm:$0xff] (!%p5269_p9)  }
 0x581   : > { %v2380_v13 = vsel %vm2372_vm11, %v2376_v45, %v2379_v33  ;;  %v5991_v45 = vld [vmem:[#allocation7 + $0x184] ss:$16 sps:$4 sm:$0xff] (!%p5269_p9)   ;;  %v5995_v33 = vld [vmem:[#allocation7 + $0x180] ss:$16 sps:$4 sm:$0xff] (!%p5269_p9)  }
 0x582   : > { %v2384_v34 = vmax.f32 %v2132_v10, %v2380_v13  ;;  %v2410_v10 = vcombine.high (!%p5269_p9), %v2402_v61, %v2402_v61  ;;  %v6013_v49 = vld [vmem:[#allocation7 + $0x1e0] ss:$16 sps:$4 sm:$0xff] (!%p5269_p9)   ;;  %v6018_v59 = vld [vmem:[#allocation7 + $0x404] ss:$16 sps:$4 sm:$0xff] (!%p5269_p9)   ;;  %v7478_v29 = vpack.c.bf16 (!%p5269_p9), %v2409_v27, %v2409_v27  ;;  %v6063_v61 = vld [vmem:[#allocation7 + $0xec] ss:$16 sps:$4 sm:$0xff] (!%p5269_p9)  }
 0x583   : > { %4049 = vmatpush1.bf16.msra.mxu0 (!%p5269_p9), %v5936_v19  ;;  %4018 = vmatpush1.bf16.msra.mxu1 (!%p5269_p9), %v5965_v51  ;;  %v6011_v19 = vld [vmem:[#allocation7 + $0x3e4] ss:$16 sps:$4 sm:$0xff] (!%p5269_p9)   ;;  %v6022_v30 = vld [vmem:[#allocation7 + $0x420] ss:$16 sps:$4 sm:$0xff] (!%p5269_p9)  }
 0x584   : > { %2386 = vst [vmem:[#allocation2 + $0x8] sm:$0xff] %v2384_v34  ;;  %4050 = vmatprep.subr.bf16.mxu0 (!%p5269_p9), %v5939_v24  ;;  %4019 = vmatprep.subr.bf16.mxu1 (!%p5269_p9), %v5967_v21  ;;  %v2438_v13 = vpack.c.bf16 (!%p5269_p9), %v2410_v10, %v2410_v10  ;;  %v2411_v34 = vcombine.high (!%p5269_p9), %v2409_v27, %v2409_v27  ;;  %v6014_v24 = vld [vmem:[#allocation7 + $0x3e0] ss:$16 sps:$4 sm:$0xff] (!%p5269_p9)   ;;  %v6024_v18 = vld [vmem:[#allocation7 + $0x424] ss:$16 sps:$4 sm:$0xff] (!%p5269_p9)  }
 0x585   : > { %v6030_v63 = vld [vmem:[#allocation7 + $0x444] ss:$16 sps:$4 sm:$0xff]   ;;  %v6028_v38 = vld [vmem:[#allocation7 + $0x440] ss:$16 sps:$4 sm:$0xff]   ;;  %v6069_v10 = vld [vmem:[#allocation7 + $0x10c] ss:$16 sps:$4 sm:$0xff]  }
 0x586   : > { %v7473_v16 = vpack.c.bf16 %v2411_v34, %v2411_v34  ;;  %4035 = vmatprep.mubr.bf16.mxu1 %v2438_v13  ;;  %v6036_v11 = vld [vmem:[#allocation7 + $0x464] ss:$16 sps:$4 sm:$0xff]   ;;  %v6034_v51 = vld [vmem:[#allocation7 + $0x460] ss:$16 sps:$4 sm:$0xff]   ;;  %v6075_v34 = vld [vmem:[#allocation7 + $0x12c] ss:$16 sps:$4 sm:$0xff]  }
 0x587   : > { %4051 = vmatpush1.bf16.msra.mxu0 %v5942_v35  ;;  %4020 = vmatpush1.bf16.msra.mxu1 %v5971_v26  ;;  %v6021_v35 = vld [vmem:[#allocation7 + $0xc] ss:$16 sps:$4 sm:$0xff]   ;;  %v6042_v21 = vld [vmem:[#allocation7 + $0x484] ss:$16 sps:$4 sm:$0xff]   ;;  %v6040_v26 = vld [vmem:[#allocation7 + $0x480] ss:$16 sps:$4 sm:$0xff]  }
 0x588   : > { %4052 = vmatprep.subr.bf16.mxu0 %v5945_v50  ;;  %4021 = vmatprep.subr.bf16.mxu1 %v5973_v23  ;;  %v6016_v50 = vld [vmem:[#allocation7 + $0x400] ss:$16 sps:$4 sm:$0xff]   ;;  %v6048_v23 = vld [vmem:[#allocation7 + $0x4a4] ss:$16 sps:$4 sm:$0xff]  }
 0x589   : > { %4076 = vmatprep.mubr.bf16.mxu0 %v7473_v16  ;;  %v6064_v27 = vld [vmem:[#allocation7 + $0x500] ss:$16 sps:$4 sm:$0xff]  }
 0x58b   : > { %4053 = vmatpush1.bf16.msra.mxu0 %v5948_v20  ;;  %4022 = vmatpush1.bf16.msra.mxu1 %v5977_v14  ;;  %v6019_v20 = vld [vmem:[#allocation7 + $0x8] ss:$16 sps:$4 sm:$0xff]   ;;  %v6046_v14 = vld [vmem:[#allocation7 + $0x4a0] ss:$16 sps:$4 sm:$0xff]  }
 0x58c   : > { %4054 = vmatprep.subr.bf16.mxu0 %v5951_v2  ;;  %4023 = vmatprep.subr.bf16.mxu1 %v5979_v36  ;;  %v6027_v2 = vld [vmem:[#allocation7 + $0x2c] ss:$16 sps:$4 sm:$0xff]   ;;  %v6054_v36 = vld [vmem:[#allocation7 + $0x4c4] ss:$16 sps:$4 sm:$0xff]  }
 0x58f   : > { %4055 = vmatpush1.bf16.msra.mxu0 %v5954_v52  ;;  %4024 = vmatpush1.bf16.msra.mxu1 %v5983_v44  ;;  %v6025_v52 = vld [vmem:[#allocation7 + $0x28] ss:$16 sps:$4 sm:$0xff]  }
 0x590   : > { %4056 = vmatprep.subr.bf16.mxu0 %v5957_v57  ;;  %4025 = vmatprep.subr.bf16.mxu1 %v5985_v28  ;;  %v6033_v57 = vld [vmem:[#allocation7 + $0x4c] ss:$16 sps:$4 sm:$0xff]   ;;  %v6052_v28 = vld [vmem:[#allocation7 + $0x4c0] ss:$16 sps:$4 sm:$0xff]  }
 0x591   : > { %v7482_v44 = vld [vmem:[#allocation2 + $0x8] sm:$0xff] }
 0x593   : > { %4057 = vmatpush1.bf16.msra.mxu0 %v5960_v0  ;;  %4026 = vmatpush1.bf16.msra.mxu1 %v5989_v54  ;;  %v6031_v0 = vld [vmem:[#allocation7 + $0x48] ss:$16 sps:$4 sm:$0xff]   ;;  %v6060_v54 = vld [vmem:[#allocation7 + $0x4e4] ss:$16 sps:$4 sm:$0xff]  }
 0x594   : > { %4058 = vmatprep.subr.bf16.mxu0 %v5963_v25  ;;  %4027 = vmatprep.subr.bf16.mxu1 %v5991_v45  ;;  %v6039_v25 = vld [vmem:[#allocation7 + $0x6c] ss:$16 sps:$4 sm:$0xff]   ;;  %v6061_v45 = vld [vmem:[#allocation7 + $0xe8] ss:$16 sps:$4 sm:$0xff]  }
 0x597   : > { %4059 = vmatpush1.bf16.msra.mxu0 %v5966_v41  ;;  %4028 = vmatpush1.bf16.msra.mxu1 %v5995_v33  ;;  %v6037_v41 = vld [vmem:[#allocation7 + $0x68] ss:$16 sps:$4 sm:$0xff]  }
 0x598   : > { %4060 = vmatprep.subr.bf16.mxu0 %v5969_v31  ;;  %4029 = vmatprep.subr.bf16.mxu1 %v5997_v6  ;;  %v6045_v31 = vld [vmem:[#allocation7 + $0x8c] ss:$16 sps:$4 sm:$0xff]   ;;  %v6067_v33 = vld [vmem:[#allocation7 + $0x108] ss:$16 sps:$4 sm:$0xff]  }
 0x599   : > { %v6073_v6 = vld [vmem:[#allocation7 + $0x128] ss:$16 sps:$4 sm:$0xff]  }
 0x59b   : > { %4061 = vmatpush1.bf16.msra.mxu0 %v5972_v32  ;;  %4030 = vmatpush1.bf16.msra.mxu1 %v6001_v43  ;;  %v6043_v32 = vld [vmem:[#allocation7 + $0x88] ss:$16 sps:$4 sm:$0xff]   ;;  %v6081_v43 = vld [vmem:[#allocation7 + $0x14c] ss:$16 sps:$4 sm:$0xff]  }
 0x59c   : > { %4062 = vmatprep.subr.bf16.mxu0 %v5975_v40  ;;  %4031 = vmatprep.subr.bf16.mxu1 %v6003_v5  ;;  %v6051_v40 = vld [vmem:[#allocation7 + $0xac] ss:$16 sps:$4 sm:$0xff]   ;;  %v6079_v5 = vld [vmem:[#allocation7 + $0x148] ss:$16 sps:$4 sm:$0xff]  }
 0x59f   : > { %4063 = vmatpush1.bf16.msra.mxu0 %v5978_v39  ;;  %4032 = vmatpush1.bf16.msra.mxu1 %v6007_v42  ;;  %v6049_v39 = vld [vmem:[#allocation7 + $0xa8] ss:$16 sps:$4 sm:$0xff]   ;;  %v6087_v42 = vld [vmem:[#allocation7 + $0x16c] ss:$16 sps:$4 sm:$0xff]  }
 0x5a0   : > { %4064 = vmatprep.subr.bf16.mxu0 %v5981_v62  ;;  %4033 = vmatprep.subr.bf16.mxu1 %v6009_v46  ;;  %v6057_v62 = vld [vmem:[#allocation7 + $0xcc] ss:$16 sps:$4 sm:$0xff]   ;;  %v6085_v46 = vld [vmem:[#allocation7 + $0x168] ss:$16 sps:$4 sm:$0xff]  }
 0x5a3   : > { %4065 = vmatpush1.bf16.msra.mxu0 %v5984_v55  ;;  %4034 = vmatpush1.bf16.msra.mxu1 %v6013_v49  ;;  %v7486_v55 = vrot.slane %v7482_v44, %v7141_v22  ;;  %v6093_v49 = vld [vmem:[#allocation7 + $0x18c] ss:$16 sps:$4 sm:$0xff]  }
 0x5a4   : > { %4066 = vmatprep.subr.bf16.mxu0 %v5987_v56  ;;  %4167 = vmatprep.subr.bf16.mxu1 %v6021_v35  ;;  %v6055_v56 = vld [vmem:[#allocation7 + $0xc8] ss:$16 sps:$4 sm:$0xff]   ;;  %v6096_v35 = vld [vmem:[#allocation7 + $0x5a4] ss:$16 sps:$4 sm:$0xff]  }
 0x5a5   : > { %v2427_v53 = vcombine.high %v7486_v55, %v7486_v55 }
 0x5a6   : > { %4036 = vmatmul.mubr.bf16.vlgmr.msra.gmra.mrb[0].mxu1 %v7476_v1 }
 0x5a7   : > { %4067 = vmatpush1.bf16.msra.mxu0 %v5990_v3  ;;  %4168 = vmatpush1.bf16.msra.mxu1 %v6019_v20  ;;  %v7490_v8 = vpack.c.bf16 %v2427_v53, %v2427_v53  ;;  %v6058_v3 = vld [vmem:[#allocation7 + $0x4e0] ss:$16 sps:$4 sm:$0xff]  }
 0x5a8   : > { %4068 = vmatprep.subr.bf16.mxu0 %v5993_v47  ;;  %4169 = vmatprep.subr.bf16.mxu1 %v6027_v2  ;;  %v6066_v47 = vld [vmem:[#allocation7 + $0x504] ss:$16 sps:$4 sm:$0xff]   ;;  %v6094_v20 = vld [vmem:[#allocation7 + $0x5a0] ss:$16 sps:$4 sm:$0xff]  }
 0x5a9   : > { %4199 = vmatprep.mubr.bf16.mxu1 %v2438_v13  ;;  %v6072_v13 = vld [vmem:[#allocation7 + $0x524] ss:$16 sps:$4 sm:$0xff]   ;;  %v6130_v53 = vld [vmem:[#allocation7 + $0x660] ss:$16 sps:$4 sm:$0xff]  }
 0x5aa   : > { %v6102_v2 = vld [vmem:[#allocation7 + $0x5c4] ss:$16 sps:$4 sm:$0xff]  }
 0x5ab   : > { %4069 = vmatpush1.bf16.msra.mxu0 %v5996_v4  ;;  %4170 = vmatpush1.bf16.msra.mxu1 %v6025_v52  ;;  %v6070_v4 = vld [vmem:[#allocation7 + $0x520] ss:$16 sps:$4 sm:$0xff]   ;;  %v2412_v52 = vcombine.high %v7482_v44, %v7482_v44  ;;  %v6129_v44 = vld [vmem:[#allocation7 + $0x24c] ss:$16 sps:$4 sm:$0xff]  }
 0x5ac   : > { %4070 = vmatprep.subr.bf16.mxu0 %v5999_v48  ;;  %4171 = vmatprep.subr.bf16.mxu1 %v6033_v57  ;;  %v6078_v48 = vld [vmem:[#allocation7 + $0x544] ss:$16 sps:$4 sm:$0xff]   ;;  %v6103_v57 = vld [vmem:[#allocation7 + $0x1c8] ss:$16 sps:$4 sm:$0xff]  }
 0x5af   : > { %4071 = vmatpush1.bf16.msra.mxu0 %v6002_v7  ;;  %4172 = vmatpush1.bf16.msra.mxu1 %v6031_v0  ;;  %v6076_v7 = vld [vmem:[#allocation7 + $0x540] ss:$16 sps:$4 sm:$0xff]   ;;  %v6111_v0 = vld [vmem:[#allocation7 + $0x1ec] ss:$16 sps:$4 sm:$0xff]  }
 0x5b0   : > { %4072 = vmatprep.subr.bf16.mxu0 %v6005_v12  ;;  %4173 = vmatprep.subr.bf16.mxu1 %v6039_v25  ;;  %v6084_v12 = vld [vmem:[#allocation7 + $0x564] ss:$16 sps:$4 sm:$0xff]   ;;  %v6106_v25 = vld [vmem:[#allocation7 + $0x5e0] ss:$16 sps:$4 sm:$0xff]  }
 0x5b3   : > { %4073 = vmatpush1.bf16.msra.mxu0 %v6008_v15  ;;  %4174 = vmatpush1.bf16.msra.mxu1 %v6037_v41  ;;  %v6082_v15 = vld [vmem:[#allocation7 + $0x560] ss:$16 sps:$4 sm:$0xff]   ;;  %v6114_v41 = vld [vmem:[#allocation7 + $0x604] ss:$16 sps:$4 sm:$0xff]  }
 0x5b4   : > { %4074 = vmatprep.subr.bf16.mxu0 %v6011_v19  ;;  %4175 = vmatprep.subr.bf16.mxu1 %v6045_v31  ;;  %v6090_v19 = vld [vmem:[#allocation7 + $0x584] ss:$16 sps:$4 sm:$0xff]  }
 0x5b7   : > { %4075 = vmatpush1.bf16.msra.mxu0 %v6014_v24  ;;  %4176 = vmatpush1.bf16.msra.mxu1 %v6043_v32  ;;  %v6088_v24 = vld [vmem:[#allocation7 + $0x580] ss:$16 sps:$4 sm:$0xff]  }
 0x5b8   : > { %4085 = vmatprep.subr.bf16.mxu0 %v6018_v59  ;;  %4177 = vmatprep.subr.bf16.mxu1 %v6051_v40  ;;  %v6091_v59 = vld [vmem:[#allocation7 + $0x188] ss:$16 sps:$4 sm:$0xff]   ;;  %v6112_v32 = vld [vmem:[#allocation7 + $0x600] ss:$16 sps:$4 sm:$0xff]   ;;  %v6123_v40 = vld [vmem:[#allocation7 + $0x22c] ss:$16 sps:$4 sm:$0xff]  }
 0x5ba   : > { %4077 = vmatmul.mubr.bf16.vlgmr.msra.gmra.mrb[0].mxu0 %v7478_v29 }
 0x5bb   : > { %4086 = vmatpush1.bf16.msra.mxu0 %v6016_v50  ;;  %4178 = vmatpush1.bf16.msra.mxu1 %v6049_v39  ;;  %v6099_v50 = vld [vmem:[#allocation7 + $0x1ac] ss:$16 sps:$4 sm:$0xff]   ;;  %v6118_v39 = vld [vmem:[#allocation7 + $0x620] ss:$16 sps:$4 sm:$0xff]  }
 0x5bc   : > { %4087 = vmatprep.subr.bf16.mxu0 %v6024_v18  ;;  %4179 = vmatprep.subr.bf16.mxu1 %v6057_v62  ;;  %v6097_v18 = vld [vmem:[#allocation7 + $0x1a8] ss:$16 sps:$4 sm:$0xff]   ;;  %v6126_v62 = vld [vmem:[#allocation7 + $0x644] ss:$16 sps:$4 sm:$0xff]  }
 0x5bd   : > { %4117 = vmatprep.mubr.bf16.mxu0 %v7490_v8 }
 0x5bf   : > { %4088 = vmatpush1.bf16.msra.mxu0 %v6022_v30  ;;  %4180 = vmatpush1.bf16.msra.mxu1 %v6055_v56  ;;  %v6105_v30 = vld [vmem:[#allocation7 + $0x1cc] ss:$16 sps:$4 sm:$0xff]   ;;  %v6132_v56 = vld [vmem:[#allocation7 + $0x664] ss:$16 sps:$4 sm:$0xff]  }
 0x5c0   : > { %4089 = vmatprep.subr.bf16.mxu0 %v6030_v63  ;;  %4181 = vmatprep.subr.bf16.mxu1 %v6063_v61  ;;  %v6100_v63 = vld [vmem:[#allocation7 + $0x5c0] ss:$16 sps:$4 sm:$0xff]   ;;  %v6138_v61 = vld [vmem:[#allocation7 + $0x684] ss:$16 sps:$4 sm:$0xff]  }
 0x5c3   : > { %4090 = vmatpush1.bf16.msra.mxu0 %v6028_v38  ;;  %4182 = vmatpush1.bf16.msra.mxu1 %v6061_v45  ;;  %v6108_v38 = vld [vmem:[#allocation7 + $0x5e4] ss:$16 sps:$4 sm:$0xff]   ;;  %v6136_v45 = vld [vmem:[#allocation7 + $0x680] ss:$16 sps:$4 sm:$0xff]  }
 0x5c4   : > { %4091 = vmatprep.subr.bf16.mxu0 %v6036_v11  ;;  %4183 = vmatprep.subr.bf16.mxu1 %v6069_v10  ;;  %v7496_v11 = vrot.slane %v2412_v52, %v7141_v22  ;;  %v6115_v22 = vld [vmem:[#allocation7 + $0x208] ss:$16 sps:$4 sm:$0xff]   ;;  %v6147_v10 = vld [vmem:[#allocation7 + $0x2ac] ss:$16 sps:$4 sm:$0xff]   ;;  %v6178_v52 = vld [vmem:[#allocation7 + $0x760] ss:$16 sps:$4 sm:$0xff]  }
 0x5c6   : > { %v2428_v31 = vcombine.high %v7496_v11, %v7496_v11 }
 0x5c7   : > { %4092 = vmatpush1.bf16.msra.mxu0 %v6034_v51  ;;  %4184 = vmatpush1.bf16.msra.mxu1 %v6067_v33  ;;  %v6109_v51 = vld [vmem:[#allocation7 + $0x1e8] ss:$16 sps:$4 sm:$0xff]  }
 0x5c8   : > { %4093 = vmatprep.subr.bf16.mxu0 %v6042_v21  ;;  %4185 = vmatprep.subr.bf16.mxu1 %v6075_v34  ;;  %v6117_v21 = vld [vmem:[#allocation7 + $0x20c] ss:$16 sps:$4 sm:$0xff]   ;;  %v6145_v33 = vld [vmem:[#allocation7 + $0x2a8] ss:$16 sps:$4 sm:$0xff]  }
 0x5c9   : > { %v6153_v34 = vld [vmem:[#allocation7 + $0x2cc] ss:$16 sps:$4 sm:$0xff]  }
 0x5cb   : > { %4094 = vmatpush1.bf16.msra.mxu0 %v6040_v26  ;;  %4186 = vmatpush1.bf16.msra.mxu1 %v6073_v6  ;;  %v7502_v26 = vpack.c.bf16 %v7486_v55, %v7486_v55  ;;  %v6124_v55 = vld [vmem:[#allocation7 + $0x640] ss:$16 sps:$4 sm:$0xff]   ;;  %v6151_v6 = vld [vmem:[#allocation7 + $0x2c8] ss:$16 sps:$4 sm:$0xff]  }
 0x5cc   : > { %4095 = vmatprep.subr.bf16.mxu0 %v6048_v23  ;;  %4187 = vmatprep.subr.bf16.mxu1 %v6081_v43  ;;  %v6120_v23 = vld [vmem:[#allocation7 + $0x624] ss:$16 sps:$4 sm:$0xff]   ;;  %v6159_v43 = vld [vmem:[#allocation7 + $0x2ec] ss:$16 sps:$4 sm:$0xff]  }
 0x5cf   : > { %4096 = vmatpush1.bf16.msra.mxu0 %v6046_v14  ;;  %4188 = vmatpush1.bf16.msra.mxu1 %v6079_v5  ;;  %v7504_v14 = vpack.c.bf16 %v2428_v31, %v2428_v31  ;;  %v6157_v5 = vld [vmem:[#allocation7 + $0x2e8] ss:$16 sps:$4 sm:$0xff]  }
 0x5d0   : > { %4097 = vmatprep.subr.bf16.mxu0 %v6054_v36  ;;  %4189 = vmatprep.subr.bf16.mxu1 %v6087_v42  ;;  %v6121_v36 = vld [vmem:[#allocation7 + $0x228] ss:$16 sps:$4 sm:$0xff]   ;;  %v6165_v42 = vld [vmem:[#allocation7 + $0x30c] ss:$16 sps:$4 sm:$0xff]  }
 0x5d1   : > { %v6193_v31 = vld [vmem:[#allocation7 + $0x3a8] ss:$16 sps:$4 sm:$0xff]  }
 0x5d3   : > { %4098 = vmatpush1.bf16.msra.mxu0 %v6052_v28  ;;  %4190 = vmatpush1.bf16.msra.mxu1 %v6085_v46  ;;  %v6127_v28 = vld [vmem:[#allocation7 + $0x248] ss:$16 sps:$4 sm:$0xff]  }
 0x5d4   : > { %4099 = vmatprep.subr.bf16.mxu0 %v6060_v54  ;;  %4191 = vmatprep.subr.bf16.mxu1 %v6093_v49  ;;  %v6133_v54 = vld [vmem:[#allocation7 + $0x268] ss:$16 sps:$4 sm:$0xff]   ;;  %v6171_v49 = vld [vmem:[#allocation7 + $0x32c] ss:$16 sps:$4 sm:$0xff]  }
 0x5d5   : > { %v6163_v46 = vld [vmem:[#allocation7 + $0x308] ss:$16 sps:$4 sm:$0xff]  }
 0x5d7   : > { %4100 = vmatpush1.bf16.msra.mxu0 %v6058_v3  ;;  %4192 = vmatpush1.bf16.msra.mxu1 %v6091_v59  ;;  %v6141_v3 = vld [vmem:[#allocation7 + $0x28c] ss:$16 sps:$4 sm:$0xff]   ;;  %v6169_v59 = vld [vmem:[#allocation7 + $0x328] ss:$16 sps:$4 sm:$0xff]  }
 0x5d8   : > { %4101 = vmatprep.subr.bf16.mxu0 %v6066_v47  ;;  %4193 = vmatprep.subr.bf16.mxu1 %v6099_v50  ;;  %v6144_v47 = vld [vmem:[#allocation7 + $0x6a4] ss:$16 sps:$4 sm:$0xff]   ;;  %v6177_v50 = vld [vmem:[#allocation7 + $0x34c] ss:$16 sps:$4 sm:$0xff]  }
 0x5db   : > { %4102 = vmatpush1.bf16.msra.mxu0 %v6064_v27  ;;  %4194 = vmatpush1.bf16.msra.mxu1 %v6097_v18  ;;  %v6142_v27 = vld [vmem:[#allocation7 + $0x6a0] ss:$16 sps:$4 sm:$0xff]   ;;  %v6175_v18 = vld [vmem:[#allocation7 + $0x348] ss:$16 sps:$4 sm:$0xff]  }
 0x5dc   : > { %4103 = vmatprep.subr.bf16.mxu0 %v6072_v13  ;;  %4195 = vmatprep.subr.bf16.mxu1 %v6105_v30  ;;  %v6150_v13 = vld [vmem:[#allocation7 + $0x6c4] ss:$16 sps:$4 sm:$0xff]   ;;  %v6183_v30 = vld [vmem:[#allocation7 + $0x36c] ss:$16 sps:$4 sm:$0xff]  }
 0x5df   : > { %4104 = vmatpush1.bf16.msra.mxu0 %v6070_v4  ;;  %4196 = vmatpush1.bf16.msra.mxu1 %v6103_v57  ;;  %v6148_v4 = vld [vmem:[#allocation7 + $0x6c0] ss:$16 sps:$4 sm:$0xff]   ;;  %v6186_v57 = vld [vmem:[#allocation7 + $0x784] ss:$16 sps:$4 sm:$0xff]  }
 0x5e0   : > { %4105 = vmatprep.subr.bf16.mxu0 %v6078_v48  ;;  %4197 = vmatprep.subr.bf16.mxu1 %v6111_v0  ;;  %v6156_v48 = vld [vmem:[#allocation7 + $0x6e4] ss:$16 sps:$4 sm:$0xff]   ;;  %v6184_v0 = vld [vmem:[#allocation7 + $0x780] ss:$16 sps:$4 sm:$0xff]  }
 0x5e3   : > { %4106 = vmatpush1.bf16.msra.mxu0 %v6076_v7  ;;  %4198 = vmatpush1.bf16.msra.mxu1 %v6109_v51  ;;  %v6154_v7 = vld [vmem:[#allocation7 + $0x6e0] ss:$16 sps:$4 sm:$0xff]   ;;  %v6192_v51 = vld [vmem:[#allocation7 + $0x7a4] ss:$16 sps:$4 sm:$0xff]  }
 0x5e4   : > { %4107 = vmatprep.subr.bf16.mxu0 %v6084_v12  ;;  %4208 = vmatprep.subr.bf16.mxu1 %v6117_v21  ;;  %v6162_v12 = vld [vmem:[#allocation7 + $0x704] ss:$16 sps:$4 sm:$0xff]   ;;  %v6190_v21 = vld [vmem:[#allocation7 + $0x7a0] ss:$16 sps:$4 sm:$0xff]  }
 0x5e6   : > { %4200 = vmatmul.mubr.bf16.vlgmr.msra.gmra.mrb[4].mxu1 %v7476_v1  ;;  %v6135_v1 = vld [vmem:[#allocation7 + $0x26c] ss:$16 sps:$4 sm:$0xff]  }
 0x5e7   : > { %4108 = vmatpush1.bf16.msra.mxu0 %v6082_v15  ;;  %4209 = vmatpush1.bf16.msra.mxu1 %v6115_v22  ;;  %v6160_v15 = vld [vmem:[#allocation7 + $0x700] ss:$16 sps:$4 sm:$0xff]   ;;  %v6201_v22 = vld [vmem:[#allocation7 + $0x3cc] ss:$16 sps:$4 sm:$0xff]  }
 0x5e8   : > { %4109 = vmatprep.subr.bf16.mxu0 %v6090_v19  ;;  %4210 = vmatprep.subr.bf16.mxu1 %v6123_v40  ;;  %v6168_v19 = vld [vmem:[#allocation7 + $0x724] ss:$16 sps:$4 sm:$0xff]   ;;  %v6199_v40 = vld [vmem:[#allocation7 + $0x3c8] ss:$16 sps:$4 sm:$0xff]  }
 0x5e9   : > { %4240 = vmatprep.mubr.bf16.mxu1 %v7473_v16  ;;  %v6139_v16 = vld [vmem:[#allocation7 + $0x288] ss:$16 sps:$4 sm:$0xff]  }
 0x5eb   : > { %4110 = vmatpush1.bf16.msra.mxu0 %v6088_v24  ;;  %4211 = vmatpush1.bf16.msra.mxu1 %v6121_v36  ;;  %v6166_v24 = vld [vmem:[#allocation7 + $0x720] ss:$16 sps:$4 sm:$0xff]   ;;  %v6207_v36 = vld [vmem:[#allocation7 + $0x3ec] ss:$16 sps:$4 sm:$0xff]  }
 0x5ec   : > { %4111 = vmatprep.subr.bf16.mxu0 %v6096_v35  ;;  %4212 = vmatprep.subr.bf16.mxu1 %v6129_v44  ;;  %v6174_v35 = vld [vmem:[#allocation7 + $0x744] ss:$16 sps:$4 sm:$0xff]   ;;  %v6205_v44 = vld [vmem:[#allocation7 + $0x3e8] ss:$16 sps:$4 sm:$0xff]  }
 0x5ef   : > { %4112 = vmatpush1.bf16.msra.mxu0 %v6094_v20  ;;  %4213 = vmatpush1.bf16.msra.mxu1 %v6127_v28  ;;  %v6172_v20 = vld [vmem:[#allocation7 + $0x740] ss:$16 sps:$4 sm:$0xff]   ;;  %v6209_v28 = vld [vmem:[#allocation7 + $0x408] ss:$16 sps:$4 sm:$0xff]  }
 0x5f0   : > { %4113 = vmatprep.subr.bf16.mxu0 %v6102_v2  ;;  %4214 = vmatprep.subr.bf16.mxu1 %v6135_v1  ;;  %v6180_v2 = vld [vmem:[#allocation7 + $0x764] ss:$16 sps:$4 sm:$0xff]   ;;  %v6214_v1 = vld [vmem:[#allocation7 + $0x42c] ss:$16 sps:$4 sm:$0xff]  }
 0x5f3   : > { %4114 = vmatpush1.bf16.msra.mxu0 %v6100_v63  ;;  %4215 = vmatpush1.bf16.msra.mxu1 %v6133_v54  ;;  %v6181_v63 = vld [vmem:[#allocation7 + $0x368] ss:$16 sps:$4 sm:$0xff]   ;;  %v6307_v54 = vld [vmem:[#allocation9 + $0x4] ss:$8 sps:$4 sm:$0xff]  }
 0x5f4   : > { %4115 = vmatprep.subr.bf16.mxu0 %v6108_v38  ;;  %4216 = vmatprep.subr.bf16.mxu1 %v6141_v3  ;;  %v6189_v38 = vld [vmem:[#allocation7 + $0x38c] ss:$16 sps:$4 sm:$0xff]  }
 0x5f5   : > { %v6310_v3 = vld [vmem:[#allocation9 + $0x14] ss:$8 sps:$4 sm:$0xff]  }
 0x5f7   : > { %4116 = vmatpush1.bf16.msra.mxu0 %v6106_v25  ;;  %4217 = vmatpush1.bf16.msra.mxu1 %v6139_v16  ;;  %v6187_v25 = vld [vmem:[#allocation7 + $0x388] ss:$16 sps:$4 sm:$0xff]   ;;  %v6313_v16 = vld [vmem:[#allocation9 + $0x24] ss:$8 sps:$4 sm:$0xff]  }
 0x5f8   : > { %4126 = vmatprep.subr.bf16.mxu0 %v6114_v41  ;;  %4218 = vmatprep.subr.bf16.mxu1 %v6147_v10  ;;  %v6195_v41 = vld [vmem:[#allocation7 + $0x3ac] ss:$16 sps:$4 sm:$0xff]  }
 0x5f9   : > { %v6220_v10 = vld [vmem:[#allocation7 + $0x46c] ss:$16 sps:$4 sm:$0xff]  }
 0x5fa   : > { %4118 = vmatmul.mubr.bf16.vlgmr.msra.gmra.mrb[0].mxu0 %v7502_v26 }
 0x5fb   : > { %4127 = vmatpush1.bf16.msra.mxu0 %v6112_v32  ;;  %4158 = vmatprep.mubr.bf16.mxu0 %v7504_v14  ;;  %v6198_v32 = vld [vmem:[#allocation7 + $0x7c4] ss:$16 sps:$4 sm:$0xff]  }
 0x5fc   : > { %4128 = vmatprep.subr.bf16.mxu0 %v6120_v23  ;;  %4219 = vmatpush1.bf16.msra.mxu1 %v6145_v33  ;;  %v6196_v23 = vld [vmem:[#allocation7 + $0x7c0] ss:$16 sps:$4 sm:$0xff]   ;;  %v6223_v33 = vld [vmem:[#allocation7 + $0x48c] ss:$16 sps:$4 sm:$0xff]  }
 0x5fd   : > { %4220 = vmatprep.subr.bf16.mxu1 %v6153_v34  ;;  %v6319_v34 = vld [vmem:[#allocation9 + $0x44] ss:$8 sps:$4 sm:$0xff]  }
 0x5ff   : > { %4129 = vmatpush1.bf16.msra.mxu0 %v6118_v39  ;;  %v6204_v39 = vld [vmem:[#allocation7 + $0x7e4] ss:$16 sps:$4 sm:$0xff]  }
 0x600   : > { %4130 = vmatprep.subr.bf16.mxu0 %v6126_v62  ;;  %4221 = vmatpush1.bf16.msra.mxu1 %v6151_v6  ;;  %v6202_v62 = vld [vmem:[#allocation7 + $0x7e0] ss:$16 sps:$4 sm:$0xff]   ;;  %v6226_v6 = vld [vmem:[#allocation7 + $0x4ac] ss:$16 sps:$4 sm:$0xff]  }
 0x601   : > { %4222 = vmatprep.subr.bf16.mxu1 %v6159_v43  ;;  %v6322_v43 = vld [vmem:[#allocation9 + $0x54] ss:$8 sps:$4 sm:$0xff]  }
 0x603   : > { %4131 = vmatpush1.bf16.msra.mxu0 %v6124_v55  ;;  %v6211_v55 = vld [vmem:[#allocation7 + $0x40c] ss:$16 sps:$4 sm:$0xff]  }
 0x604   : > { %4132 = vmatprep.subr.bf16.mxu0 %v6132_v56  ;;  %4223 = vmatpush1.bf16.msra.mxu1 %v6157_v5  ;;  %v7512_v56 = vpack.c.bf16 %v7496_v11, %v7496_v11  ;;  %v6308_v11 = vld [vmem:[#allocation9 + $0x10] ss:$8 sps:$4 sm:$0xff]   ;;  %v6229_v5 = vld [vmem:[#allocation7 + $0x4cc] ss:$16 sps:$4 sm:$0xff]  }
 0x605   : > { %4224 = vmatprep.subr.bf16.mxu1 %v6165_v42  ;;  %v6325_v42 = vld [vmem:[#allocation9 + $0x64] ss:$8 sps:$4 sm:$0xff]  }
 0x607   : > { %4133 = vmatpush1.bf16.msra.mxu0 %v6130_v53  ;;  %v6305_v53 = vld [vmem:[#allocation9] ss:$8 sps:$4 sm:$0xff]  }
 0x608   : > { %4134 = vmatprep.subr.bf16.mxu0 %v6138_v61  ;;  %4225 = vmatpush1.bf16.msra.mxu1 %v6163_v46  ;;  %v6212_v61 = vld [vmem:[#allocation7 + $0x428] ss:$16 sps:$4 sm:$0xff]   ;;  %v6232_v46 = vld [vmem:[#allocation7 + $0x4ec] ss:$16 sps:$4 sm:$0xff]  }
 0x609   : > { %4226 = vmatprep.subr.bf16.mxu1 %v6171_v49  ;;  %v6328_v49 = vld [vmem:[#allocation9 + $0x74] ss:$8 sps:$4 sm:$0xff]  }
 0x60b   : > { %4135 = vmatpush1.bf16.msra.mxu0 %v6136_v45  ;;  %v6217_v45 = vld [vmem:[#allocation7 + $0x44c] ss:$16 sps:$4 sm:$0xff]  }
 0x60c   : > { %4136 = vmatprep.subr.bf16.mxu0 %v6144_v47  ;;  %4227 = vmatpush1.bf16.msra.mxu1 %v6169_v59  ;;  %v6215_v47 = vld [vmem:[#allocation7 + $0x448] ss:$16 sps:$4 sm:$0xff]   ;;  %v6235_v59 = vld [vmem:[#allocation7 + $0x50c] ss:$16 sps:$4 sm:$0xff]  }
 0x60d   : > { %4228 = vmatprep.subr.bf16.mxu1 %v6177_v50  ;;  %v6331_v50 = vld [vmem:[#allocation9 + $0x84] ss:$8 sps:$4 sm:$0xff]  }
 0x60f   : > { %4137 = vmatpush1.bf16.msra.mxu0 %v6142_v27  ;;  %v6218_v27 = vld [vmem:[#allocation7 + $0x468] ss:$16 sps:$4 sm:$0xff]  }
 0x610   : > { %4138 = vmatprep.subr.bf16.mxu0 %v6150_v13  ;;  %4229 = vmatpush1.bf16.msra.mxu1 %v6175_v18  ;;  %v6316_v13 = vld [vmem:[#allocation9 + $0x34] ss:$8 sps:$4 sm:$0xff]  }
 0x611   : > { %4230 = vmatprep.subr.bf16.mxu1 %v6183_v30  ;;  %v6238_v18 = vld [vmem:[#allocation7 + $0x52c] ss:$16 sps:$4 sm:$0xff]  }
 0x612   : > { %v6334_v30 = vld [vmem:[#allocation9 + $0x94] ss:$8 sps:$4 sm:$0xff]  }
 0x613   : > { %4139 = vmatpush1.bf16.msra.mxu0 %v6148_v4  ;;  %v6221_v4 = vld [vmem:[#allocation7 + $0x488] ss:$16 sps:$4 sm:$0xff]  }
 0x614   : > { %4140 = vmatprep.subr.bf16.mxu0 %v6156_v48  ;;  %4231 = vmatpush1.bf16.msra.mxu1 %v6181_v63  ;;  %v6317_v48 = vld [vmem:[#allocation9 + $0x40] ss:$8 sps:$4 sm:$0xff]   ;;  %v6241_v63 = vld [vmem:[#allocation7 + $0x54c] ss:$16 sps:$4 sm:$0xff]  }
 0x615   : > { %4232 = vmatprep.subr.bf16.mxu1 %v6189_v38  ;;  %v6337_v38 = vld [vmem:[#allocation9 + $0xa4] ss:$8 sps:$4 sm:$0xff]  }
 0x617   : > { %4141 = vmatpush1.bf16.msra.mxu0 %v6154_v7  ;;  %v6224_v7 = vld [vmem:[#allocation7 + $0x4a8] ss:$16 sps:$4 sm:$0xff]  }
 0x618   : > { %4142 = vmatprep.subr.bf16.mxu0 %v6162_v12  ;;  %4233 = vmatpush1.bf16.msra.mxu1 %v6187_v25  ;;  %v6320_v12 = vld [vmem:[#allocation9 + $0x50] ss:$8 sps:$4 sm:$0xff]   ;;  %v6244_v25 = vld [vmem:[#allocation7 + $0x56c] ss:$16 sps:$4 sm:$0xff]  }
 0x619   : > { %4234 = vmatprep.subr.bf16.mxu1 %v6195_v41  ;;  %v6340_v41 = vld [vmem:[#allocation9 + $0xb4] ss:$8 sps:$4 sm:$0xff]  }
 0x61b   : > { %4143 = vmatpush1.bf16.msra.mxu0 %v6160_v15  ;;  %v6227_v15 = vld [vmem:[#allocation7 + $0x4c8] ss:$16 sps:$4 sm:$0xff]  }
 0x61c   : > { %4144 = vmatprep.subr.bf16.mxu0 %v6168_v19  ;;  %4235 = vmatpush1.bf16.msra.mxu1 %v6193_v31  ;;  %v6323_v19 = vld [vmem:[#allocation9 + $0x60] ss:$8 sps:$4 sm:$0xff]   ;;  %v6247_v31 = vld [vmem:[#allocation7 + $0x58c] ss:$16 sps:$4 sm:$0xff]  }
 0x61d   : > { %4236 = vmatprep.subr.bf16.mxu1 %v6201_v22  ;;  %v6343_v22 = vld [vmem:[#allocation9 + $0xc4] ss:$8 sps:$4 sm:$0xff]  }
 0x61f   : > { %4145 = vmatpush1.bf16.msra.mxu0 %v6166_v24  ;;  %v6230_v24 = vld [vmem:[#allocation7 + $0x4e8] ss:$16 sps:$4 sm:$0xff]  }
 0x620   : > { %4146 = vmatprep.subr.bf16.mxu0 %v6174_v35  ;;  %4237 = vmatpush1.bf16.msra.mxu1 %v6199_v40  ;;  %v6326_v35 = vld [vmem:[#allocation9 + $0x70] ss:$8 sps:$4 sm:$0xff]   ;;  %v6250_v40 = vld [vmem:[#allocation7 + $0x5ac] ss:$16 sps:$4 sm:$0xff]  }
 0x621   : > { %4238 = vmatprep.subr.bf16.mxu1 %v6207_v36  ;;  %v6346_v36 = vld [vmem:[#allocation9 + $0xd4] ss:$8 sps:$4 sm:$0xff]  }
 0x623   : > { %4147 = vmatpush1.bf16.msra.mxu0 %v6172_v20  ;;  %v6233_v20 = vld [vmem:[#allocation7 + $0x508] ss:$16 sps:$4 sm:$0xff]  }
 0x624   : > { %4148 = vmatprep.subr.bf16.mxu0 %v6180_v2  ;;  %4239 = vmatpush1.bf16.msra.mxu1 %v6205_v44  ;;  %v6329_v2 = vld [vmem:[#allocation9 + $0x80] ss:$8 sps:$4 sm:$0xff]   ;;  %v6253_v44 = vld [vmem:[#allocation7 + $0x5cc] ss:$16 sps:$4 sm:$0xff]  }
 0x625   : > { %4249 = vmatprep.subr.bf16.mxu1 %v6211_v55  ;;  %v6344_v55 = vld [vmem:[#allocation9 + $0xd0] ss:$8 sps:$4 sm:$0xff]  }
 0x627   : > { %4149 = vmatpush1.bf16.msra.mxu0 %v6178_v52  ;;  %4241 = vmatmul.mubr.bf16.vlgmr.msra.gmra.mrb[4].mxu1 %v7478_v29  ;;  %v6311_v29 = vld [vmem:[#allocation9 + $0x20] ss:$8 sps:$4 sm:$0xff]  }
 0x628   : > { %4150 = vmatprep.subr.bf16.mxu0 %v6186_v57  ;;  %4250 = vmatpush1.bf16.msra.mxu1 %v6209_v28  ;;  %v6236_v52 = vld [vmem:[#allocation7 + $0x528] ss:$16 sps:$4 sm:$0xff]  }
 0x629   : > { %4281 = vmatprep.mubr.bf16.mxu1 %v7490_v8  ;;  %4251 = vmatprep.subr.bf16.mxu1 %v6214_v1  ;;  %v6314_v8 = vld [vmem:[#allocation9 + $0x30] ss:$8 sps:$4 sm:$0xff]   ;;  %v6256_v1 = vld [vmem:[#allocation7 + $0x5ec] ss:$16 sps:$4 sm:$0xff]  }
 0x62a   : > { %v6332_v57 = vld [vmem:[#allocation9 + $0x90] ss:$8 sps:$4 sm:$0xff]  }
 0x62b   : > { %4151 = vmatpush1.bf16.msra.mxu0 %v6184_v0  ;;  %v6239_v0 = vld [vmem:[#allocation7 + $0x548] ss:$16 sps:$4 sm:$0xff]  }
 0x62c   : > { %4152 = vmatprep.subr.bf16.mxu0 %v6192_v51  ;;  %4252 = vmatpush1.bf16.msra.mxu1 %v6212_v61  ;;  %v6335_v51 = vld [vmem:[#allocation9 + $0xa0] ss:$8 sps:$4 sm:$0xff]  }
 0x62d   : > { %4253 = vmatprep.subr.bf16.mxu1 %v6217_v45  ;;  %v6251_v28 = vld [vmem:[#allocation7 + $0x5c8] ss:$16 sps:$4 sm:$0xff]  }
 0x62e   : > { %v6257_v61 = vld [vmem:[#allocation7 + $0x608] ss:$16 sps:$4 sm:$0xff]  }
 0x62f   : > { %4153 = vmatpush1.bf16.msra.mxu0 %v6190_v21  ;;  %v6242_v21 = vld [vmem:[#allocation7 + $0x568] ss:$16 sps:$4 sm:$0xff]  }
 0x630   : > { %4154 = vmatprep.subr.bf16.mxu0 %v6198_v32  ;;  %4254 = vmatpush1.bf16.msra.mxu1 %v6215_v47  ;;  %v6338_v32 = vld [vmem:[#allocation9 + $0xb0] ss:$8 sps:$4 sm:$0xff]   ;;  %v6268_v47 = vld [vmem:[#allocation7 + $0x66c] ss:$16 sps:$4 sm:$0xff]  }
 0x631   : > { %4255 = vmatprep.subr.bf16.mxu1 %v6220_v10  ;;  %v6260_v45 = vld [vmem:[#allocation7 + $0x628] ss:$16 sps:$4 sm:$0xff]  }
 0x632   : > { %v6266_v10 = vld [vmem:[#allocation7 + $0x668] ss:$16 sps:$4 sm:$0xff]  }
 0x633   : > { %4155 = vmatpush1.bf16.msra.mxu0 %v6196_v23  ;;  %v6245_v23 = vld [vmem:[#allocation7 + $0x588] ss:$16 sps:$4 sm:$0xff]  }
 0x634   : > { %4156 = vmatprep.subr.bf16.mxu0 %v6204_v39  ;;  %4256 = vmatpush1.bf16.msra.mxu1 %v6218_v27  ;;  %v6341_v39 = vld [vmem:[#allocation9 + $0xc0] ss:$8 sps:$4 sm:$0xff]  }
 0x635   : > { %4257 = vmatprep.subr.bf16.mxu1 %v6223_v33  ;;  %v6269_v27 = vld [vmem:[#allocation7 + $0x688] ss:$16 sps:$4 sm:$0xff]   ;;  %v6274_v33 = vld [vmem:[#allocation7 + $0x6ac] ss:$16 sps:$4 sm:$0xff]  }
 0x637   : > { %4157 = vmatpush1.bf16.msra.mxu0 %v6202_v62  ;;  %v6248_v62 = vld [vmem:[#allocation7 + $0x5a8] ss:$16 sps:$4 sm:$0xff]  }
 0x638   : > { %4735 = vmatprep.subr.bf16.mxu0 %v6307_v54  ;;  %4258 = vmatpush1.bf16.msra.mxu1 %v6221_v4  ;;  %v6259_v54 = vld [vmem:[#allocation7 + $0x60c] ss:$16 sps:$4 sm:$0xff]  }
 0x639   : > { %4259 = vmatprep.subr.bf16.mxu1 %v6226_v6 }
 0x63a   : > { %4159 = vmatmul.mubr.bf16.vlgmr.msra.gmra.mrb[0].mxu0 %v7512_v56 }
 0x63b   : > { %4736 = vmatpush1.bf16.msra.mxu0 %v6305_v53  ;;  %v6254_v53 = vld [vmem:[#allocation7 + $0x5e8] ss:$16 sps:$4 sm:$0xff]  }
 0x63c   : > { %4737 = vmatprep.subr.bf16.mxu0 %v6310_v3  ;;  %4260 = vmatpush1.bf16.msra.mxu1 %v6224_v7  ;;  %v6262_v3 = vld [vmem:[#allocation7 + $0x62c] ss:$16 sps:$4 sm:$0xff]  }
 0x63d   : > { %4261 = vmatprep.subr.bf16.mxu1 %v6229_v5  ;;  %v6280_v7 = vld [vmem:[#allocation7 + $0x6ec] ss:$16 sps:$4 sm:$0xff]  }
 0x63e   : > { %v6352_v5 = vld [vmem:[#allocation9 + $0xf4] ss:$8 sps:$4 sm:$0xff]  }
 0x63f   : > { %4738 = vmatpush1.bf16.msra.mxu0 %v6308_v11  ;;  %v6265_v11 = vld [vmem:[#allocation7 + $0x64c] ss:$16 sps:$4 sm:$0xff]  }
 0x640   : > { %4739 = vmatprep.subr.bf16.mxu0 %v6313_v16  ;;  %4262 = vmatpush1.bf16.msra.mxu1 %v6227_v15  ;;  %v6263_v16 = vld [vmem:[#allocation7 + $0x648] ss:$16 sps:$4 sm:$0xff]   ;;  %v6283_v15 = vld [vmem:[#allocation7 + $0x70c] ss:$16 sps:$4 sm:$0xff]  }
 0x641   : > { %4263 = vmatprep.subr.bf16.mxu1 %v6232_v46  ;;  %v6355_v46 = vld [vmem:[#allocation9 + $0x104] ss:$8 sps:$4 sm:$0xff]  }
 0x643   : > { %4740 = vmatpush1.bf16.msra.mxu0 %v6311_v29  ;;  %v6271_v29 = vld [vmem:[#allocation7 + $0x68c] ss:$16 sps:$4 sm:$0xff]  }
 0x644   : > { %4741 = vmatprep.subr.bf16.mxu0 %v6316_v13  ;;  %4264 = vmatpush1.bf16.msra.mxu1 %v6230_v24  ;;  %v6277_v13 = vld [vmem:[#allocation7 + $0x6cc] ss:$16 sps:$4 sm:$0xff]   ;;  %v6284_v24 = vld [vmem:[#allocation7 + $0x728] ss:$16 sps:$4 sm:$0xff]  }
 0x645   : > { %4265 = vmatprep.subr.bf16.mxu1 %v6235_v59  ;;  %v6289_v59 = vld [vmem:[#allocation7 + $0x74c] ss:$16 sps:$4 sm:$0xff]  }
 0x647   : > { %4742 = vmatpush1.bf16.msra.mxu0 %v6314_v8  ;;  %v6349_v8 = vld [vmem:[#allocation9 + $0xe4] ss:$8 sps:$4 sm:$0xff]  }
 0x648   : > { %4743 = vmatprep.subr.bf16.mxu0 %v6319_v34  ;;  %4266 = vmatpush1.bf16.msra.mxu1 %v6233_v20  ;;  %v6347_v34 = vld [vmem:[#allocation9 + $0xe0] ss:$8 sps:$4 sm:$0xff]  }
 0x649   : > { %4267 = vmatprep.subr.bf16.mxu1 %v6238_v18  ;;  %v6290_v20 = vld [vmem:[#allocation7 + $0x768] ss:$16 sps:$4 sm:$0xff]   ;;  %v6295_v18 = vld [vmem:[#allocation7 + $0x78c] ss:$16 sps:$4 sm:$0xff]  }
 0x64b   : > { %4744 = vmatpush1.bf16.msra.mxu0 %v6317_v48  ;;  %v6275_v48 = vld [vmem:[#allocation7 + $0x6c8] ss:$16 sps:$4 sm:$0xff]  }
 0x64c   : > { %4745 = vmatprep.subr.bf16.mxu0 %v6322_v43  ;;  %4268 = vmatpush1.bf16.msra.mxu1 %v6236_v52  ;;  %v6296_v52 = vld [vmem:[#allocation7 + $0x7a8] ss:$16 sps:$4 sm:$0xff]  }
 0x64d   : > { %4269 = vmatprep.subr.bf16.mxu1 %v6241_v63  ;;  %v6301_v63 = vld [vmem:[#allocation7 + $0x7cc] ss:$16 sps:$4 sm:$0xff]  }
 0x64f   : > { %4746 = vmatpush1.bf16.msra.mxu0 %v6320_v12  ;;  %v6350_v12 = vld [vmem:[#allocation9 + $0xf0] ss:$8 sps:$4 sm:$0xff]  }
 0x650   : > { %4747 = vmatprep.subr.bf16.mxu0 %v6325_v42  ;;  %4270 = vmatpush1.bf16.msra.mxu1 %v6239_v0  ;;  %v6278_v42 = vld [vmem:[#allocation7 + $0x6e8] ss:$16 sps:$4 sm:$0xff]  }
 0x651   : > { %4271 = vmatprep.subr.bf16.mxu1 %v6244_v25  ;;  %v6302_v0 = vld [vmem:[#allocation7 + $0x7e8] ss:$16 sps:$4 sm:$0xff]   ;;  %v7523_v25 = vld [vmem:[%s7697_s12] sm:$0xf] }
 0x653   : > { %4748 = vmatpush1.bf16.msra.mxu0 %v6323_v19  ;;  %v6281_v19 = vld [vmem:[#allocation7 + $0x708] ss:$16 sps:$4 sm:$0xff]  }
 0x654   : > { %4749 = vmatprep.subr.bf16.mxu0 %v6328_v49  ;;  %4272 = vmatpush1.bf16.msra.mxu1 %v6242_v21  ;;  %v6286_v49 = vld [vmem:[#allocation7 + $0x72c] ss:$16 sps:$4 sm:$0xff]  }
 0x655   : > { %4273 = vmatprep.subr.bf16.mxu1 %v6247_v31 }
 0x657   : > { %4750 = vmatpush1.bf16.msra.mxu0 %v6326_v35  ;;  %v6287_v35 = vld [vmem:[#allocation7 + $0x748] ss:$16 sps:$4 sm:$0xff]  }
 0x658   : > { %4751 = vmatprep.subr.bf16.mxu0 %v6331_v50  ;;  %4274 = vmatpush1.bf16.msra.mxu1 %v6245_v23  ;;  %v6292_v50 = vld [vmem:[#allocation7 + $0x76c] ss:$16 sps:$4 sm:$0xff]  }
 0x659   : > { %4275 = vmatprep.subr.bf16.mxu1 %v6250_v40 }
 0x65b   : > { %4752 = vmatpush1.bf16.msra.mxu0 %v6329_v2  ;;  %v6293_v2 = vld [vmem:[#allocation7 + $0x788] ss:$16 sps:$4 sm:$0xff]  }
 0x65c   : > { %4753 = vmatprep.subr.bf16.mxu0 %v6334_v30  ;;  %4276 = vmatpush1.bf16.msra.mxu1 %v6248_v62  ;;  %v6298_v30 = vld [vmem:[#allocation7 + $0x7ac] ss:$16 sps:$4 sm:$0xff]  }
 0x65d   : > { %4277 = vmatprep.subr.bf16.mxu1 %v6253_v44 }
 0x65f   : > { %4754 = vmatpush1.bf16.msra.mxu0 %v6332_v57  ;;  %v6299_v57 = vld [vmem:[#allocation7 + $0x7c8] ss:$16 sps:$4 sm:$0xff]  }
 0x660   : > { %4755 = vmatprep.subr.bf16.mxu0 %v6337_v38  ;;  %4278 = vmatpush1.bf16.msra.mxu1 %v6251_v28  ;;  %v6304_v38 = vld [vmem:[#allocation7 + $0x7ec] ss:$16 sps:$4 sm:$0xff]  }
 0x661   : > { %4279 = vmatprep.subr.bf16.mxu1 %v6256_v1  ;;  %v6358_v1 = vld [vmem:[#allocation9 + $0x114] ss:$8 sps:$4 sm:$0xff]  }
 0x663   : > { %4756 = vmatpush1.bf16.msra.mxu0 %v6335_v51  ;;  %v2706_v51 = vrot.slane %v7523_v25, %v7108_v60 }
 0x664   : > { %4757 = vmatprep.subr.bf16.mxu0 %v6340_v41  ;;  %4280 = vmatpush1.bf16.msra.mxu1 %v6254_v53  ;;  %v2710_v41 = vrot.slane %v7523_v25, %v7117_v9  ;;  %v6401_v53 = vld [vmem:[%s7698_s10 + $0x40] sm:$0xff]  }
 0x665   : > { %4290 = vmatprep.subr.bf16.mxu1 %v6259_v54  ;;  %v6402_v54 = vld [vmem:[%s7698_s10] sm:$0xff]  }
 0x667   : > { %4758 = vmatpush1.bf16.msra.mxu0 %v6338_v32  ;;  %4282 = vmatmul.mubr.bf16.vlgmr.msra.gmra.mrb[4].mxu1 %v7502_v26  ;;  %v6272_v26 = vld [vmem:[#allocation7 + $0x6a8] ss:$16 sps:$4 sm:$0xff]  }
 0x668   : > { %4759 = vmatprep.subr.bf16.mxu0 %v6343_v22  ;;  %4291 = vmatpush1.bf16.msra.mxu1 %v6257_v61  ;;  %v6403_v61 = vld [vmem:[%s7698_s10 + $0x48] sm:$0xff]  }
 0x669   : > { %4322 = vmatprep.mubr.bf16.mxu1 %v7504_v14  ;;  %4292 = vmatprep.subr.bf16.mxu1 %v6262_v3  ;;  %v6356_v3 = vld [vmem:[#allocation9 + $0x110] ss:$8 sps:$4 sm:$0xff]  }
 0x66b   : > { %4760 = vmatpush1.bf16.msra.mxu0 %v6341_v39 }
 0x66c   : > { %4761 = vmatprep.subr.bf16.mxu0 %v6346_v36  ;;  %4293 = vmatpush1.bf16.msra.mxu1 %v6260_v45  ;;  %v6361_v45 = vld [vmem:[#allocation9 + $0x124] ss:$8 sps:$4 sm:$0xff]  }
 0x66d   : > { %4294 = vmatprep.subr.bf16.mxu1 %v6265_v11  ;;  %v6404_v11 = vld [vmem:[%s7698_s10 + $0x8] sm:$0xff]  }
 0x66f   : > { %4762 = vmatpush1.bf16.msra.mxu0 %v6344_v55  ;;  %v6353_v55 = vld [vmem:[#allocation9 + $0x100] ss:$8 sps:$4 sm:$0xff]  }
 0x670   : > { %4295 = vmatpush1.bf16.msra.mxu1 %v6263_v16  ;;  %4763 = vmatprep.subr.bf16.mxu0 %v6349_v8  ;;  %v6405_v16 = vld [vmem:[%s7698_s10 + $0x50] sm:$0xff]   ;;  %v6409_v8 = vld [vmem:[%s7698_s10 + $0x60] sm:$0xff]  }
 0x671   : > { %4296 = vmatprep.subr.bf16.mxu1 %v6268_v47  ;;  %v6359_v47 = vld [vmem:[#allocation9 + $0x120] ss:$8 sps:$4 sm:$0xff]  }
 0x673   : > { %4764 = vmatpush1.bf16.msra.mxu0 %v6347_v34  ;;  %v6370_v34 = vld [vmem:[#allocation9 + $0x154] ss:$8 sps:$4 sm:$0xff]  }
 0x674   : > { %4297 = vmatpush1.bf16.msra.mxu1 %v6266_v10  ;;  %4765 = vmatprep.subr.bf16.mxu0 %v6352_v5  ;;  %v6364_v10 = vld [vmem:[#allocation9 + $0x134] ss:$8 sps:$4 sm:$0xff]   ;;  %v6371_v5 = vld [vmem:[#allocation9 + $0x160] ss:$8 sps:$4 sm:$0xff]  }
 0x675   : > { %4298 = vmatprep.subr.bf16.mxu1 %v6271_v29  ;;  %v6406_v29 = vld [vmem:[%s7698_s10 + $0x10] sm:$0xff]  }
 0x677   : > { %4766 = vmatpush1.bf16.msra.mxu0 %v6350_v12  ;;  %v6376_v12 = vld [vmem:[#allocation9 + $0x174] ss:$8 sps:$4 sm:$0xff]  }
 0x678   : > { %4299 = vmatpush1.bf16.msra.mxu1 %v6269_v27  ;;  %4776 = vmatprep.subr.bf16.mxu0 %v6355_v46  ;;  %v6407_v27 = vld [vmem:[%s7698_s10 + $0x58] sm:$0xff]  }
 0x679   : > { %4300 = vmatprep.subr.bf16.mxu1 %v6274_v33  ;;  %v4037_v14 = vpop.f32.mrb[0].mxu1  ;;  %v6362_v33 = vld [vmem:[#allocation9 + $0x130] ss:$8 sps:$4 sm:$0xff]   ;;  %v6377_v46 = vld [vmem:[#allocation9 + $0x180] ss:$8 sps:$4 sm:$0xff]  }
 0x67a   : > { %v4039_v4 = vpop.f32.mrb[1].mxu1  ;;  %v4038_v21 = vadd.f32 %v4037_v14, %v2706_v51  ;;  %v6365_v14 = vld [vmem:[#allocation9 + $0x140] ss:$8 sps:$4 sm:$0xff]   ;;  %v2718_v51 = vrot.slane %v7523_v25, %v1365_v37 }
 0x67b   : > { %v4041_v6 = vpop.f32.mrb[2].mxu1  ;;  %v4040_v31 = vadd.f32 %v4039_v4, %v2710_v41  ;;  %v6410_v4 = vld [vmem:[%s7698_s10 + $0x20] sm:$0xff]   ;;  %v6415_v37 = vld [vmem:[%s7698_s10 + $0x78] sm:$0xff]  }
 0x67c   : > { %4301 = vmatpush1.bf16.msra.mxu1 %v6272_v26  ;;  %v4042_v43 = vpop.f32.mrb[3].mxu1  ;;  %v6367_v26 = vld [vmem:[#allocation9 + $0x144] ss:$8 sps:$4 sm:$0xff]   ;;  %v6411_v6 = vld [vmem:[%s7698_s10 + $0x68] sm:$0xff]  }
 0x67d   : > { %4302 = vmatprep.subr.bf16.mxu1 %v6277_v13  ;;  %v6408_v13 = vld [vmem:[%s7698_s10 + $0x18] sm:$0xff]  }
 0x67e   : > { %v6373_v43 = vld [vmem:[#allocation9 + $0x164] ss:$8 sps:$4 sm:$0xff]  }
 0x680   : > { %4303 = vmatpush1.bf16.msra.mxu1 %v6275_v48  ;;  %v6368_v48 = vld [vmem:[#allocation9 + $0x150] ss:$8 sps:$4 sm:$0xff]  }
 0x681   : > { %4304 = vmatprep.subr.bf16.mxu1 %v6280_v7  ;;  %v6412_v7 = vld [vmem:[%s7698_s10 + $0x28] sm:$0xff]  }
 0x684   : > { %4305 = vmatpush1.bf16.msra.mxu1 %v6278_v42  ;;  %v6374_v42 = vld [vmem:[#allocation9 + $0x170] ss:$8 sps:$4 sm:$0xff]  }
 0x685   : > { %4306 = vmatprep.subr.bf16.mxu1 %v6283_v15  ;;  %v6379_v15 = vld [vmem:[#allocation9 + $0x184] ss:$8 sps:$4 sm:$0xff]  }
 0x688   : > { %4307 = vmatpush1.bf16.msra.mxu1 %v6281_v19  ;;  %v6382_v19 = vld [vmem:[#allocation9 + $0x194] ss:$8 sps:$4 sm:$0xff]  }
 0x689   : > { %4308 = vmatprep.subr.bf16.mxu1 %v6286_v49  ;;  %v6380_v49 = vld [vmem:[#allocation9 + $0x190] ss:$8 sps:$4 sm:$0xff]  }
 0x68c   : > { %4309 = vmatpush1.bf16.msra.mxu1 %v6284_v24  ;;  %v6385_v24 = vld [vmem:[#allocation9 + $0x1a4] ss:$8 sps:$4 sm:$0xff]  }
 0x68d   : > { %4310 = vmatprep.subr.bf16.mxu1 %v6289_v59  ;;  %v6383_v59 = vld [vmem:[#allocation9 + $0x1a0] ss:$8 sps:$4 sm:$0xff]  }
 0x690   : > { %4311 = vmatpush1.bf16.msra.mxu1 %v6287_v35  ;;  %v6388_v35 = vld [vmem:[#allocation9 + $0x1b4] ss:$8 sps:$4 sm:$0xff]  }
 0x691   : > { %4312 = vmatprep.subr.bf16.mxu1 %v6292_v50  ;;  %v6386_v50 = vld [vmem:[#allocation9 + $0x1b0] ss:$8 sps:$4 sm:$0xff]  }
 0x694   : > { %4313 = vmatpush1.bf16.msra.mxu1 %v6290_v20  ;;  %v6391_v20 = vld [vmem:[#allocation9 + $0x1c4] ss:$8 sps:$4 sm:$0xff]  }
 0x695   : > { %4314 = vmatprep.subr.bf16.mxu1 %v6295_v18  ;;  %v6389_v18 = vld [vmem:[#allocation9 + $0x1c0] ss:$8 sps:$4 sm:$0xff]  }
 0x698   : > { %4315 = vmatpush1.bf16.msra.mxu1 %v6293_v2  ;;  %v6394_v2 = vld [vmem:[#allocation9 + $0x1d4] ss:$8 sps:$4 sm:$0xff]  }
 0x699   : > { %4316 = vmatprep.subr.bf16.mxu1 %v6298_v30  ;;  %v6392_v30 = vld [vmem:[#allocation9 + $0x1d0] ss:$8 sps:$4 sm:$0xff]  }
 0x69c   : > { %4317 = vmatpush1.bf16.msra.mxu1 %v6296_v52  ;;  %v6397_v52 = vld [vmem:[#allocation9 + $0x1e4] ss:$8 sps:$4 sm:$0xff]  }
 0x69d   : > { %4318 = vmatprep.subr.bf16.mxu1 %v6301_v63  ;;  %v6395_v63 = vld [vmem:[#allocation9 + $0x1e0] ss:$8 sps:$4 sm:$0xff]  }
 0x6a0   : > { %4319 = vmatpush1.bf16.msra.mxu1 %v6299_v57  ;;  %v6400_v57 = vld [vmem:[#allocation9 + $0x1f4] ss:$8 sps:$4 sm:$0xff]  }
 0x6a1   : > { %4320 = vmatprep.subr.bf16.mxu1 %v6304_v38  ;;  %v6398_v38 = vld [vmem:[#allocation9 + $0x1f0] ss:$8 sps:$4 sm:$0xff]  }
 0x6a4   : > { %4321 = vmatpush1.bf16.msra.mxu1 %v6302_v0  ;;  %v2714_v0 = vrot.slane %v7523_v25, %v1361_v58  ;;  %v6413_v58 = vld [vmem:[%s7698_s10 + $0x70] sm:$0xff]   ;;  %v6416_v25 = vld [vmem:[%s7698_s10 + $0x38] sm:$0xff]  }
 0x6a5   : > { %5643 = vmatprep.subr.bf16.mxu1 %v6401_v53 }
 0x6a7   : > { %4323 = vmatmul.mubr.bf16.vlgmr.msra.gmra.mrb[4].mxu1 %v7512_v56 }
 0x6a8   : > { %5644 = vmatpush3.bf16.msra.mxu1 %v6402_v54 }
 0x6a9   : > { %5645 = vmatprep.subr.bf16.mxu1 %v6403_v61 }
 0x6ac   : > { %5646 = vmatpush3.bf16.msra.mxu1 %v6404_v11 }
 0x6ad   : > { %5647 = vmatprep.subr.bf16.mxu1 %v6405_v16 }
 0x6b0   : > { %5648 = vmatpush3.bf16.msra.mxu1 %v6406_v29  ;;  %v5590_v29 = vld [vmem:[%s7700_s26] ss:$0 sm:$0xff] }
 0x6b1   : > { %5649 = vmatprep.subr.bf16.mxu1 %v6407_v27 }
 0x6b4   : > { %5650 = vmatpush3.bf16.msra.mxu1 %v6408_v13 }
 0x6b5   : > { %5651 = vmatprep.subr.bf16.mxu1 %v6409_v8 }
 0x6b8   : > { %5652 = vmatpush3.bf16.msra.mxu1 %v6410_v4 }
 0x6b9   : > { %5653 = vmatprep.subr.bf16.mxu1 %v6411_v6 }
 0x6bc   : > { %5654 = vmatpush3.bf16.msra.mxu1 %v6412_v7 }
 0x6bd   : > { %5655 = vmatprep.subr.bf16.mxu1 %v6413_v58 }
 0x6c0   : > { %5656 = vmatpush3.bf16.msra.mxu1 %v6414_v17 }
 0x6c1   : > { %5657 = vmatprep.subr.bf16.mxu1 %v6415_v37 }
 0x6c4   : > { %5658 = vmatpush3.bf16.msra.mxu1 %v6416_v25 }
 0x70d   : > { %v4160_v32 = vpop.f32.mrb[0].mxu0 }
 0x70e   : > { %v5724_v22 = vadd.f32 %v4160_v32, %v4038_v21  ;;  %v4162_v23 = vpop.f32.mrb[1].mxu0 }
 0x70f   : > { %v5726_v40 = vadd.f32 %v4162_v23, %v4040_v31  ;;  %v4164_v39 = vpop.f32.mrb[2].mxu0 }
 0x710   : > { %v4331_v36 = vmax.f32 %v5724_v22, 0.0  ;;  %v4165_v56 = vpop.f32.mrb[3].mxu0 }
 0x711   : > { %v4332_v62 = vmax.f32 %v5726_v40, 0.0 }
 0x712   : > { %v4335_v28 = vpack.c.bf16 %v4331_v36, %v4331_v36 }
 0x713   : > { %v4336_v44 = vpack.c.bf16 %v4332_v62, %v4332_v62  ;;  %v4403_v62 = vld [vmem:[%s7699_s24] sm:$0x3] }
 0x715   : > { %4767 = vmatprep.mubr.bf16.mxu0 %v4336_v44  ;;  %v4408_v44 = vrot.slane %v4403_v62, %v7108_v60 }
 0x716   : > { %4768 = vmatmul.mubr.bf16.vlgmr.msra.gmra.mrb[4].mxu0 %v4335_v28 }
 0x717   : > { %4777 = vmatpush1.bf16.msra.mxu0 %v6353_v55  ;;  %v4412_v55 = vrot.slane %v4403_v62, %v7117_v9 }
 0x718   : > { %4778 = vmatprep.subr.bf16.mxu0 %v6358_v1 }
 0x71b   : > { %4779 = vmatpush1.bf16.msra.mxu0 %v6356_v3 }
 0x71c   : > { %4780 = vmatprep.subr.bf16.mxu0 %v6361_v45 }
 0x71f   : > { %4781 = vmatpush1.bf16.msra.mxu0 %v6359_v47 }
 0x720   : > { %4782 = vmatprep.subr.bf16.mxu0 %v6364_v10 }
 0x723   : > { %4783 = vmatpush1.bf16.msra.mxu0 %v6362_v33 }
 0x724   : > { %4784 = vmatprep.subr.bf16.mxu0 %v6367_v26 }
 0x727   : > { %4785 = vmatpush1.bf16.msra.mxu0 %v6365_v14 }
 0x728   : > { %4786 = vmatprep.subr.bf16.mxu0 %v6370_v34 }
 0x72b   : > { %4787 = vmatpush1.bf16.msra.mxu0 %v6368_v48 }
 0x72c   : > { %4788 = vmatprep.subr.bf16.mxu0 %v6373_v43 }
 0x72f   : > { %4789 = vmatpush1.bf16.msra.mxu0 %v6371_v5 }
 0x730   : > { %4790 = vmatprep.subr.bf16.mxu0 %v6376_v12 }
 0x733   : > { %4791 = vmatpush1.bf16.msra.mxu0 %v6374_v42 }
 0x734   : > { %4792 = vmatprep.subr.bf16.mxu0 %v6379_v15 }
 0x737   : > { %4793 = vmatpush1.bf16.msra.mxu0 %v6377_v46 }
 0x738   : > { %4794 = vmatprep.subr.bf16.mxu0 %v6382_v19 }
 0x73b   : > { %4795 = vmatpush1.bf16.msra.mxu0 %v6380_v49 }
 0x73c   : > { %4796 = vmatprep.subr.bf16.mxu0 %v6385_v24 }
 0x73f   : > { %4797 = vmatpush1.bf16.msra.mxu0 %v6383_v59 }
 0x740   : > { %4798 = vmatprep.subr.bf16.mxu0 %v6388_v35 }
 0x743   : > { %4799 = vmatpush1.bf16.msra.mxu0 %v6386_v50 }
 0x744   : > { %4800 = vmatprep.subr.bf16.mxu0 %v6391_v20 }
 0x747   : > { %4801 = vmatpush1.bf16.msra.mxu0 %v6389_v18 }
 0x748   : > { %4802 = vmatprep.subr.bf16.mxu0 %v6394_v2 }
 0x74b   : > { %4803 = vmatpush1.bf16.msra.mxu0 %v6392_v30 }
 0x74c   : > { %4804 = vmatprep.subr.bf16.mxu0 %v6397_v52 }
 0x74f   : > { %4805 = vmatpush1.bf16.msra.mxu0 %v6395_v63 }
 0x750   : > { %4806 = vmatprep.subr.bf16.mxu0 %v6400_v57 }
 0x753   : > { %4807 = vmatpush1.bf16.msra.mxu0 %v6398_v38 }
 0x77a   : > { %v4324_v41 = vpop.f32.mrb[4].mxu1 }
 0x77b   : > { %v5727_v21 = vadd.f32 %v4324_v41, %v2714_v0  ;;  %v4326_v31 = vpop.f32.mrb[5].mxu1 }
 0x77c   : > { %v5728_v32 = vadd.f32 %v4326_v31, %v2718_v51  ;;  %v4328_v22 = vpop.f32.mrb[6].mxu1 }
 0x77d   : > { %v4333_v23 = vmax.f32 %v5727_v21, 0.0  ;;  %v4329_v40 = vpop.f32.mrb[7].mxu1 }
 0x77e   : > { %v4334_v39 = vmax.f32 %v5728_v32, 0.0 }
 0x77f   : > { %v4337_v56 = vpack.c.bf16 %v4333_v23, %v4333_v23 }
 0x780   : > { %v4338_v36 = vpack.c.bf16 %v4334_v39, %v4334_v39 }
 0x782   : > { %4808 = vmatprep.mubr.bf16.mxu0 %v4338_v36 }
 0x783   : > { %4809 = vmatmul.mubr.bf16.vlgmr.msra.gmra.mrb[4].mxu0 %v4337_v56 }
 0x856   : > { %v4810_v28 = vpop.f32.mrb[4].mxu0 }
 0x857   : > { %v5729_v1 = vadd.f32 %v4810_v28, %v4408_v44  ;;  %v4812_v53 = vpop.f32.mrb[5].mxu0 }
 0x858   : > { %v5730_v54 = vadd.f32 %v4812_v53, %v4412_v55  ;;  %v4814_v61 = vpop.f32.mrb[6].mxu0 }
 0x859   : > { %v4817_v3 = vmax.f32 %v5729_v1, 0.0  ;;  %v4815_v45 = vpop.f32.mrb[7].mxu0 }
 0x85a   : > { %v4818_v11 = vmax.f32 %v5730_v54, 0.0 }
 0x85b   : > { %v4819_v47 = vpack.c.bf16 %v4817_v3, %v4817_v3 }
 0x85c   : > { %v4820_v16 = vpack.c.bf16 %v4818_v11, %v4818_v11 }
 0x85e   : > { %4988 = vmatprep.mubr.bf16.mxu1 %v4820_v16 }
 0x85f   : > { %4989 = vmatmul.mubr.bf16.vlgmr.msra.gmra.mrb[8].mxu1 %v4819_v47 }
 0x932   : > { %v5659_v10 = vpop.f32.mrb[8].mxu1 }
 0x933   : > { %v5660_v60 = vpop.f32.mrb[9].mxu1 }
 0x934   : > { %v5661_v27 = vadd.f32 %v5660_v60, %v5659_v10  ;;  %v5662_v9 = vpop.f32.mrb[10].mxu1 }
 0x935   : > { %v5663_v33 = vpop.f32.mrb[11].mxu1 }
 0x936   : > { %v4991_v26 = vadd.f32 %v5661_v27, %v5590_v29 }
 0x938   : > { %4997 = vst.msk [vmem:[#allocation10] sm:$0x3] %vm4996_vm12, %v4991_v26 }
 0x939 PF: > { %s7701_s20 = sadd.s32 4294967295, %s6609_s28   ;;  %s6656_s6 = smov [#allocation10]  }
 0x93a   : > { %p7593_p3 = scmp.eq.s32.totalorder %s7701_s20, 2  ;;  %s5007_s30 = sshll.u32 %s6656_s6, 4  ;;  %s5008_s30 = int_to_ptr.vmem [resolvable:$true] %s5007_s30 }
 0x93b   : > { %s6501_s14 = scalar_lea.vmem %s5008_s30, 32  ;;  %p6508_p8 = scmp.lt.s32.totalorder %s5008_s30, %s5008_s30 }
 0x93c   : > { %p6502_p7 = scmp.ne.s32.totalorder %s5008_s30, %s6501_s14  ;;  %p6509_p11 = scmp.lt.s32.totalorder %s6501_s14, %s6501_s14 }
 0x93e   : > { %p6503_p12 = pnand %p6502_p7, %p7593_p3  ;;  %p6510_p13 = por %p6509_p11, %p6508_p8 }
 0x940   : > { %p6504_p10 = pneg %p6503_p12 }
 0x942   : > { %p6511_p0 = pnand %p6510_p13, %p6504_p10 }
 0x944   : > { %6514 = shalt.err (!%p6511_p0)
}
 0x945   : > { %s7703_s29 = sld [smem:[#allocation26_spill]] }
 0x94b   : > { %s6515_s15 = scalar_lea.hbm %s7703_s29, 32 }
 0x94c   : > { %p6516_p1 = scmp.ne.s32.totalorder %s7703_s29, %s6515_s15  ;;  %p6521_p5 = scmp.lt.u32.totalorder %s6515_s15, %s7703_s29 }
 0x94e   : > { %p6517_p2 = pnand %p6516_p1, %p7593_p3 }
 0x950   : > { %p6518_p4 = pneg %p6517_p2 }
 0x952   : > { %p6523_p6 = pnand %p6521_p5, %p6518_p4 }
 0x954   : > { %6526 = shalt.err (!%p6523_p6)
}
 0x955   : > { %5768 = dma.vmem_to_hbm [thread:$0]  (%p7593_p3), %s5008_s30, 32, %s7703_s29, [#allocation6]  }
 0x956   : > { %6588 = dma.done.wait (%p7593_p3), [#allocation6], 32  }
 0x957   : > { %6590 = vsyncadd (%p7593_p3), [#allocation6], 4294967264 }
 0x958 PF: > { %s30_s28 = sadd.s32 1, %s6609_s28   ;;  %s7704_s22 = sld [smem:[#allocation15_spill]] }
 0x959   : > { %p27_p9 = scmp.ge.s32.totalorder %s30_s28, 5   ;;  %s7705_s1 = sld [smem:[#allocation14_spill]] }
 0x95a   : > { %s7706_s24 = smov %s6597_s25  ;;  %s7708_s26 = smov %s6605_s27 }
 0x95b   :  { %29 = sbr.rel (!%p27_p9) target bundleno = 17 (0x11), region = 224 }
 0x95e   : > { %s7707_s25 = smov %s7704_s22 }
 0x95f   : > { %s7709_s27 = smov %s7705_s1 }
 0x962   :  { %5020 = vsyncpa [#allocation5], 1 }
 0x963   :  { %5022 = vsyncpa [#allocation5 + $0x1], 1 }
 0x964   :  { %5023 = vsyncpa [#allocation8], 1 }
 0x965   :  { %5024 = vsyncpa [#allocation6], 1 }
 0x966   :  { %5026 = vsyncpa [#allocation6 + $0x1], 1 }

</bundles_post_ra>
